<compile_context>
chip_gen: v7x
topology: tpu7x:2x2x1
jax: 0.10.0
libtpu: 0.0.40
codegen_flags: <defaults>
</compile_context>

<pallas_src>
import functools

import jax
import jax.numpy as jnp
from jax import lax
from jax.experimental import pallas as pl
from jax.experimental.pallas import tpu as pltpu

BN_EPS = 1e-5
LEAKY_SLOPE = 0.01
LANE = 128
SUBLANE = 8


def _round_up(x, m):
    return (x + m - 1) // m * m


def _accum_conv(x_ref, w_ref, acc_ref, *, wp, mb):
    """acc_ref[(mb, C_pad)] <- sum over the 9 taps of x_slice @ w_tap.

    x_ref block: (1, Rext, C_in_pad) = spatially padded sample, rows flattened
    over (h', w').  For tap (dy, dx) the needed rows for *every* output
    position form the contiguous slice [dy*Wp + dx : dy*Wp + dx + mb).
    """
    for t in range(9):
        dy, dx = t // 3, t % 3
        start = dy * wp + dx                              # static slice start
        a = x_ref[0, start:start + mb, :]                 # (mb, C_in_pad)
        contrib = jnp.dot(a, w_ref[t], preferred_element_type=jnp.float32)
        if t == 0:
            acc_ref[...] = contrib
        else:
            acc_ref[...] += contrib


def _stats_kernel(x_ref, w_ref, mask_ref, sum_ref, sumsq_ref, acc_ref, *, wp, mb):
    """Pass 1: accumulate per-channel sum and sum-of-squares over the batch."""
    @pl.when(pl.program_id(0) == 0)
    def _init():
        sum_ref[...] = jnp.zeros_like(sum_ref)
        sumsq_ref[...] = jnp.zeros_like(sumsq_ref)

    _accum_conv(x_ref, w_ref, acc_ref, wp=wp, mb=mb)
    conv = acc_ref[...]                                   # (mb, C_pad) f32
    mask = mask_ref[...]                                  # (1, mb): 1.0 on valid rows
    # Per-channel reductions as mask-row matmuls (MXU), junk rows masked out.
    sum_ref[...] += jnp.dot(mask, conv, preferred_element_type=jnp.float32)
    sumsq_ref[...] += jnp.dot(mask, conv * conv,
                              preferred_element_type=jnp.float32)


def _apply_kernel(x_ref, w_ref, scale_ref, shift_ref, o_ref, acc_ref, *, wp, mb):
    """Pass 2: recompute conv tile, apply folded BN affine + LeakyReLU."""
    _accum_conv(x_ref, w_ref, acc_ref, wp=wp, mb=mb)
    y = acc_ref[...] * scale_ref[...] + shift_ref[...]    # folded BN
    o_ref[0] = jnp.maximum(y, LEAKY_SLOPE * y)            # LeakyReLU(0.01)


@jax.jit
def block_forward(x, conv_w, conv_b, bn_gamma, bn_beta):
    """PyTorch-equivalent forward of Block (training-mode BN). x: NCHW."""
    del conv_b  # exactly cancelled by the BN batch-mean subtraction (no-op)

    N, C_in, H, W = x.shape
    C_out = conv_w.shape[0]

    Hp, Wp = H + 2, W + 2
    Mp = Hp * Wp                        # padded spatial positions per sample
    Mb = H * Wp                         # band rows per sample (incl. junk cols)
    C_in_pad = _round_up(C_in, SUBLANE)
    C_pad = _round_up(C_out, LANE)
    Rext = _round_up(Mp + 2, SUBLANE)   # rows so every shifted slice is in-bounds

    f32 = jnp.float32

    # ---- lightweight packing (no 9x im2col materialisation in HBM) ----
    x_nhwc = jnp.transpose(x.astype(f32), (0, 2, 3, 1))            # (N,H,W,Cin)
    xp = jnp.pad(x_nhwc, ((0, 0), (1, 1), (1, 1), (0, C_in_pad - C_in)))
    xf = xp.reshape(N, Mp, C_in_pad)
    xf = jnp.pad(xf, ((0, 0), (0, Rext - Mp), (0, 0)))             # (N,Rext,Cin_pad)

    # weight -> (tap, ci, co_padded); tap t = dy*3 + dx
    w_taps = jnp.transpose(conv_w.astype(f32), (2, 3, 1, 0))       # (3,3,ci,co)
    w_taps = jnp.pad(w_taps, ((0, 0), (0, 0),
                              (0, C_in_pad - C_in), (0, C_pad - C_out)))
    w_taps = w_taps.reshape(9, C_in_pad, C_pad)

    gamma_p = jnp.pad(bn_gamma.astype(f32), (0, C_pad - C_out)).reshape(1, C_pad)
    beta_p = jnp.pad(bn_beta.astype(f32), (0, C_pad - C_out)).reshape(1, C_pad)

    # valid-band mask: band row j = h*Wp + w is valid iff (j % Wp) < W
    j = jnp.arange(Mb)
    mask_row = ((j % Wp) < W).astype(f32).reshape(1, Mb)

    x_spec = pl.BlockSpec((1, Rext, C_in_pad), lambda n: (n, 0, 0))
    w_spec = pl.BlockSpec((9, C_in_pad, C_pad), lambda n: (0, 0, 0))
    row_spec = pl.BlockSpec((1, C_pad), lambda n: (0, 0))
    mask_spec = pl.BlockSpec((1, Mb), lambda n: (0, 0))
    acc_scratch = pltpu.VMEM((Mb, C_pad), jnp.float32)

    # ---- pass 1: per-channel sum / sum-of-squares (reduction over batch) ----
    sums, sumsqs = pl.pallas_call(
        functools.partial(_stats_kernel, wp=Wp, mb=Mb),
        out_shape=(jax.ShapeDtypeStruct((1, C_pad), f32),
                   jax.ShapeDtypeStruct((1, C_pad), f32)),
        grid=(N,),
        in_specs=[x_spec, w_spec, mask_spec],
        out_specs=(row_spec, row_spec),
        scratch_shapes=[acc_scratch],
        compiler_params=pltpu.CompilerParams(
            dimension_semantics=("arbitrary",),
            vmem_limit_bytes=32 * 1024 * 1024),
    )(xf, w_taps, mask_row)

    # ---- fold BN (batch stats, biased var) + affine into scale/shift ----
    count = f32(N * H * W)
    mean = sums / count
    var = jnp.maximum(sumsqs / count - mean * mean, 0.0)
    inv_std = lax.rsqrt(var + BN_EPS)
    scale = gamma_p * inv_std
    shift = beta_p - mean * scale

    # ---- pass 2: recompute conv, apply scale/shift + LeakyReLU ----
    out_band = pl.pallas_call(
        functools.partial(_apply_kernel, wp=Wp, mb=Mb),
        out_shape=jax.ShapeDtypeStruct((N, Mb, C_pad), f32),
        grid=(N,),
        in_specs=[x_spec, w_spec, row_spec, row_spec],
        out_specs=pl.BlockSpec((1, Mb, C_pad), lambda n: (n, 0, 0)),
        scratch_shapes=[acc_scratch],
        compiler_params=pltpu.CompilerParams(
            dimension_semantics=("parallel",),
            vmem_limit_bytes=32 * 1024 * 1024),
    )(xf, w_taps, scale, shift)

    # (N, H*Wp, C_pad) -> (N, H, Wp, C_pad) -> drop junk cols / pad lanes -> NCHW
    out = out_band.reshape(N, H, Wp, C_pad)[:, :, :W, :C_out]
    return jnp.transpose(out, (0, 3, 1, 2))


@jax.jit
def _reference(x, conv_w, conv_b, bn_gamma, bn_beta):
    """Pure-JAX reference (Conv2d + training-mode BN + LeakyReLU)."""
    conv = lax.conv_general_dilated(
        x, conv_w, window_strides=(1, 1), padding=((1, 1), (1, 1)),
        dimension_numbers=("NCHW", "OIHW", "NCHW"),
        precision=lax.Precision.HIGHEST)
    conv = conv + conv_b.reshape(1, -1, 1, 1)
    mean = jnp.mean(conv, axis=(0, 2, 3), keepdims=True)
    var = jnp.mean(jnp.square(conv - mean), axis=(0, 2, 3), keepdims=True)
    y = (conv - mean) * lax.rsqrt(var + BN_EPS)
    y = y * bn_gamma.reshape(1, -1, 1, 1) + bn_beta.reshape(1, -1, 1, 1)
    return jnp.where(y >= 0, y, LEAKY_SLOPE * y)


if __name__ == "__main__":
    # Small shapes consistent with the module: Block(in_f=4, out_f=8)
    N, C_in, H, W = 2, 4, 16, 16
    C_out = 8

    key = jax.random.PRNGKey(0)
    kx, kw, kb = jax.random.split(key, 3)

    x = jax.random.normal(kx, (N, C_in, H, W), dtype=jnp.float32)

    # Deterministic parameter init mirroring PyTorch defaults.
    fan_in = C_in * 3 * 3
    bound = 1.0 / (fan_in ** 0.5)
    conv_w = jax.random.uniform(kw, (C_out, C_in, 3, 3), jnp.float32,
                                minval=-bound, maxval=bound)
    conv_b = jax.random.uniform(kb, (C_out,), jnp.float32,
                                minval=-bound, maxval=bound)
    bn_gamma = jnp.ones((C_out,), jnp.float32)
    bn_beta = jnp.zeros((C_out,), jnp.float32)

    out = block_forward(x, conv_w, conv_b, bn_gamma, bn_beta)
    out = jax.block_until_ready(out)

    assert out.shape == (N, C_out, H, W)
    assert out.dtype == jnp.float32
    assert bool(jnp.all(jnp.isfinite(out)))

    ref = jax.block_until_ready(_reference(x, conv_w, conv_b, bn_gamma, bn_beta))
    max_err = float(jnp.max(jnp.abs(out - ref)))
    assert max_err < 2e-2, f"max abs error vs reference: {max_err}"

    print("KERNEL_OK")
</pallas_src>

<mosaic_0001>
module attributes {stable_mosaic.version = 11 : i64} {
  func.func @_apply_kernel(%arg0: i32, %arg1: memref<1x328x8xf32, #tpu.memory_space<vmem>>, %arg2: memref<9x8x128xf32, #tpu.memory_space<vmem>>, %arg3: memref<1x128xf32, #tpu.memory_space<vmem>>, %arg4: memref<1x128xf32, #tpu.memory_space<vmem>>, %arg5: memref<1x288x128xf32, #tpu.memory_space<vmem>>, %arg6: memref<288x128xf32, #tpu.memory_space<vmem>>) attributes {dimension_semantics = [#tpu.dimension_semantics<parallel>], iteration_bounds = array<i64: 2>, scalar_prefetch = 0 : i64, scratch_operands = 1 : i64, tpu.core_type = #tpu.core_type<tc>, window_params = [{transform_indices = @transform_0, window_bounds = array<i64: 1, 328, 8>}, {pipeline_mode = #tpu.pipeline_mode<synchronous>, transform_indices = @transform_1, window_bounds = array<i64: 9, 8, 128>}, {pipeline_mode = #tpu.pipeline_mode<synchronous>, transform_indices = @transform_2, window_bounds = array<i64: 1, 128>}, {pipeline_mode = #tpu.pipeline_mode<synchronous>, transform_indices = @transform_3, window_bounds = array<i64: 1, 128>}, {transform_indices = @transform_4, window_bounds = array<i64: 1, 288, 128>}]} {
    %c0 = arith.constant 0 : index
    %c0_0 = arith.constant 0 : index
    %c0_1 = arith.constant 0 : index
    %0 = vector.load %arg1[%c0, %c0_0, %c0_1] : memref<1x328x8xf32, #tpu.memory_space<vmem>>, vector<1x288x8xf32>
    %1 = vector.shape_cast %0 : vector<1x288x8xf32> to vector<288x8xf32>
    %c0_2 = arith.constant 0 : index
    %c0_3 = arith.constant 0 : index
    %c0_4 = arith.constant 0 : index
    %2 = vector.load %arg2[%c0_2, %c0_3, %c0_4] : memref<9x8x128xf32, #tpu.memory_space<vmem>>, vector<1x8x128xf32>
    %3 = vector.shape_cast %2 : vector<1x8x128xf32> to vector<8x128xf32>
    %cst = arith.constant dense<0.000000e+00> : vector<288x128xf32>
    %4 = tpu.matmul %1, %3, %cst {dimension_numbers = #tpu.dot_dimension_numbers<[1], [0], [0], [1], [0, 0, 1, 1], [], []>} : vector<288x8xf32>, vector<8x128xf32>, vector<288x128xf32> -> vector<288x128xf32>
    %c0_5 = arith.constant 0 : index
    %c0_6 = arith.constant 0 : index
    %5 = vector.load %arg6[%c0_5, %c0_6] : memref<288x128xf32, #tpu.memory_space<vmem>>, vector<288x128xf32>
    tpu.vector_store %arg6[%c0_5, %c0_6], %4 {strides = array<i32>} : memref<288x128xf32, #tpu.memory_space<vmem>>, vector<288x128xf32>,
    %c0_7 = arith.constant 0 : index
    %c1 = arith.constant 1 : index
    %c0_8 = arith.constant 0 : index
    %6 = vector.load %arg1[%c0_7, %c1, %c0_8] : memref<1x328x8xf32, #tpu.memory_space<vmem>>, vector<1x288x8xf32>
    %7 = vector.shape_cast %6 : vector<1x288x8xf32> to vector<288x8xf32>
    %c1_9 = arith.constant 1 : index
    %c0_10 = arith.constant 0 : index
    %c0_11 = arith.constant 0 : index
    %8 = vector.load %arg2[%c1_9, %c0_10, %c0_11] : memref<9x8x128xf32, #tpu.memory_space<vmem>>, vector<1x8x128xf32>
    %9 = vector.shape_cast %8 : vector<1x8x128xf32> to vector<8x128xf32>
    %cst_12 = arith.constant dense<0.000000e+00> : vector<288x128xf32>
    %10 = tpu.matmul %7, %9, %cst_12 {dimension_numbers = #tpu.dot_dimension_numbers<[1], [0], [0], [1], [0, 0, 1, 1], [], []>} : vector<288x8xf32>, vector<8x128xf32>, vector<288x128xf32> -> vector<288x128xf32>
    %c0_13 = arith.constant 0 : index
    %c0_14 = arith.constant 0 : index
    %11 = vector.load %arg6[%c0_13, %c0_14] : memref<288x128xf32, #tpu.memory_space<vmem>>, vector<288x128xf32>
    %12 = arith.addf %11, %10 : vector<288x128xf32>
    %c0_15 = arith.constant 0 : index
    %c0_16 = arith.constant 0 : index
    %13 = vector.load %arg6[%c0_15, %c0_16] : memref<288x128xf32, #tpu.memory_space<vmem>>, vector<288x128xf32>
    tpu.vector_store %arg6[%c0_15, %c0_16], %12 {strides = array<i32>} : memref<288x128xf32, #tpu.memory_space<vmem>>, vector<288x128xf32>,
    %c0_17 = arith.constant 0 : index
    %c2 = arith.constant 2 : index
    %c0_18 = arith.constant 0 : index
    %14 = vector.load %arg1[%c0_17, %c2, %c0_18] : memref<1x328x8xf32, #tpu.memory_space<vmem>>, vector<1x288x8xf32>
    %15 = vector.shape_cast %14 : vector<1x288x8xf32> to vector<288x8xf32>
    %c2_19 = arith.constant 2 : index
    %c0_20 = arith.constant 0 : index
    %c0_21 = arith.constant 0 : index
    %16 = vector.load %arg2[%c2_19, %c0_20, %c0_21] : memref<9x8x128xf32, #tpu.memory_space<vmem>>, vector<1x8x128xf32>
    %17 = vector.shape_cast %16 : vector<1x8x128xf32> to vector<8x128xf32>
    %cst_22 = arith.constant dense<0.000000e+00> : vector<288x128xf32>
    %18 = tpu.matmul %15, %17, %cst_22 {dimension_numbers = #tpu.dot_dimension_numbers<[1], [0], [0], [1], [0, 0, 1, 1], [], []>} : vector<288x8xf32>, vector<8x128xf32>, vector<288x128xf32> -> vector<288x128xf32>
    %c0_23 = arith.constant 0 : index
    %c0_24 = arith.constant 0 : index
    %19 = vector.load %arg6[%c0_23, %c0_24] : memref<288x128xf32, #tpu.memory_space<vmem>>, vector<288x128xf32>
    %20 = arith.addf %19, %18 : vector<288x128xf32>
    %c0_25 = arith.constant 0 : index
    %c0_26 = arith.constant 0 : index
    %21 = vector.load %arg6[%c0_25, %c0_26] : memref<288x128xf32, #tpu.memory_space<vmem>>, vector<288x128xf32>
    tpu.vector_store %arg6[%c0_25, %c0_26], %20 {strides = array<i32>} : memref<288x128xf32, #tpu.memory_space<vmem>>, vector<288x128xf32>,
    %c0_27 = arith.constant 0 : index
    %c18 = arith.constant 18 : index
    %c0_28 = arith.constant 0 : index
    %22 = vector.load %arg1[%c0_27, %c18, %c0_28] : memref<1x328x8xf32, #tpu.memory_space<vmem>>, vector<1x288x8xf32>
    %23 = vector.shape_cast %22 : vector<1x288x8xf32> to vector<288x8xf32>
    %c3 = arith.constant 3 : index
    %c0_29 = arith.constant 0 : index
    %c0_30 = arith.constant 0 : index
    %24 = vector.load %arg2[%c3, %c0_29, %c0_30] : memref<9x8x128xf32, #tpu.memory_space<vmem>>, vector<1x8x128xf32>
    %25 = vector.shape_cast %24 : vector<1x8x128xf32> to vector<8x128xf32>
    %cst_31 = arith.constant dense<0.000000e+00> : vector<288x128xf32>
    %26 = tpu.matmul %23, %25, %cst_31 {dimension_numbers = #tpu.dot_dimension_numbers<[1], [0], [0], [1], [0, 0, 1, 1], [], []>} : vector<288x8xf32>, vector<8x128xf32>, vector<288x128xf32> -> vector<288x128xf32>
    %c0_32 = arith.constant 0 : index
    %c0_33 = arith.constant 0 : index
    %27 = vector.load %arg6[%c0_32, %c0_33] : memref<288x128xf32, #tpu.memory_space<vmem>>, vector<288x128xf32>
    %28 = arith.addf %27, %26 : vector<288x128xf32>
    %c0_34 = arith.constant 0 : index
    %c0_35 = arith.constant 0 : index
    %29 = vector.load %arg6[%c0_34, %c0_35] : memref<288x128xf32, #tpu.memory_space<vmem>>, vector<288x128xf32>
    tpu.vector_store %arg6[%c0_34, %c0_35], %28 {strides = array<i32>} : memref<288x128xf32, #tpu.memory_space<vmem>>, vector<288x128xf32>,
    %c0_36 = arith.constant 0 : index
    %c19 = arith.constant 19 : index
    %c0_37 = arith.constant 0 : index
    %30 = vector.load %arg1[%c0_36, %c19, %c0_37] : memref<1x328x8xf32, #tpu.memory_space<vmem>>, vector<1x288x8xf32>
    %31 = vector.shape_cast %30 : vector<1x288x8xf32> to vector<288x8xf32>
    %c4 = arith.constant 4 : index
    %c0_38 = arith.constant 0 : index
    %c0_39 = arith.constant 0 : index
    %32 = vector.load %arg2[%c4, %c0_38, %c0_39] : memref<9x8x128xf32, #tpu.memory_space<vmem>>, vector<1x8x128xf32>
    %33 = vector.shape_cast %32 : vector<1x8x128xf32> to vector<8x128xf32>
    %cst_40 = arith.constant dense<0.000000e+00> : vector<288x128xf32>
    %34 = tpu.matmul %31, %33, %cst_40 {dimension_numbers = #tpu.dot_dimension_numbers<[1], [0], [0], [1], [0, 0, 1, 1], [], []>} : vector<288x8xf32>, vector<8x128xf32>, vector<288x128xf32> -> vector<288x128xf32>
    %c0_41 = arith.constant 0 : index
    %c0_42 = arith.constant 0 : index
    %35 = vector.load %arg6[%c0_41, %c0_42] : memref<288x128xf32, #tpu.memory_space<vmem>>, vector<288x128xf32>
    %36 = arith.addf %35, %34 : vector<288x128xf32>
    %c0_43 = arith.constant 0 : index
    %c0_44 = arith.constant 0 : index
    %37 = vector.load %arg6[%c0_43, %c0_44] : memref<288x128xf32, #tpu.memory_space<vmem>>, vector<288x128xf32>
    tpu.vector_store %arg6[%c0_43, %c0_44], %36 {strides = array<i32>} : memref<288x128xf32, #tpu.memory_space<vmem>>, vector<288x128xf32>,
    %c0_45 = arith.constant 0 : index
    %c20 = arith.constant 20 : index
    %c0_46 = arith.constant 0 : index
    %38 = vector.load %arg1[%c0_45, %c20, %c0_46] : memref<1x328x8xf32, #tpu.memory_space<vmem>>, vector<1x288x8xf32>
    %39 = vector.shape_cast %38 : vector<1x288x8xf32> to vector<288x8xf32>
    %c5 = arith.constant 5 : index
    %c0_47 = arith.constant 0 : index
    %c0_48 = arith.constant 0 : index
    %40 = vector.load %arg2[%c5, %c0_47, %c0_48] : memref<9x8x128xf32, #tpu.memory_space<vmem>>, vector<1x8x128xf32>
    %41 = vector.shape_cast %40 : vector<1x8x128xf32> to vector<8x128xf32>
    %cst_49 = arith.constant dense<0.000000e+00> : vector<288x128xf32>
    %42 = tpu.matmul %39, %41, %cst_49 {dimension_numbers = #tpu.dot_dimension_numbers<[1], [0], [0], [1], [0, 0, 1, 1], [], []>} : vector<288x8xf32>, vector<8x128xf32>, vector<288x128xf32> -> vector<288x128xf32>
    %c0_50 = arith.constant 0 : index
    %c0_51 = arith.constant 0 : index
    %43 = vector.load %arg6[%c0_50, %c0_51] : memref<288x128xf32, #tpu.memory_space<vmem>>, vector<288x128xf32>
    %44 = arith.addf %43, %42 : vector<288x128xf32>
    %c0_52 = arith.constant 0 : index
    %c0_53 = arith.constant 0 : index
    %45 = vector.load %arg6[%c0_52, %c0_53] : memref<288x128xf32, #tpu.memory_space<vmem>>, vector<288x128xf32>
    tpu.vector_store %arg6[%c0_52, %c0_53], %44 {strides = array<i32>} : memref<288x128xf32, #tpu.memory_space<vmem>>, vector<288x128xf32>,
    %c0_54 = arith.constant 0 : index
    %c36 = arith.constant 36 : index
    %c0_55 = arith.constant 0 : index
    %46 = vector.load %arg1[%c0_54, %c36, %c0_55] : memref<1x328x8xf32, #tpu.memory_space<vmem>>, vector<1x288x8xf32>
    %47 = vector.shape_cast %46 : vector<1x288x8xf32> to vector<288x8xf32>
    %c6 = arith.constant 6 : index
    %c0_56 = arith.constant 0 : index
    %c0_57 = arith.constant 0 : index
    %48 = vector.load %arg2[%c6, %c0_56, %c0_57] : memref<9x8x128xf32, #tpu.memory_space<vmem>>, vector<1x8x128xf32>
    %49 = vector.shape_cast %48 : vector<1x8x128xf32> to vector<8x128xf32>
    %cst_58 = arith.constant dense<0.000000e+00> : vector<288x128xf32>
    %50 = tpu.matmul %47, %49, %cst_58 {dimension_numbers = #tpu.dot_dimension_numbers<[1], [0], [0], [1], [0, 0, 1, 1], [], []>} : vector<288x8xf32>, vector<8x128xf32>, vector<288x128xf32> -> vector<288x128xf32>
    %c0_59 = arith.constant 0 : index
    %c0_60 = arith.constant 0 : index
    %51 = vector.load %arg6[%c0_59, %c0_60] : memref<288x128xf32, #tpu.memory_space<vmem>>, vector<288x128xf32>
    %52 = arith.addf %51, %50 : vector<288x128xf32>
    %c0_61 = arith.constant 0 : index
    %c0_62 = arith.constant 0 : index
    %53 = vector.load %arg6[%c0_61, %c0_62] : memref<288x128xf32, #tpu.memory_space<vmem>>, vector<288x128xf32>
    tpu.vector_store %arg6[%c0_61, %c0_62], %52 {strides = array<i32>} : memref<288x128xf32, #tpu.memory_space<vmem>>, vector<288x128xf32>,
    %c0_63 = arith.constant 0 : index
    %c37 = arith.constant 37 : index
    %c0_64 = arith.constant 0 : index
    %54 = vector.load %arg1[%c0_63, %c37, %c0_64] : memref<1x328x8xf32, #tpu.memory_space<vmem>>, vector<1x288x8xf32>
    %55 = vector.shape_cast %54 : vector<1x288x8xf32> to vector<288x8xf32>
    %c7 = arith.constant 7 : index
    %c0_65 = arith.constant 0 : index
    %c0_66 = arith.constant 0 : index
    %56 = vector.load %arg2[%c7, %c0_65, %c0_66] : memref<9x8x128xf32, #tpu.memory_space<vmem>>, vector<1x8x128xf32>
    %57 = vector.shape_cast %56 : vector<1x8x128xf32> to vector<8x128xf32>
    %cst_67 = arith.constant dense<0.000000e+00> : vector<288x128xf32>
    %58 = tpu.matmul %55, %57, %cst_67 {dimension_numbers = #tpu.dot_dimension_numbers<[1], [0], [0], [1], [0, 0, 1, 1], [], []>} : vector<288x8xf32>, vector<8x128xf32>, vector<288x128xf32> -> vector<288x128xf32>
    %c0_68 = arith.constant 0 : index
    %c0_69 = arith.constant 0 : index
    %59 = vector.load %arg6[%c0_68, %c0_69] : memref<288x128xf32, #tpu.memory_space<vmem>>, vector<288x128xf32>
    %60 = arith.addf %59, %58 : vector<288x128xf32>
    %c0_70 = arith.constant 0 : index
    %c0_71 = arith.constant 0 : index
    %61 = vector.load %arg6[%c0_70, %c0_71] : memref<288x128xf32, #tpu.memory_space<vmem>>, vector<288x128xf32>
    tpu.vector_store %arg6[%c0_70, %c0_71], %60 {strides = array<i32>} : memref<288x128xf32, #tpu.memory_space<vmem>>, vector<288x128xf32>,
    %c0_72 = arith.constant 0 : index
    %c38 = arith.constant 38 : index
    %c0_73 = arith.constant 0 : index
    %62 = vector.load %arg1[%c0_72, %c38, %c0_73] : memref<1x328x8xf32, #tpu.memory_space<vmem>>, vector<1x288x8xf32>
    %63 = vector.shape_cast %62 : vector<1x288x8xf32> to vector<288x8xf32>
    %c8 = arith.constant 8 : index
    %c0_74 = arith.constant 0 : index
    %c0_75 = arith.constant 0 : index
    %64 = vector.load %arg2[%c8, %c0_74, %c0_75] : memref<9x8x128xf32, #tpu.memory_space<vmem>>, vector<1x8x128xf32>
    %65 = vector.shape_cast %64 : vector<1x8x128xf32> to vector<8x128xf32>
    %cst_76 = arith.constant dense<0.000000e+00> : vector<288x128xf32>
    %66 = tpu.matmul %63, %65, %cst_76 {dimension_numbers = #tpu.dot_dimension_numbers<[1], [0], [0], [1], [0, 0, 1, 1], [], []>} : vector<288x8xf32>, vector<8x128xf32>, vector<288x128xf32> -> vector<288x128xf32>
    %c0_77 = arith.constant 0 : index
    %c0_78 = arith.constant 0 : index
    %67 = vector.load %arg6[%c0_77, %c0_78] : memref<288x128xf32, #tpu.memory_space<vmem>>, vector<288x128xf32>
    %68 = arith.addf %67, %66 : vector<288x128xf32>
    %c0_79 = arith.constant 0 : index
    %c0_80 = arith.constant 0 : index
    %69 = vector.load %arg6[%c0_79, %c0_80] : memref<288x128xf32, #tpu.memory_space<vmem>>, vector<288x128xf32>
    tpu.vector_store %arg6[%c0_79, %c0_80], %68 {strides = array<i32>} : memref<288x128xf32, #tpu.memory_space<vmem>>, vector<288x128xf32>,
    %c0_81 = arith.constant 0 : index
    %c0_82 = arith.constant 0 : index
    %70 = vector.load %arg6[%c0_81, %c0_82] : memref<288x128xf32, #tpu.memory_space<vmem>>, vector<288x128xf32>
    %c0_83 = arith.constant 0 : index
    %c0_84 = arith.constant 0 : index
    %71 = vector.load %arg3[%c0_83, %c0_84] : memref<1x128xf32, #tpu.memory_space<vmem>>, vector<1x128xf32>
    %72 = vector.broadcast %71 : vector<1x128xf32> to vector<288x128xf32>
    %73 = arith.mulf %70, %72 : vector<288x128xf32>
    %c0_85 = arith.constant 0 : index
    %c0_86 = arith.constant 0 : index
    %74 = vector.load %arg4[%c0_85, %c0_86] : memref<1x128xf32, #tpu.memory_space<vmem>>, vector<1x128xf32>
    %75 = vector.broadcast %74 : vector<1x128xf32> to vector<288x128xf32>
    %76 = arith.addf %73, %75 : vector<288x128xf32>
    %cst_87 = arith.constant 0.00999999977 : f32
    %77 = vector.broadcast %cst_87 : f32 to vector<288x128xf32>
    %78 = arith.mulf %77, %76 : vector<288x128xf32>
    %79 = arith.maximumf %76, %78 : vector<288x128xf32>
    %c0_88 = arith.constant 0 : index
    %c0_89 = arith.constant 0 : index
    %c0_90 = arith.constant 0 : index
    %80 = vector.load %arg5[%c0_88, %c0_89, %c0_90] : memref<1x288x128xf32, #tpu.memory_space<vmem>>, vector<1x288x128xf32>
    %81 = vector.shape_cast %80 : vector<1x288x128xf32> to vector<288x128xf32>
    %82 = vector.shape_cast %79 : vector<288x128xf32> to vector<1x288x128xf32>
    tpu.vector_store %arg5[%c0_88, %c0_89, %c0_90], %82 {strides = array<i32>} : memref<1x288x128xf32, #tpu.memory_space<vmem>>, vector<1x288x128xf32>,
    return
  }
  func.func @transform_0(%arg0: i32) -> (i32, i32, i32) {
    %c0_i32 = arith.constant 0 : i32
    %c0_i32_0 = arith.constant 0 : i32
    %c0_i32_1 = arith.constant 0 : i32
    return %arg0, %c0_i32, %c0_i32_0 : i32, i32, i32
  }
  func.func @transform_1(%arg0: i32) -> (i32, i32, i32) {
    %c0_i32 = arith.constant 0 : i32
    %c0_i32_0 = arith.constant 0 : i32
    %c0_i32_1 = arith.constant 0 : i32
    %c0_i32_2 = arith.constant 0 : i32
    return %c0_i32, %c0_i32_0, %c0_i32_1 : i32, i32, i32
  }
  func.func @transform_2(%arg0: i32) -> (i32, i32) {
    %c0_i32 = arith.constant 0 : i32
    %c0_i32_0 = arith.constant 0 : i32
    %c0_i32_1 = arith.constant 0 : i32
    return %c0_i32, %c0_i32_0 : i32, i32
  }
  func.func @transform_3(%arg0: i32) -> (i32, i32) {
    %c0_i32 = arith.constant 0 : i32
    %c0_i32_0 = arith.constant 0 : i32
    %c0_i32_1 = arith.constant 0 : i32
    return %c0_i32, %c0_i32_0 : i32, i32
  }
  func.func @transform_4(%arg0: i32) -> (i32, i32, i32) {
    %c0_i32 = arith.constant 0 : i32
    %c0_i32_0 = arith.constant 0 : i32
    %c0_i32_1 = arith.constant 0 : i32
    return %arg0, %c0_i32, %c0_i32_0 : i32, i32, i32
  }
}

module attributes {stable_mosaic.version = 11 : i64} {
  func.func @_stats_kernel(%arg0: i32, %arg1: memref<1x328x8xf32, #tpu.memory_space<vmem>>, %arg2: memref<9x8x128xf32, #tpu.memory_space<vmem>>, %arg3: memref<1x288xf32, #tpu.memory_space<vmem>>, %arg4: memref<1x128xf32, #tpu.memory_space<vmem>>, %arg5: memref<1x128xf32, #tpu.memory_space<vmem>>, %arg6: memref<288x128xf32, #tpu.memory_space<vmem>>) attributes {dimension_semantics = [#tpu.dimension_semantics<arbitrary>], iteration_bounds = array<i64: 2>, scalar_prefetch = 0 : i64, scratch_operands = 1 : i64, tpu.core_type = #tpu.core_type<tc>, window_params = [{transform_indices = @transform_0, window_bounds = array<i64: 1, 328, 8>}, {pipeline_mode = #tpu.pipeline_mode<synchronous>, transform_indices = @transform_1, window_bounds = array<i64: 9, 8, 128>}, {pipeline_mode = #tpu.pipeline_mode<synchronous>, transform_indices = @transform_2, window_bounds = array<i64: 1, 288>}, {pipeline_mode = #tpu.pipeline_mode<synchronous>, transform_indices = @transform_3, window_bounds = array<i64: 1, 128>}, {pipeline_mode = #tpu.pipeline_mode<synchronous>, transform_indices = @transform_4, window_bounds = array<i64: 1, 128>}]} {
    %c0_i32 = arith.constant 0 : i32
    %0 = arith.cmpi eq, %arg0, %c0_i32 : i32
    %1 = arith.extui %0 : i1 to i32
    %c0_i32_0 = arith.constant 0 : i32
    %2 = arith.cmpi ne, %1, %c0_i32_0 : i32
    scf.if %2 {
      %cst_96 = arith.constant 0.000000e+00 : f32
      %84 = vector.broadcast %cst_96 : f32 to vector<1x128xf32>
      %c0_97 = arith.constant 0 : index
      %c0_98 = arith.constant 0 : index
      %85 = vector.load %arg4[%c0_97, %c0_98] : memref<1x128xf32, #tpu.memory_space<vmem>>, vector<1x128xf32>
      tpu.vector_store %arg4[%c0_97, %c0_98], %84 {strides = array<i32>} : memref<1x128xf32, #tpu.memory_space<vmem>>, vector<1x128xf32>,
      %cst_99 = arith.constant 0.000000e+00 : f32
      %86 = vector.broadcast %cst_99 : f32 to vector<1x128xf32>
      %c0_100 = arith.constant 0 : index
      %c0_101 = arith.constant 0 : index
      %87 = vector.load %arg5[%c0_100, %c0_101] : memref<1x128xf32, #tpu.memory_space<vmem>>, vector<1x128xf32>
      tpu.vector_store %arg5[%c0_100, %c0_101], %86 {strides = array<i32>} : memref<1x128xf32, #tpu.memory_space<vmem>>, vector<1x128xf32>,
    } else {
    }
    %c0 = arith.constant 0 : index
    %c0_1 = arith.constant 0 : index
    %c0_2 = arith.constant 0 : index
    %3 = vector.load %arg1[%c0, %c0_1, %c0_2] : memref<1x328x8xf32, #tpu.memory_space<vmem>>, vector<1x288x8xf32>
    %4 = vector.shape_cast %3 : vector<1x288x8xf32> to vector<288x8xf32>
    %c0_3 = arith.constant 0 : index
    %c0_4 = arith.constant 0 : index
    %c0_5 = arith.constant 0 : index
    %5 = vector.load %arg2[%c0_3, %c0_4, %c0_5] : memref<9x8x128xf32, #tpu.memory_space<vmem>>, vector<1x8x128xf32>
    %6 = vector.shape_cast %5 : vector<1x8x128xf32> to vector<8x128xf32>
    %cst = arith.constant dense<0.000000e+00> : vector<288x128xf32>
    %7 = tpu.matmul %4, %6, %cst {dimension_numbers = #tpu.dot_dimension_numbers<[1], [0], [0], [1], [0, 0, 1, 1], [], []>} : vector<288x8xf32>, vector<8x128xf32>, vector<288x128xf32> -> vector<288x128xf32>
    %c0_6 = arith.constant 0 : index
    %c0_7 = arith.constant 0 : index
    %8 = vector.load %arg6[%c0_6, %c0_7] : memref<288x128xf32, #tpu.memory_space<vmem>>, vector<288x128xf32>
    tpu.vector_store %arg6[%c0_6, %c0_7], %7 {strides = array<i32>} : memref<288x128xf32, #tpu.memory_space<vmem>>, vector<288x128xf32>,
    %c0_8 = arith.constant 0 : index
    %c1 = arith.constant 1 : index
    %c0_9 = arith.constant 0 : index
    %9 = vector.load %arg1[%c0_8, %c1, %c0_9] : memref<1x328x8xf32, #tpu.memory_space<vmem>>, vector<1x288x8xf32>
    %10 = vector.shape_cast %9 : vector<1x288x8xf32> to vector<288x8xf32>
    %c1_10 = arith.constant 1 : index
    %c0_11 = arith.constant 0 : index
    %c0_12 = arith.constant 0 : index
    %11 = vector.load %arg2[%c1_10, %c0_11, %c0_12] : memref<9x8x128xf32, #tpu.memory_space<vmem>>, vector<1x8x128xf32>
    %12 = vector.shape_cast %11 : vector<1x8x128xf32> to vector<8x128xf32>
    %cst_13 = arith.constant dense<0.000000e+00> : vector<288x128xf32>
    %13 = tpu.matmul %10, %12, %cst_13 {dimension_numbers = #tpu.dot_dimension_numbers<[1], [0], [0], [1], [0, 0, 1, 1], [], []>} : vector<288x8xf32>, vector<8x128xf32>, vector<288x128xf32> -> vector<288x128xf32>
    %c0_14 = arith.constant 0 : index
    %c0_15 = arith.constant 0 : index
    %14 = vector.load %arg6[%c0_14, %c0_15] : memref<288x128xf32, #tpu.memory_space<vmem>>, vector<288x128xf32>
    %15 = arith.addf %14, %13 : vector<288x128xf32>
    %c0_16 = arith.constant 0 : index
    %c0_17 = arith.constant 0 : index
    %16 = vector.load %arg6[%c0_16, %c0_17] : memref<288x128xf32, #tpu.memory_space<vmem>>, vector<288x128xf32>
    tpu.vector_store %arg6[%c0_16, %c0_17], %15 {strides = array<i32>} : memref<288x128xf32, #tpu.memory_space<vmem>>, vector<288x128xf32>,
    %c0_18 = arith.constant 0 : index
    %c2 = arith.constant 2 : index
    %c0_19 = arith.constant 0 : index
    %17 = vector.load %arg1[%c0_18, %c2, %c0_19] : memref<1x328x8xf32, #tpu.memory_space<vmem>>, vector<1x288x8xf32>
    %18 = vector.shape_cast %17 : vector<1x288x8xf32> to vector<288x8xf32>
    %c2_20 = arith.constant 2 : index
    %c0_21 = arith.constant 0 : index
    %c0_22 = arith.constant 0 : index
    %19 = vector.load %arg2[%c2_20, %c0_21, %c0_22] : memref<9x8x128xf32, #tpu.memory_space<vmem>>, vector<1x8x128xf32>
    %20 = vector.shape_cast %19 : vector<1x8x128xf32> to vector<8x128xf32>
    %cst_23 = arith.constant dense<0.000000e+00> : vector<288x128xf32>
    %21 = tpu.matmul %18, %20, %cst_23 {dimension_numbers = #tpu.dot_dimension_numbers<[1], [0], [0], [1], [0, 0, 1, 1], [], []>} : vector<288x8xf32>, vector<8x128xf32>, vector<288x128xf32> -> vector<288x128xf32>
    %c0_24 = arith.constant 0 : index
    %c0_25 = arith.constant 0 : index
    %22 = vector.load %arg6[%c0_24, %c0_25] : memref<288x128xf32, #tpu.memory_space<vmem>>, vector<288x128xf32>
    %23 = arith.addf %22, %21 : vector<288x128xf32>
    %c0_26 = arith.constant 0 : index
    %c0_27 = arith.constant 0 : index
    %24 = vector.load %arg6[%c0_26, %c0_27] : memref<288x128xf32, #tpu.memory_space<vmem>>, vector<288x128xf32>
    tpu.vector_store %arg6[%c0_26, %c0_27], %23 {strides = array<i32>} : memref<288x128xf32, #tpu.memory_space<vmem>>, vector<288x128xf32>,
    %c0_28 = arith.constant 0 : index
    %c18 = arith.constant 18 : index
    %c0_29 = arith.constant 0 : index
    %25 = vector.load %arg1[%c0_28, %c18, %c0_29] : memref<1x328x8xf32, #tpu.memory_space<vmem>>, vector<1x288x8xf32>
    %26 = vector.shape_cast %25 : vector<1x288x8xf32> to vector<288x8xf32>
    %c3 = arith.constant 3 : index
    %c0_30 = arith.constant 0 : index
    %c0_31 = arith.constant 0 : index
    %27 = vector.load %arg2[%c3, %c0_30, %c0_31] : memref<9x8x128xf32, #tpu.memory_space<vmem>>, vector<1x8x128xf32>
    %28 = vector.shape_cast %27 : vector<1x8x128xf32> to vector<8x128xf32>
    %cst_32 = arith.constant dense<0.000000e+00> : vector<288x128xf32>
    %29 = tpu.matmul %26, %28, %cst_32 {dimension_numbers = #tpu.dot_dimension_numbers<[1], [0], [0], [1], [0, 0, 1, 1], [], []>} : vector<288x8xf32>, vector<8x128xf32>, vector<288x128xf32> -> vector<288x128xf32>
    %c0_33 = arith.constant 0 : index
    %c0_34 = arith.constant 0 : index
    %30 = vector.load %arg6[%c0_33, %c0_34] : memref<288x128xf32, #tpu.memory_space<vmem>>, vector<288x128xf32>
    %31 = arith.addf %30, %29 : vector<288x128xf32>
    %c0_35 = arith.constant 0 : index
    %c0_36 = arith.constant 0 : index
    %32 = vector.load %arg6[%c0_35, %c0_36] : memref<288x128xf32, #tpu.memory_space<vmem>>, vector<288x128xf32>
    tpu.vector_store %arg6[%c0_35, %c0_36], %31 {strides = array<i32>} : memref<288x128xf32, #tpu.memory_space<vmem>>, vector<288x128xf32>,
    %c0_37 = arith.constant 0 : index
    %c19 = arith.constant 19 : index
    %c0_38 = arith.constant 0 : index
    %33 = vector.load %arg1[%c0_37, %c19, %c0_38] : memref<1x328x8xf32, #tpu.memory_space<vmem>>, vector<1x288x8xf32>
    %34 = vector.shape_cast %33 : vector<1x288x8xf32> to vector<288x8xf32>
    %c4 = arith.constant 4 : index
    %c0_39 = arith.constant 0 : index
    %c0_40 = arith.constant 0 : index
    %35 = vector.load %arg2[%c4, %c0_39, %c0_40] : memref<9x8x128xf32, #tpu.memory_space<vmem>>, vector<1x8x128xf32>
    %36 = vector.shape_cast %35 : vector<1x8x128xf32> to vector<8x128xf32>
    %cst_41 = arith.constant dense<0.000000e+00> : vector<288x128xf32>
    %37 = tpu.matmul %34, %36, %cst_41 {dimension_numbers = #tpu.dot_dimension_numbers<[1], [0], [0], [1], [0, 0, 1, 1], [], []>} : vector<288x8xf32>, vector<8x128xf32>, vector<288x128xf32> -> vector<288x128xf32>
    %c0_42 = arith.constant 0 : index
    %c0_43 = arith.constant 0 : index
    %38 = vector.load %arg6[%c0_42, %c0_43] : memref<288x128xf32, #tpu.memory_space<vmem>>, vector<288x128xf32>
    %39 = arith.addf %38, %37 : vector<288x128xf32>
    %c0_44 = arith.constant 0 : index
    %c0_45 = arith.constant 0 : index
    %40 = vector.load %arg6[%c0_44, %c0_45] : memref<288x128xf32, #tpu.memory_space<vmem>>, vector<288x128xf32>
    tpu.vector_store %arg6[%c0_44, %c0_45], %39 {strides = array<i32>} : memref<288x128xf32, #tpu.memory_space<vmem>>, vector<288x128xf32>,
    %c0_46 = arith.constant 0 : index
    %c20 = arith.constant 20 : index
    %c0_47 = arith.constant 0 : index
    %41 = vector.load %arg1[%c0_46, %c20, %c0_47] : memref<1x328x8xf32, #tpu.memory_space<vmem>>, vector<1x288x8xf32>
    %42 = vector.shape_cast %41 : vector<1x288x8xf32> to vector<288x8xf32>
    %c5 = arith.constant 5 : index
    %c0_48 = arith.constant 0 : index
    %c0_49 = arith.constant 0 : index
    %43 = vector.load %arg2[%c5, %c0_48, %c0_49] : memref<9x8x128xf32, #tpu.memory_space<vmem>>, vector<1x8x128xf32>
    %44 = vector.shape_cast %43 : vector<1x8x128xf32> to vector<8x128xf32>
    %cst_50 = arith.constant dense<0.000000e+00> : vector<288x128xf32>
    %45 = tpu.matmul %42, %44, %cst_50 {dimension_numbers = #tpu.dot_dimension_numbers<[1], [0], [0], [1], [0, 0, 1, 1], [], []>} : vector<288x8xf32>, vector<8x128xf32>, vector<288x128xf32> -> vector<288x128xf32>
    %c0_51 = arith.constant 0 : index
    %c0_52 = arith.constant 0 : index
    %46 = vector.load %arg6[%c0_51, %c0_52] : memref<288x128xf32, #tpu.memory_space<vmem>>, vector<288x128xf32>
    %47 = arith.addf %46, %45 : vector<288x128xf32>
    %c0_53 = arith.constant 0 : index
    %c0_54 = arith.constant 0 : index
    %48 = vector.load %arg6[%c0_53, %c0_54] : memref<288x128xf32, #tpu.memory_space<vmem>>, vector<288x128xf32>
    tpu.vector_store %arg6[%c0_53, %c0_54], %47 {strides = array<i32>} : memref<288x128xf32, #tpu.memory_space<vmem>>, vector<288x128xf32>,
    %c0_55 = arith.constant 0 : index
    %c36 = arith.constant 36 : index
    %c0_56 = arith.constant 0 : index
    %49 = vector.load %arg1[%c0_55, %c36, %c0_56] : memref<1x328x8xf32, #tpu.memory_space<vmem>>, vector<1x288x8xf32>
    %50 = vector.shape_cast %49 : vector<1x288x8xf32> to vector<288x8xf32>
    %c6 = arith.constant 6 : index
    %c0_57 = arith.constant 0 : index
    %c0_58 = arith.constant 0 : index
    %51 = vector.load %arg2[%c6, %c0_57, %c0_58] : memref<9x8x128xf32, #tpu.memory_space<vmem>>, vector<1x8x128xf32>
    %52 = vector.shape_cast %51 : vector<1x8x128xf32> to vector<8x128xf32>
    %cst_59 = arith.constant dense<0.000000e+00> : vector<288x128xf32>
    %53 = tpu.matmul %50, %52, %cst_59 {dimension_numbers = #tpu.dot_dimension_numbers<[1], [0], [0], [1], [0, 0, 1, 1], [], []>} : vector<288x8xf32>, vector<8x128xf32>, vector<288x128xf32> -> vector<288x128xf32>
    %c0_60 = arith.constant 0 : index
    %c0_61 = arith.constant 0 : index
    %54 = vector.load %arg6[%c0_60, %c0_61] : memref<288x128xf32, #tpu.memory_space<vmem>>, vector<288x128xf32>
    %55 = arith.addf %54, %53 : vector<288x128xf32>
    %c0_62 = arith.constant 0 : index
    %c0_63 = arith.constant 0 : index
    %56 = vector.load %arg6[%c0_62, %c0_63] : memref<288x128xf32, #tpu.memory_space<vmem>>, vector<288x128xf32>
    tpu.vector_store %arg6[%c0_62, %c0_63], %55 {strides = array<i32>} : memref<288x128xf32, #tpu.memory_space<vmem>>, vector<288x128xf32>,
    %c0_64 = arith.constant 0 : index
    %c37 = arith.constant 37 : index
    %c0_65 = arith.constant 0 : index
    %57 = vector.load %arg1[%c0_64, %c37, %c0_65] : memref<1x328x8xf32, #tpu.memory_space<vmem>>, vector<1x288x8xf32>
    %58 = vector.shape_cast %57 : vector<1x288x8xf32> to vector<288x8xf32>
    %c7 = arith.constant 7 : index
    %c0_66 = arith.constant 0 : index
    %c0_67 = arith.constant 0 : index
    %59 = vector.load %arg2[%c7, %c0_66, %c0_67] : memref<9x8x128xf32, #tpu.memory_space<vmem>>, vector<1x8x128xf32>
    %60 = vector.shape_cast %59 : vector<1x8x128xf32> to vector<8x128xf32>
    %cst_68 = arith.constant dense<0.000000e+00> : vector<288x128xf32>
    %61 = tpu.matmul %58, %60, %cst_68 {dimension_numbers = #tpu.dot_dimension_numbers<[1], [0], [0], [1], [0, 0, 1, 1], [], []>} : vector<288x8xf32>, vector<8x128xf32>, vector<288x128xf32> -> vector<288x128xf32>
    %c0_69 = arith.constant 0 : index
    %c0_70 = arith.constant 0 : index
    %62 = vector.load %arg6[%c0_69, %c0_70] : memref<288x128xf32, #tpu.memory_space<vmem>>, vector<288x128xf32>
    %63 = arith.addf %62, %61 : vector<288x128xf32>
    %c0_71 = arith.constant 0 : index
    %c0_72 = arith.constant 0 : index
    %64 = vector.load %arg6[%c0_71, %c0_72] : memref<288x128xf32, #tpu.memory_space<vmem>>, vector<288x128xf32>
    tpu.vector_store %arg6[%c0_71, %c0_72], %63 {strides = array<i32>} : memref<288x128xf32, #tpu.memory_space<vmem>>, vector<288x128xf32>,
    %c0_73 = arith.constant 0 : index
    %c38 = arith.constant 38 : index
    %c0_74 = arith.constant 0 : index
    %65 = vector.load %arg1[%c0_73, %c38, %c0_74] : memref<1x328x8xf32, #tpu.memory_space<vmem>>, vector<1x288x8xf32>
    %66 = vector.shape_cast %65 : vector<1x288x8xf32> to vector<288x8xf32>
    %c8 = arith.constant 8 : index
    %c0_75 = arith.constant 0 : index
    %c0_76 = arith.constant 0 : index
    %67 = vector.load %arg2[%c8, %c0_75, %c0_76] : memref<9x8x128xf32, #tpu.memory_space<vmem>>, vector<1x8x128xf32>
    %68 = vector.shape_cast %67 : vector<1x8x128xf32> to vector<8x128xf32>
    %cst_77 = arith.constant dense<0.000000e+00> : vector<288x128xf32>
    %69 = tpu.matmul %66, %68, %cst_77 {dimension_numbers = #tpu.dot_dimension_numbers<[1], [0], [0], [1], [0, 0, 1, 1], [], []>} : vector<288x8xf32>, vector<8x128xf32>, vector<288x128xf32> -> vector<288x128xf32>
    %c0_78 = arith.constant 0 : index
    %c0_79 = arith.constant 0 : index
    %70 = vector.load %arg6[%c0_78, %c0_79] : memref<288x128xf32, #tpu.memory_space<vmem>>, vector<288x128xf32>
    %71 = arith.addf %70, %69 : vector<288x128xf32>
    %c0_80 = arith.constant 0 : index
    %c0_81 = arith.constant 0 : index
    %72 = vector.load %arg6[%c0_80, %c0_81] : memref<288x128xf32, #tpu.memory_space<vmem>>, vector<288x128xf32>
    tpu.vector_store %arg6[%c0_80, %c0_81], %71 {strides = array<i32>} : memref<288x128xf32, #tpu.memory_space<vmem>>, vector<288x128xf32>,
    %c0_82 = arith.constant 0 : index
    %c0_83 = arith.constant 0 : index
    %73 = vector.load %arg6[%c0_82, %c0_83] : memref<288x128xf32, #tpu.memory_space<vmem>>, vector<288x128xf32>
    %c0_84 = arith.constant 0 : index
    %c0_85 = arith.constant 0 : index
    %74 = vector.load %arg3[%c0_84, %c0_85] : memref<1x288xf32, #tpu.memory_space<vmem>>, vector<1x288xf32>
    %c0_86 = arith.constant 0 : index
    %c0_87 = arith.constant 0 : index
    %75 = vector.load %arg4[%c0_86, %c0_87] : memref<1x128xf32, #tpu.memory_space<vmem>>, vector<1x128xf32>
    %cst_88 = arith.constant dense<0.000000e+00> : vector<1x128xf32>
    %76 = tpu.matmul %74, %73, %cst_88 {dimension_numbers = #tpu.dot_dimension_numbers<[1], [0], [0], [1], [0, 0, 1, 1], [], []>} : vector<1x288xf32>, vector<288x128xf32>, vector<1x128xf32> -> vector<1x128xf32>
    %77 = arith.addf %75, %76 : vector<1x128xf32>
    %c0_89 = arith.constant 0 : index
    %c0_90 = arith.constant 0 : index
    %78 = vector.load %arg4[%c0_89, %c0_90] : memref<1x128xf32, #tpu.memory_space<vmem>>, vector<1x128xf32>
    tpu.vector_store %arg4[%c0_89, %c0_90], %77 {strides = array<i32>} : memref<1x128xf32, #tpu.memory_space<vmem>>, vector<1x128xf32>,
    %c0_91 = arith.constant 0 : index
    %c0_92 = arith.constant 0 : index
    %79 = vector.load %arg5[%c0_91, %c0_92] : memref<1x128xf32, #tpu.memory_space<vmem>>, vector<1x128xf32>
    %80 = arith.mulf %73, %73 : vector<288x128xf32>
    %cst_93 = arith.constant dense<0.000000e+00> : vector<1x128xf32>
    %81 = tpu.matmul %74, %80, %cst_93 {dimension_numbers = #tpu.dot_dimension_numbers<[1], [0], [0], [1], [0, 0, 1, 1], [], []>} : vector<1x288xf32>, vector<288x128xf32>, vector<1x128xf32> -> vector<1x128xf32>
    %82 = arith.addf %79, %81 : vector<1x128xf32>
    %c0_94 = arith.constant 0 : index
    %c0_95 = arith.constant 0 : index
    %83 = vector.load %arg5[%c0_94, %c0_95] : memref<1x128xf32, #tpu.memory_space<vmem>>, vector<1x128xf32>
    tpu.vector_store %arg5[%c0_94, %c0_95], %82 {strides = array<i32>} : memref<1x128xf32, #tpu.memory_space<vmem>>, vector<1x128xf32>,
    return
  }
  func.func @transform_0(%arg0: i32) -> (i32, i32, i32) {
    %c0_i32 = arith.constant 0 : i32
    %c0_i32_0 = arith.constant 0 : i32
    %c0_i32_1 = arith.constant 0 : i32
    return %arg0, %c0_i32, %c0_i32_0 : i32, i32, i32
  }
  func.func @transform_1(%arg0: i32) -> (i32, i32, i32) {
    %c0_i32 = arith.constant 0 : i32
    %c0_i32_0 = arith.constant 0 : i32
    %c0_i32_1 = arith.constant 0 : i32
    %c0_i32_2 = arith.constant 0 : i32
    return %c0_i32, %c0_i32_0, %c0_i32_1 : i32, i32, i32
  }
  func.func @transform_2(%arg0: i32) -> (i32, i32) {
    %c0_i32 = arith.constant 0 : i32
    %c0_i32_0 = arith.constant 0 : i32
    %c0_i32_1 = arith.constant 0 : i32
    return %c0_i32, %c0_i32_0 : i32, i32
  }
  func.func @transform_3(%arg0: i32) -> (i32, i32) {
    %c0_i32 = arith.constant 0 : i32
    %c0_i32_0 = arith.constant 0 : i32
    %c0_i32_1 = arith.constant 0 : i32
    return %c0_i32, %c0_i32_0 : i32, i32
  }
  func.func @transform_4(%arg0: i32) -> (i32, i32) {
    %c0_i32 = arith.constant 0 : i32
    %c0_i32_0 = arith.constant 0 : i32
    %c0_i32_1 = arith.constant 0 : i32
    return %c0_i32, %c0_i32_0 : i32, i32
  }
}

</mosaic_0001>

<bundles_post_ra>
// kernel: block_forward.2
= control target key start
LH: loop header
LB: loop body
LE: loop exit
PB: predicated region body
PF: predicated region fallthrough
CT: control target
= control target key end

     0   :  { %s6712_s15 = smov 0   ;;  %s7965_s0 = inlined_call_operand.vmem [shape: f32[2,328,8], index: 0, kind: input, shape index: {}]   ;;  %s7966_s1 = inlined_call_operand.vmem [shape: f32[9,8,128], index: 1, kind: input, shape index: {}]   ;;  %s7967_s2 = inlined_call_operand.vmem [shape: f32[1,288], index: 2, kind: input, shape index: {}]   ;;  %s7968_s3 = inlined_call_operand.vmem [shape: f32[1,128], index: 3, kind: output, shape index: {0}]   ;;  %s7969_s4 = inlined_call_operand.vmem [shape: f32[1,128], index: 4, kind: output, shape index: {1}]  }
   0x1 LB: > { %s5017_s16 = sadd.s32 4294967295, %s6681_s15   ;;  %p5020_p0 = scmp.ge.s32.totalorder %s6681_s15, 1  ;;  %s6681_s15 = sphi %s6712_s15, %s15_s15  }
   0x2   : > { %p155_p1 = scmp.lt.s32.totalorder %s6681_s15, 3 }
   0x4   : > { %p156_p2 = pnand %p5020_p0, %p155_p1 }
   0x6   : > { %159 = sbr.rel (%p156_p2) target bundleno = 861 (0x35d), region = 32 }
   0xd   : > { %p176_p3 = scmp.lt.s32.totalorder %s5017_s16, 1  ;;  %p5022_p4 = scmp.ne.s32.totalorder %s5017_s16, 0 }
   0xe   : > { %v6683_v0 = vmov (!%p5022_p4), 0.0  }
   0xf   : > { %s177_s17 = scalar_select %p176_p3, %s5017_s16, 1 }
  0x10   : > { %184 = sbr.rel (%p5022_p4) target bundleno = 23 (0x17), region = 36  ;;  %185 = vst [vmem:[%s7968_s3] sm:$0x1] (!%p5022_p4), %v6683_v0  ;;  %186 = vst [vmem:[%s7969_s4] sm:$0x1] (!%p5022_p4), %v6683_v0 }
  0x11   : > { %s6662_s18 = smul.u32 328, %s177_s17 }
  0x13   : > { %s6723_s21 = scalar_lea.vmem %s7965_s0, %s6662_s18 }
  0x17 PF: > { %v223_v1 = vld [vmem:[%s7966_s1] sm:$0xff]  ;;  %vm224_vm0 = vcmask 64512   ;;  %v2111_v4 = vld [vmem:[%s6723_s21 + $0x13] sm:$0xff]  ;;  %v188_v5 = vld [vmem:[%s6723_s21 + $0x8] sm:$0xff]  ;;  %vm6685_vm1 = vmmov 0   ;;  %vm4659_vm2 = vcmask 261120  }
  0x18   : > { %v5170_v2 = vld [vmem:[%s7966_s1 + $0x20] sm:$0xff]  ;;  %5772 = vmatprep.subr.mxu1 %v223_v1  ;;  %v189_v7 = vld [vmem:[%s6723_s21 + $0x10] sm:$0xff]  ;;  %5998 = vmatprep.mubr.msk.f32.mxu0 %vm224_vm0, %v2111_v4  ;;  %v190_v9 = vld [vmem:[%s6723_s21 + $0x18] sm:$0xff] }
  0x19   : > { %v187_v3 = vld [vmem:[%s6723_s21] sm:$0xff]  ;;  %5996 = vmatprep.subr.mxu0 %v5170_v2  ;;  %5773 = vmatpush3.msra.mxu1 %v223_v1  ;;  %v2114_v10 = vld [vmem:[%s6723_s21 + $0x2b] sm:$0xff]  ;;  %v2115_v12 = vld [vmem:[%s6723_s21 + $0x33] sm:$0xff] }
  0x1a   : > { %v2112_v6 = vld [vmem:[%s6723_s21 + $0x1b] sm:$0xff]  ;;  %5774 = vmatprep.mubr.msk.f32.mxu1 %vm224_vm0, %v187_v3  ;;  %v2113_v8 = vld [vmem:[%s6723_s21 + $0x23] sm:$0xff]  ;;  %5997 = vmatpush3.msra.mxu0 %v5170_v2  ;;  %v193_v15 = vld [vmem:[%s6723_s21 + $0x30] sm:$0xff] }
  0x1b   : > { %5775 = vmatmul.mubr.msk.f32.vlgmr.msra.gmra.mrb[0].mxu1 %vm224_vm0, %v188_v5  ;;  %5999 = vmatmul.mubr.msk.f32.vlgmr.msra.gmra.mrb[0].mxu0 %vm224_vm0, %v2112_v6  ;;  %v191_v11 = vld [vmem:[%s6723_s21 + $0x20] sm:$0xff]  ;;  %v192_v13 = vld [vmem:[%s6723_s21 + $0x28] sm:$0xff]  ;;  %v194_v17 = vld [vmem:[%s6723_s21 + $0x38] sm:$0xff] }
  0x1c   : > { %5777 = vmatprep.mubr.msk.f32.mxu1 %vm224_vm0, %v189_v7  ;;  %6001 = vmatprep.mubr.msk.f32.mxu0 %vm224_vm0, %v2113_v8  ;;  %v2116_v14 = vld [vmem:[%s6723_s21 + $0x3b] sm:$0xff]  ;;  %v2117_v16 = vld [vmem:[%s6723_s21 + $0x43] sm:$0xff]  ;;  %v2118_v18 = vld [vmem:[%s6723_s21 + $0x4b] sm:$0xff] }
  0x1d   : > { %v195_v19 = vld [vmem:[%s6723_s21 + $0x40] sm:$0xff]  ;;  %v2119_v20 = vld [vmem:[%s6723_s21 + $0x53] sm:$0xff]  ;;  %v5207_v21 = vld [vmem:[%s7966_s1 + $0x28] sm:$0xff] }
  0x1e   : > { %6052 = vmatprep.subr.mxu0 %v5207_v21  ;;  %v196_v22 = vld [vmem:[%s6723_s21 + $0x48] sm:$0xff]  ;;  %v2120_v23 = vld [vmem:[%s6723_s21 + $0x5b] sm:$0xff]  ;;  %v197_v24 = vld [vmem:[%s6723_s21 + $0x50] sm:$0xff] }
  0x1f   : > { %5778 = vmatmul.mubr.msk.f32.gmra.mrb[2].mxu1 %vm224_vm0, %v190_v9  ;;  %6002 = vmatmul.mubr.msk.f32.gmra.mrb[2].mxu0 %vm224_vm0, %v2114_v10  ;;  %v2121_v25 = vld [vmem:[%s6723_s21 + $0x63] sm:$0xff]  ;;  %v198_v26 = vld [vmem:[%s6723_s21 + $0x58] sm:$0xff]  ;;  %v2122_v27 = vld [vmem:[%s6723_s21 + $0x6b] sm:$0xff] }
  0x20   : > { %5780 = vmatprep.mubr.msk.f32.mxu1 %vm224_vm0, %v191_v11  ;;  %6004 = vmatprep.mubr.msk.f32.mxu0 %vm224_vm0, %v2115_v12  ;;  %v199_v28 = vld [vmem:[%s6723_s21 + $0x60] sm:$0xff]  ;;  %v2123_v29 = vld [vmem:[%s6723_s21 + $0x73] sm:$0xff]  ;;  %v200_v30 = vld [vmem:[%s6723_s21 + $0x68] sm:$0xff] }
  0x21   : > { %6053 = vmatpush3.msra.mxu0 %v5207_v21  ;;  %v2124_v31 = vld [vmem:[%s6723_s21 + $0x7b] sm:$0xff]  ;;  %v5059_v32 = vld [vmem:[%s7966_s1 + $0x8] sm:$0xff]  ;;  %v201_v33 = vld [vmem:[%s6723_s21 + $0x70] sm:$0xff] }
  0x22   : > { %v2125_v34 = vld [vmem:[%s6723_s21 + $0x83] sm:$0xff]  ;;  %5828 = vmatprep.subr.mxu1 %v5059_v32  ;;  %v202_v35 = vld [vmem:[%s6723_s21 + $0x78] sm:$0xff]  ;;  %v2126_v36 = vld [vmem:[%s6723_s21 + $0x8b] sm:$0xff] }
  0x23   : > { %5781 = vmatmul.mubr.msk.f32.gmra.mrb[4].mxu1 %vm224_vm0, %v192_v13  ;;  %6005 = vmatmul.mubr.msk.f32.gmra.mrb[4].mxu0 %vm224_vm0, %v2116_v14  ;;  %v203_v37 = vld [vmem:[%s6723_s21 + $0x80] sm:$0xff]  ;;  %v2127_v38 = vld [vmem:[%s6723_s21 + $0x93] sm:$0xff]  ;;  %v204_v39 = vld [vmem:[%s6723_s21 + $0x88] sm:$0xff] }
  0x24   : > { %5783 = vmatprep.mubr.msk.f32.mxu1 %vm224_vm0, %v193_v15  ;;  %6007 = vmatprep.mubr.msk.f32.mxu0 %vm224_vm0, %v2117_v16  ;;  %v2128_v40 = vld [vmem:[%s6723_s21 + $0x9b] sm:$0xff]  ;;  %v205_v41 = vld [vmem:[%s6723_s21 + $0x90] sm:$0xff]  ;;  %v2129_v42 = vld [vmem:[%s6723_s21 + $0xa3] sm:$0xff] }
  0x25   : > { %5829 = vmatpush3.msra.mxu1 %v5059_v32  ;;  %v206_v43 = vld [vmem:[%s6723_s21 + $0x98] sm:$0xff]  ;;  %v2130_v44 = vld [vmem:[%s6723_s21 + $0xab] sm:$0xff]  ;;  %v207_v45 = vld [vmem:[%s6723_s21 + $0xa0] sm:$0xff] }
  0x26   : > { %v2131_v46 = vld [vmem:[%s6723_s21 + $0xb3] sm:$0xff]  ;;  %v208_v48 = vld [vmem:[%s6723_s21 + $0xa8] sm:$0xff]  ;;  %v2132_v49 = vld [vmem:[%s6723_s21 + $0xbb] sm:$0xff] }
  0x27   : > { %5784 = vmatmul.mubr.msk.f32.gmra.mrb[6].mxu1 %vm224_vm0, %v194_v17  ;;  %6008 = vmatmul.mubr.msk.f32.gmra.mrb[6].mxu0 %vm224_vm0, %v2118_v18  ;;  %v6826_v47 = vld [vmem:[%s7966_s1 + $0x30] sm:$0xff]  ;;  %v2133_v51 = vld [vmem:[%s6723_s21 + $0xc3] sm:$0xff]  ;;  %v210_v52 = vld [vmem:[%s6723_s21 + $0xb8] sm:$0xff] }
  0x28   : > { %5786 = vmatprep.mubr.msk.f32.mxu1 %vm224_vm0, %v195_v19  ;;  %6010 = vmatprep.mubr.msk.f32.mxu0 %vm224_vm0, %v2119_v20  ;;  %v209_v50 = vld [vmem:[%s6723_s21 + $0xb0] sm:$0xff]  ;;  %v211_v54 = vld [vmem:[%s6723_s21 + $0xc0] sm:$0xff]  ;;  %v212_v56 = vld [vmem:[%s6723_s21 + $0xc8] sm:$0xff] }
  0x29   : > { %6108 = vmatprep.subr.mxu0 %v6826_v47  ;;  %v2134_v53 = vld [vmem:[%s6723_s21 + $0xcb] sm:$0xff]  ;;  %v2135_v55 = vld [vmem:[%s6723_s21 + $0xd3] sm:$0xff]  ;;  %v2136_v57 = vld [vmem:[%s6723_s21 + $0xdb] sm:$0xff] }
  0x2a   : > { %v5096_v58 = vld [vmem:[%s7966_s1 + $0x10] sm:$0xff]  ;;  %v2137_v60 = vld [vmem:[%s6723_s21 + $0xe3] sm:$0xff]  ;;  %v214_v61 = vld [vmem:[%s6723_s21 + $0xd8] sm:$0xff] }
  0x2b   : > { %5787 = vmatmul.mubr.msk.f32.gmra.mrb[8].mxu1 %vm224_vm0, %v196_v22  ;;  %6011 = vmatmul.mubr.msk.f32.gmra.mrb[8].mxu0 %vm224_vm0, %v2120_v23  ;;  %v213_v59 = vld [vmem:[%s6723_s21 + $0xd0] sm:$0xff]  ;;  %v215_v63 = vld [vmem:[%s6723_s21 + $0xe0] sm:$0xff]  ;;  %v216_v1 = vld [vmem:[%s6723_s21 + $0xe8] sm:$0xff] }
  0x2c   : > { %5789 = vmatprep.mubr.msk.f32.mxu1 %vm224_vm0, %v197_v24  ;;  %6013 = vmatprep.mubr.msk.f32.mxu0 %vm224_vm0, %v2121_v25  ;;  %v2138_v62 = vld [vmem:[%s6723_s21 + $0xeb] sm:$0xff]  ;;  %v2139_v0 = vld [vmem:[%s6723_s21 + $0xf3] sm:$0xff]  ;;  %v2140_v2 = vld [vmem:[%s6723_s21 + $0xfb] sm:$0xff] }
  0x2d   : > { %5884 = vmatprep.subr.mxu1 %v5096_v58  ;;  %v217_v3 = vld [vmem:[%s6723_s21 + $0xf0] sm:$0xff]  ;;  %v2141_v4 = vld [vmem:[%s6723_s21 + $0x103] sm:$0xff]  ;;  %v218_v5 = vld [vmem:[%s6723_s21 + $0xf8] sm:$0xff] }
  0x2e   : > { %v2142_v6 = vld [vmem:[%s6723_s21 + $0x10b] sm:$0xff]  ;;  %v219_v7 = vld [vmem:[%s6723_s21 + $0x100] sm:$0xff]  ;;  %v2143_v8 = vld [vmem:[%s6723_s21 + $0x113] sm:$0xff] }
  0x2f   : > { %5790 = vmatmul.mubr.msk.f32.gmra.mrb[10].mxu1 %vm224_vm0, %v198_v26  ;;  %6014 = vmatmul.mubr.msk.f32.gmra.mrb[10].mxu0 %vm224_vm0, %v2122_v27  ;;  %v220_v9 = vld [vmem:[%s6723_s21 + $0x108] sm:$0xff]  ;;  %v2144_v10 = vld [vmem:[%s6723_s21 + $0x11b] sm:$0xff]  ;;  %v221_v11 = vld [vmem:[%s6723_s21 + $0x110] sm:$0xff] }
  0x30   : > { %5792 = vmatprep.mubr.msk.f32.mxu1 %vm224_vm0, %v199_v28  ;;  %6016 = vmatprep.mubr.msk.f32.mxu0 %vm224_vm0, %v2123_v29  ;;  %v2145_v12 = vld [vmem:[%s6723_s21 + $0x123] sm:$0xff]  ;;  %v222_v13 = vld [vmem:[%s6723_s21 + $0x118] sm:$0xff]  ;;  %v2146_v14 = vld [vmem:[%s6723_s21 + $0x12b] sm:$0xff] }
  0x31   : > { %v614_v15 = vld [vmem:[%s6723_s21 + $0x1] sm:$0xff]  ;;  %v2610_v16 = vld [vmem:[%s6723_s21 + $0x14] sm:$0xff]  ;;  %v615_v17 = vld [vmem:[%s6723_s21 + $0x9] sm:$0xff] }
  0x32   : > { %v2611_v18 = vld [vmem:[%s6723_s21 + $0x1c] sm:$0xff]  ;;  %v616_v19 = vld [vmem:[%s6723_s21 + $0x11] sm:$0xff]  ;;  %v6904_v20 = vld [vmem:[%s6723_s21 + $0x24] sm:$0xff] }
  0x33   : > { %5793 = vmatmul.mubr.msk.f32.gmra.mrb[12].mxu1 %vm224_vm0, %v200_v30  ;;  %6017 = vmatmul.mubr.msk.f32.gmra.mrb[12].mxu0 %vm224_vm0, %v2124_v31  ;;  %v6911_v21 = vld [vmem:[%s7966_s1 + $0x38] sm:$0xff]  ;;  %v6918_v23 = vld [vmem:[%s6723_s21 + $0x2c] sm:$0xff]  ;;  %v618_v24 = vld [vmem:[%s6723_s21 + $0x21] sm:$0xff] }
  0x34   : > { %5795 = vmatprep.mubr.msk.f32.mxu1 %vm224_vm0, %v201_v33  ;;  %6019 = vmatprep.mubr.msk.f32.mxu0 %vm224_vm0, %v2125_v34  ;;  %v617_v22 = vld [vmem:[%s6723_s21 + $0x19] sm:$0xff]  ;;  %v619_v26 = vld [vmem:[%s6723_s21 + $0x29] sm:$0xff]  ;;  %v620_v28 = vld [vmem:[%s6723_s21 + $0x31] sm:$0xff] }
  0x35   : > { %v6922_v25 = vld [vmem:[%s6723_s21 + $0x34] sm:$0xff]  ;;  %v6934_v27 = vld [vmem:[%s6723_s21 + $0x3c] sm:$0xff]  ;;  %v6938_v29 = vld [vmem:[%s6723_s21 + $0x44] sm:$0xff] }
  0x36   : > { %v621_v30 = vld [vmem:[%s6723_s21 + $0x39] sm:$0xff]  ;;  %v6948_v31 = vld [vmem:[%s6723_s21 + $0x4c] sm:$0xff]  ;;  %v622_v32 = vld [vmem:[%s6723_s21 + $0x41] sm:$0xff] }
  0x37   : > { %5796 = vmatmul.mubr.msk.f32.gmra.mrb[14].mxu1 %vm224_vm0, %v202_v35  ;;  %6020 = vmatmul.mubr.msk.f32.gmra.mrb[14].mxu0 %vm224_vm0, %v2126_v36  ;;  %v6952_v33 = vld [vmem:[%s6723_s21 + $0x54] sm:$0xff]  ;;  %v623_v35 = vld [vmem:[%s6723_s21 + $0x49] sm:$0xff]  ;;  %v6967_v36 = vld [vmem:[%s6723_s21 + $0x5c] sm:$0xff] }
  0x38   : > { %5798 = vmatprep.mubr.msk.f32.mxu1 %vm224_vm0, %v203_v37  ;;  %6022 = vmatprep.mubr.msk.f32.mxu0 %vm224_vm0, %v2127_v38  ;;  %v6960_v34 = vld [vmem:[%s7966_s1 + $0x18] sm:$0xff]  ;;  %v6971_v38 = vld [vmem:[%s6723_s21 + $0x64] sm:$0xff] }
  0x39   : > { %v624_v37 = vld [vmem:[%s6723_s21 + $0x51] sm:$0xff] }
  0x3b   : > { %5799 = vmatmul.mubr.msk.f32.gmra.mrb[16].mxu1 %vm224_vm0, %v204_v39  ;;  %6023 = vmatmul.mubr.msk.f32.gmra.mrb[16].mxu0 %vm224_vm0, %v2128_v40  ;;  %v625_v39 = vld [vmem:[%s6723_s21 + $0x59] sm:$0xff]  ;;  %v6982_v40 = vld [vmem:[%s6723_s21 + $0x6c] sm:$0xff] }
  0x3c   : > { %5801 = vmatprep.mubr.msk.f32.mxu1 %vm224_vm0, %v205_v41  ;;  %6025 = vmatprep.mubr.msk.f32.mxu0 %vm224_vm0, %v2129_v42  ;;  %v626_v41 = vld [vmem:[%s6723_s21 + $0x61] sm:$0xff]  ;;  %v6986_v42 = vld [vmem:[%s6723_s21 + $0x74] sm:$0xff] }
  0x3f   : > { %5802 = vmatmul.mubr.msk.f32.gmra.mrb[18].mxu1 %vm224_vm0, %v206_v43  ;;  %6026 = vmatmul.mubr.msk.f32.gmra.mrb[18].mxu0 %vm224_vm0, %v2130_v44  ;;  %v627_v43 = vld [vmem:[%s6723_s21 + $0x69] sm:$0xff]  ;;  %v6996_v44 = vld [vmem:[%s6723_s21 + $0x7c] sm:$0xff] }
  0x40   : > { %5804 = vmatprep.mubr.msk.f32.mxu1 %vm224_vm0, %v207_v45  ;;  %6028 = vmatprep.mubr.msk.f32.mxu0 %vm224_vm0, %v2131_v46  ;;  %v628_v45 = vld [vmem:[%s6723_s21 + $0x71] sm:$0xff]  ;;  %v7000_v46 = vld [vmem:[%s6723_s21 + $0x84] sm:$0xff] }
  0x43   : > { %5805 = vmatmul.mubr.msk.f32.gmra.mrb[20].mxu1 %vm224_vm0, %v208_v48  ;;  %6029 = vmatmul.mubr.msk.f32.gmra.mrb[20].mxu0 %vm224_vm0, %v2132_v49  ;;  %v7010_v48 = vld [vmem:[%s6723_s21 + $0x8c] sm:$0xff]  ;;  %v630_v49 = vld [vmem:[%s6723_s21 + $0x81] sm:$0xff] }
  0x44   : > { %5807 = vmatprep.mubr.msk.f32.mxu1 %vm224_vm0, %v209_v50  ;;  %6031 = vmatprep.mubr.msk.f32.mxu0 %vm224_vm0, %v2133_v51  ;;  %v7014_v50 = vld [vmem:[%s6723_s21 + $0x94] sm:$0xff]  ;;  %v631_v51 = vld [vmem:[%s6723_s21 + $0x89] sm:$0xff] }
  0x47   : > { %5808 = vmatmul.mubr.msk.f32.gmra.mrb[22].mxu1 %vm224_vm0, %v210_v52  ;;  %6032 = vmatmul.mubr.msk.f32.gmra.mrb[22].mxu0 %vm224_vm0, %v2134_v53  ;;  %v7024_v52 = vld [vmem:[%s6723_s21 + $0x9c] sm:$0xff]  ;;  %v632_v53 = vld [vmem:[%s6723_s21 + $0x91] sm:$0xff] }
  0x48   : > { %5810 = vmatprep.mubr.msk.f32.mxu1 %vm224_vm0, %v211_v54  ;;  %6034 = vmatprep.mubr.msk.f32.mxu0 %vm224_vm0, %v2135_v55  ;;  %v7028_v54 = vld [vmem:[%s6723_s21 + $0xa4] sm:$0xff]  ;;  %v633_v55 = vld [vmem:[%s6723_s21 + $0x99] sm:$0xff] }
  0x4b   : > { %5811 = vmatmul.mubr.msk.f32.gmra.mrb[24].mxu1 %vm224_vm0, %v212_v56  ;;  %6035 = vmatmul.mubr.msk.f32.gmra.mrb[24].mxu0 %vm224_vm0, %v2136_v57  ;;  %v7038_v56 = vld [vmem:[%s6723_s21 + $0xac] sm:$0xff]  ;;  %v634_v57 = vld [vmem:[%s6723_s21 + $0xa1] sm:$0xff] }
  0x4c   : > { %5813 = vmatprep.mubr.msk.f32.mxu1 %vm224_vm0, %v213_v59  ;;  %6037 = vmatprep.mubr.msk.f32.mxu0 %vm224_vm0, %v2137_v60  ;;  %v635_v59 = vld [vmem:[%s6723_s21 + $0xa9] sm:$0xff]  ;;  %v7052_v60 = vld [vmem:[%s6723_s21 + $0xbc] sm:$0xff] }
  0x4f   : > { %5814 = vmatmul.mubr.msk.f32.gmra.mrb[26].mxu1 %vm224_vm0, %v214_v61  ;;  %6038 = vmatmul.mubr.msk.f32.gmra.mrb[26].mxu0 %vm224_vm0, %v2138_v62  ;;  %v636_v61 = vld [vmem:[%s6723_s21 + $0xb1] sm:$0xff]  ;;  %v7056_v62 = vld [vmem:[%s6723_s21 + $0xc4] sm:$0xff] }
  0x50   : > { %5816 = vmatprep.mubr.msk.f32.mxu1 %vm224_vm0, %v215_v63  ;;  %6040 = vmatprep.mubr.msk.f32.mxu0 %vm224_vm0, %v2139_v0  ;;  %v637_v63 = vld [vmem:[%s6723_s21 + $0xb9] sm:$0xff]  ;;  %v7066_v0 = vld [vmem:[%s6723_s21 + $0xcc] sm:$0xff] }
  0x53   : > { %5817 = vmatmul.mubr.msk.f32.gmra.mrb[28].mxu1 %vm224_vm0, %v216_v1  ;;  %6041 = vmatmul.mubr.msk.f32.gmra.mrb[28].mxu0 %vm224_vm0, %v2140_v2  ;;  %v638_v1 = vld [vmem:[%s6723_s21 + $0xc1] sm:$0xff]  ;;  %v7070_v2 = vld [vmem:[%s6723_s21 + $0xd4] sm:$0xff] }
  0x54   : > { %5819 = vmatprep.mubr.msk.f32.mxu1 %vm224_vm0, %v217_v3  ;;  %6043 = vmatprep.mubr.msk.f32.mxu0 %vm224_vm0, %v2141_v4  ;;  %v639_v3 = vld [vmem:[%s6723_s21 + $0xc9] sm:$0xff]  ;;  %v7080_v4 = vld [vmem:[%s6723_s21 + $0xdc] sm:$0xff] }
  0x57   : > { %5820 = vmatmul.mubr.msk.f32.gmra.mrb[30].mxu1 %vm224_vm0, %v218_v5  ;;  %6044 = vmatmul.mubr.msk.f32.gmra.mrb[30].mxu0 %vm224_vm0, %v2142_v6  ;;  %v640_v5 = vld [vmem:[%s6723_s21 + $0xd1] sm:$0xff]  ;;  %v7084_v6 = vld [vmem:[%s6723_s21 + $0xe4] sm:$0xff] }
  0x58   : > { %5822 = vmatprep.mubr.msk.f32.mxu1 %vm224_vm0, %v219_v7  ;;  %6046 = vmatprep.mubr.msk.f32.mxu0 %vm224_vm0, %v2143_v8  ;;  %v641_v7 = vld [vmem:[%s6723_s21 + $0xd9] sm:$0xff]  ;;  %v7094_v8 = vld [vmem:[%s6723_s21 + $0xec] sm:$0xff] }
  0x5b   : > { %5823 = vmatmul.mubr.msk.f32.gmra.mrb[32].mxu1 %vm224_vm0, %v220_v9  ;;  %6047 = vmatmul.mubr.msk.f32.gmra.mrb[32].mxu0 %vm224_vm0, %v2144_v10  ;;  %v642_v9 = vld [vmem:[%s6723_s21 + $0xe1] sm:$0xff]  ;;  %v7098_v10 = vld [vmem:[%s6723_s21 + $0xf4] sm:$0xff] }
  0x5c   : > { %5825 = vmatprep.mubr.msk.f32.mxu1 %vm224_vm0, %v221_v11  ;;  %6049 = vmatprep.mubr.msk.f32.mxu0 %vm224_vm0, %v2145_v12  ;;  %v643_v11 = vld [vmem:[%s6723_s21 + $0xe9] sm:$0xff]  ;;  %v7108_v12 = vld [vmem:[%s6723_s21 + $0xfc] sm:$0xff] }
  0x5f   : > { %5826 = vmatmul.mubr.msk.f32.gmra.mrb[34].mxu1 %vm224_vm0, %v222_v13  ;;  %6050 = vmatmul.mubr.msk.f32.gmra.mrb[34].mxu0 %vm224_vm0, %v2146_v14  ;;  %v644_v13 = vld [vmem:[%s6723_s21 + $0xf1] sm:$0xff]  ;;  %v7112_v14 = vld [vmem:[%s6723_s21 + $0x104] sm:$0xff] }
  0x60   : > { %5830 = vmatprep.mubr.msk.f32.mxu1 %vm224_vm0, %v614_v15  ;;  %6054 = vmatprep.mubr.msk.f32.mxu0 %vm224_vm0, %v2610_v16  ;;  %v645_v15 = vld [vmem:[%s6723_s21 + $0xf9] sm:$0xff]  ;;  %v7122_v16 = vld [vmem:[%s6723_s21 + $0x10c] sm:$0xff] }
  0x63   : > { %5831 = vmatmul.mubr.msk.f32.vlgmr.msra.gmra.mrb[0].mxu1 %vm224_vm0, %v615_v17  ;;  %6055 = vmatmul.mubr.msk.f32.vlgmr.msra.gmra.mrb[0].mxu0 %vm224_vm0, %v2611_v18  ;;  %v646_v17 = vld [vmem:[%s6723_s21 + $0x101] sm:$0xff]  ;;  %v7126_v18 = vld [vmem:[%s6723_s21 + $0x114] sm:$0xff] }
  0x64   : > { %5833 = vmatprep.mubr.msk.f32.mxu1 %vm224_vm0, %v616_v19  ;;  %6057 = vmatprep.mubr.msk.f32.mxu0 %vm224_vm0, %v6904_v20  ;;  %v647_v19 = vld [vmem:[%s6723_s21 + $0x109] sm:$0xff] }
  0x65   : > { %6109 = vmatpush3.msra.mxu0 %v6826_v47  ;;  %5885 = vmatpush3.msra.mxu1 %v5096_v58  ;;  %v629_v47 = vld [vmem:[%s6723_s21 + $0x79] sm:$0xff] }
  0x66   : > { %6164 = vmatprep.subr.mxu0 %v6911_v21  ;;  %5940 = vmatprep.subr.mxu1 %v6960_v34  ;;  %v7042_v58 = vld [vmem:[%s6723_s21 + $0xb4] sm:$0xff] }
  0x67   : > { %5834 = vmatmul.mubr.msk.f32.gmra.mrb[2].mxu1 %vm224_vm0, %v617_v22  ;;  %6058 = vmatmul.mubr.msk.f32.gmra.mrb[2].mxu0 %vm224_vm0, %v6918_v23  ;;  %v7136_v22 = vld [vmem:[%s6723_s21 + $0x11c] sm:$0xff] }
  0x68   : > { %5836 = vmatprep.mubr.msk.f32.mxu1 %vm224_vm0, %v618_v24  ;;  %6060 = vmatprep.mubr.msk.f32.mxu0 %vm224_vm0, %v6922_v25  ;;  %v648_v24 = vld [vmem:[%s6723_s21 + $0x111] sm:$0xff] }
  0x6b   : > { %5837 = vmatmul.mubr.msk.f32.gmra.mrb[4].mxu1 %vm224_vm0, %v619_v26  ;;  %6061 = vmatmul.mubr.msk.f32.gmra.mrb[4].mxu0 %vm224_vm0, %v6934_v27  ;;  %v7140_v26 = vld [vmem:[%s6723_s21 + $0x124] sm:$0xff] }
  0x6c   : > { %5839 = vmatprep.mubr.msk.f32.mxu1 %vm224_vm0, %v620_v28  ;;  %6063 = vmatprep.mubr.msk.f32.mxu0 %vm224_vm0, %v6938_v29  ;;  %v649_v28 = vld [vmem:[%s6723_s21 + $0x119] sm:$0xff] }
  0x6f   : > { %5840 = vmatmul.mubr.msk.f32.gmra.mrb[6].mxu1 %vm224_vm0, %v621_v30  ;;  %6064 = vmatmul.mubr.msk.f32.gmra.mrb[6].mxu0 %vm224_vm0, %v6948_v31  ;;  %v7150_v30 = vld [vmem:[%s6723_s21 + $0x12c] sm:$0xff] }
  0x70   : > { %5842 = vmatprep.mubr.msk.f32.mxu1 %vm224_vm0, %v622_v32  ;;  %6066 = vmatprep.mubr.msk.f32.mxu0 %vm224_vm0, %v6952_v33  ;;  %v1113_v32 = vld [vmem:[%s6723_s21 + $0x2] sm:$0xff] }
  0x73   : > { %5843 = vmatmul.mubr.msk.f32.gmra.mrb[8].mxu1 %vm224_vm0, %v623_v35  ;;  %6067 = vmatmul.mubr.msk.f32.gmra.mrb[8].mxu0 %vm224_vm0, %v6967_v36  ;;  %v1114_v35 = vld [vmem:[%s6723_s21 + $0xa] sm:$0xff] }
  0x74   : > { %5845 = vmatprep.mubr.msk.f32.mxu1 %vm224_vm0, %v624_v37  ;;  %6069 = vmatprep.mubr.msk.f32.mxu0 %vm224_vm0, %v6971_v38  ;;  %v7161_v37 = vld [vmem:[%s6723_s21 + $0x12] sm:$0xff] }
  0x77   : > { %5846 = vmatmul.mubr.msk.f32.gmra.mrb[10].mxu1 %vm224_vm0, %v625_v39  ;;  %6070 = vmatmul.mubr.msk.f32.gmra.mrb[10].mxu0 %vm224_vm0, %v6982_v40  ;;  %v7169_v39 = vld [vmem:[%s7966_s1 + $0x40] sm:$0xff] }
  0x78   : > { %5848 = vmatprep.mubr.msk.f32.mxu1 %vm224_vm0, %v626_v41  ;;  %6072 = vmatprep.mubr.msk.f32.mxu0 %vm224_vm0, %v6986_v42  ;;  %v7179_v41 = vld [vmem:[%s6723_s21 + $0x22] sm:$0xff] }
  0x7b   : > { %5849 = vmatmul.mubr.msk.f32.gmra.mrb[12].mxu1 %vm224_vm0, %v627_v43  ;;  %6073 = vmatmul.mubr.msk.f32.gmra.mrb[12].mxu0 %vm224_vm0, %v6996_v44  ;;  %v7277_v43 = vld [vmem:[%s6723_s21 + $0x8a] sm:$0xff] }
  0x7c   : > { %5851 = vmatprep.mubr.msk.f32.mxu1 %vm224_vm0, %v628_v45  ;;  %6075 = vmatprep.mubr.msk.f32.mxu0 %vm224_vm0, %v7000_v46  ;;  %v7291_v45 = vld [vmem:[%s6723_s21 + $0x9a] sm:$0xff] }
  0x7f   : > { %5852 = vmatmul.mubr.msk.f32.gmra.mrb[14].mxu1 %vm224_vm0, %v629_v47  ;;  %6076 = vmatmul.mubr.msk.f32.gmra.mrb[14].mxu0 %vm224_vm0, %v7010_v48  ;;  %v7305_v47 = vld [vmem:[%s6723_s21 + $0xaa] sm:$0xff] }
  0x80   : > { %5854 = vmatprep.mubr.msk.f32.mxu1 %vm224_vm0, %v630_v49  ;;  %6078 = vmatprep.mubr.msk.f32.mxu0 %vm224_vm0, %v7014_v50  ;;  %v7319_v49 = vld [vmem:[%s6723_s21 + $0xba] sm:$0xff] }
  0x83   : > { %5855 = vmatmul.mubr.msk.f32.gmra.mrb[16].mxu1 %vm224_vm0, %v631_v51  ;;  %6079 = vmatmul.mubr.msk.f32.gmra.mrb[16].mxu0 %vm224_vm0, %v7024_v52  ;;  %v7333_v51 = vld [vmem:[%s6723_s21 + $0xca] sm:$0xff] }
  0x84   : > { %5857 = vmatprep.mubr.msk.f32.mxu1 %vm224_vm0, %v632_v53  ;;  %6081 = vmatprep.mubr.msk.f32.mxu0 %vm224_vm0, %v7028_v54  ;;  %v7347_v53 = vld [vmem:[%s6723_s21 + $0xda] sm:$0xff] }
  0x87   : > { %5858 = vmatmul.mubr.msk.f32.gmra.mrb[18].mxu1 %vm224_vm0, %v633_v55  ;;  %6082 = vmatmul.mubr.msk.f32.gmra.mrb[18].mxu0 %vm224_vm0, %v7038_v56  ;;  %v7361_v55 = vld [vmem:[%s6723_s21 + $0xea] sm:$0xff] }
  0x88   : > { %5860 = vmatprep.mubr.msk.f32.mxu1 %vm224_vm0, %v634_v57  ;;  %6084 = vmatprep.mubr.msk.f32.mxu0 %vm224_vm0, %v7042_v58  ;;  %v7375_v57 = vld [vmem:[%s6723_s21 + $0xfa] sm:$0xff] }
  0x8b   : > { %5861 = vmatmul.mubr.msk.f32.gmra.mrb[20].mxu1 %vm224_vm0, %v635_v59  ;;  %6085 = vmatmul.mubr.msk.f32.gmra.mrb[20].mxu0 %vm224_vm0, %v7052_v60  ;;  %v7389_v59 = vld [vmem:[%s6723_s21 + $0x10a] sm:$0xff] }
  0x8c   : > { %5863 = vmatprep.mubr.msk.f32.mxu1 %vm224_vm0, %v636_v61  ;;  %6087 = vmatprep.mubr.msk.f32.mxu0 %vm224_vm0, %v7056_v62  ;;  %v3143_v61 = vld [vmem:[%s6723_s21 + $0x134] sm:$0xff] }
  0x8f   : > { %5864 = vmatmul.mubr.msk.f32.gmra.mrb[22].mxu1 %vm224_vm0, %v637_v63  ;;  %6088 = vmatmul.mubr.msk.f32.gmra.mrb[22].mxu0 %vm224_vm0, %v7066_v0  ;;  %v3144_v63 = vld [vmem:[%s6723_s21 + $0x13c] sm:$0xff] }
  0x90   : > { %5866 = vmatprep.mubr.msk.f32.mxu1 %vm224_vm0, %v638_v1  ;;  %6090 = vmatprep.mubr.msk.f32.mxu0 %vm224_vm0, %v7070_v2  ;;  %v3609_v1 = vld [vmem:[%s6723_s21 + $0x2d] sm:$0xff] }
  0x93   : > { %5867 = vmatmul.mubr.msk.f32.gmra.mrb[24].mxu1 %vm224_vm0, %v639_v3  ;;  %6091 = vmatmul.mubr.msk.f32.gmra.mrb[24].mxu0 %vm224_vm0, %v7080_v4  ;;  %v3611_v3 = vld [vmem:[%s6723_s21 + $0x3d] sm:$0xff] }
  0x94   : > { %5869 = vmatprep.mubr.msk.f32.mxu1 %vm224_vm0, %v640_v5  ;;  %6093 = vmatprep.mubr.msk.f32.mxu0 %vm224_vm0, %v7084_v6  ;;  %v3613_v5 = vld [vmem:[%s6723_s21 + $0x4d] sm:$0xff] }
  0x97   : > { %5870 = vmatmul.mubr.msk.f32.gmra.mrb[26].mxu1 %vm224_vm0, %v641_v7  ;;  %6094 = vmatmul.mubr.msk.f32.gmra.mrb[26].mxu0 %vm224_vm0, %v7094_v8  ;;  %v3615_v7 = vld [vmem:[%s6723_s21 + $0x5d] sm:$0xff] }
  0x98   : > { %5872 = vmatprep.mubr.msk.f32.mxu1 %vm224_vm0, %v642_v9  ;;  %6096 = vmatprep.mubr.msk.f32.mxu0 %vm224_vm0, %v7098_v10  ;;  %v3617_v9 = vld [vmem:[%s6723_s21 + $0x6d] sm:$0xff] }
  0x9b   : > { %5873 = vmatmul.mubr.msk.f32.gmra.mrb[28].mxu1 %vm224_vm0, %v643_v11  ;;  %6097 = vmatmul.mubr.msk.f32.gmra.mrb[28].mxu0 %vm224_vm0, %v7108_v12  ;;  %v3619_v11 = vld [vmem:[%s6723_s21 + $0x7d] sm:$0xff] }
  0x9c   : > { %5875 = vmatprep.mubr.msk.f32.mxu1 %vm224_vm0, %v644_v13  ;;  %6099 = vmatprep.mubr.msk.f32.mxu0 %vm224_vm0, %v7112_v14  ;;  %v3621_v13 = vld [vmem:[%s6723_s21 + $0x8d] sm:$0xff] }
  0x9f   : > { %5876 = vmatmul.mubr.msk.f32.gmra.mrb[30].mxu1 %vm224_vm0, %v645_v15  ;;  %6100 = vmatmul.mubr.msk.f32.gmra.mrb[30].mxu0 %vm224_vm0, %v7122_v16  ;;  %v3623_v15 = vld [vmem:[%s6723_s21 + $0x9d] sm:$0xff] }
  0xa0   : > { %5878 = vmatprep.mubr.msk.f32.mxu1 %vm224_vm0, %v646_v17  ;;  %6102 = vmatprep.mubr.msk.f32.mxu0 %vm224_vm0, %v7126_v18  ;;  %v3625_v17 = vld [vmem:[%s6723_s21 + $0xad] sm:$0xff] }
  0xa3   : > { %5879 = vmatmul.mubr.msk.f32.gmra.mrb[32].mxu1 %vm224_vm0, %v647_v19  ;;  %6103 = vmatmul.mubr.msk.f32.gmra.mrb[32].mxu0 %vm224_vm0, %v7136_v22  ;;  %v3627_v19 = vld [vmem:[%s6723_s21 + $0xbd] sm:$0xff] }
  0xa4   : > { %5881 = vmatprep.mubr.msk.f32.mxu1 %vm224_vm0, %v648_v24  ;;  %6105 = vmatprep.mubr.msk.f32.mxu0 %vm224_vm0, %v7140_v26  ;;  %v3629_v24 = vld [vmem:[%s6723_s21 + $0xcd] sm:$0xff] }
  0xa7   : > { %5882 = vmatmul.mubr.msk.f32.gmra.mrb[34].mxu1 %vm224_vm0, %v649_v28  ;;  %6106 = vmatmul.mubr.msk.f32.gmra.mrb[34].mxu0 %vm224_vm0, %v7150_v30  ;;  %v3631_v28 = vld [vmem:[%s6723_s21 + $0xdd] sm:$0xff] }
  0xa8   : > { %5886 = vmatprep.mubr.msk.f32.mxu1 %vm224_vm0, %v1113_v32  ;;  %6110 = vmatprep.mubr.msk.f32.mxu0 %vm224_vm0, %v6904_v20  ;;  %v7176_v20 = vld [vmem:[%s6723_s21 + $0x1a] sm:$0xff]  ;;  %v3633_v32 = vld [vmem:[%s6723_s21 + $0xed] sm:$0xff] }
  0xab   : > { %5887 = vmatmul.mubr.msk.f32.vlgmr.msra.gmra.mrb[0].mxu1 %vm224_vm0, %v1114_v35  ;;  %6111 = vmatmul.mubr.msk.f32.vlgmr.msra.gmra.mrb[0].mxu0 %vm224_vm0, %v6918_v23  ;;  %v7193_v23 = vld [vmem:[%s6723_s21 + $0x2a] sm:$0xff]  ;;  %v3634_v35 = vld [vmem:[%s6723_s21 + $0xf5] sm:$0xff] }
  0xac   : > { %5889 = vmatprep.mubr.msk.f32.mxu1 %vm224_vm0, %v7161_v37  ;;  %6113 = vmatprep.mubr.msk.f32.mxu0 %vm224_vm0, %v6922_v25  ;;  %v7207_v25 = vld [vmem:[%s6723_s21 + $0x3a] sm:$0xff] }
  0xad   : > { %6165 = vmatpush3.msra.mxu0 %v6911_v21  ;;  %5941 = vmatpush3.msra.mxu1 %v6960_v34  ;;  %v7196_v21 = vld [vmem:[%s6723_s21 + $0x32] sm:$0xff]  ;;  %v7238_v34 = vld [vmem:[%s6723_s21 + $0x62] sm:$0xff] }
  0xae   : > { %6220 = vmatprep.subr.mxu0 %v7169_v39 }
  0xaf   : > { %5890 = vmatmul.mubr.msk.f32.gmra.mrb[2].mxu1 %vm224_vm0, %v7176_v20  ;;  %6114 = vmatmul.mubr.msk.f32.gmra.mrb[2].mxu0 %vm224_vm0, %v6934_v27  ;;  %v7210_v27 = vld [vmem:[%s6723_s21 + $0x42] sm:$0xff] }
  0xb0   : > { %5892 = vmatprep.mubr.msk.f32.mxu1 %vm224_vm0, %v7179_v41  ;;  %6116 = vmatprep.mubr.msk.f32.mxu0 %vm224_vm0, %v6938_v29  ;;  %v7221_v29 = vld [vmem:[%s6723_s21 + $0x4a] sm:$0xff] }
  0xb3   : > { %5893 = vmatmul.mubr.msk.f32.gmra.mrb[4].mxu1 %vm224_vm0, %v7193_v23  ;;  %6117 = vmatmul.mubr.msk.f32.gmra.mrb[4].mxu0 %vm224_vm0, %v6948_v31  ;;  %v7224_v31 = vld [vmem:[%s6723_s21 + $0x52] sm:$0xff] }
  0xb4   : > { %5895 = vmatprep.mubr.msk.f32.mxu1 %vm224_vm0, %v7196_v21  ;;  %6119 = vmatprep.mubr.msk.f32.mxu0 %vm224_vm0, %v6952_v33  ;;  %v7235_v33 = vld [vmem:[%s6723_s21 + $0x5a] sm:$0xff] }
  0xb7   : > { %5896 = vmatmul.mubr.msk.f32.gmra.mrb[6].mxu1 %vm224_vm0, %v7207_v25  ;;  %6120 = vmatmul.mubr.msk.f32.gmra.mrb[6].mxu0 %vm224_vm0, %v6967_v36  ;;  %v7249_v36 = vld [vmem:[%s6723_s21 + $0x6a] sm:$0xff] }
  0xb8   : > { %5898 = vmatprep.mubr.msk.f32.mxu1 %vm224_vm0, %v7210_v27  ;;  %6122 = vmatprep.mubr.msk.f32.mxu0 %vm224_vm0, %v6971_v38  ;;  %v7252_v38 = vld [vmem:[%s6723_s21 + $0x72] sm:$0xff] }
  0xbb   : > { %5899 = vmatmul.mubr.msk.f32.gmra.mrb[8].mxu1 %vm224_vm0, %v7221_v29  ;;  %6123 = vmatmul.mubr.msk.f32.gmra.mrb[8].mxu0 %vm224_vm0, %v6982_v40  ;;  %v7263_v40 = vld [vmem:[%s6723_s21 + $0x7a] sm:$0xff] }
  0xbc   : > { %5901 = vmatprep.mubr.msk.f32.mxu1 %vm224_vm0, %v7224_v31  ;;  %6125 = vmatprep.mubr.msk.f32.mxu0 %vm224_vm0, %v6986_v42  ;;  %v7266_v42 = vld [vmem:[%s6723_s21 + $0x82] sm:$0xff] }
  0xbf   : > { %5902 = vmatmul.mubr.msk.f32.gmra.mrb[10].mxu1 %vm224_vm0, %v7235_v33  ;;  %6126 = vmatmul.mubr.msk.f32.gmra.mrb[10].mxu0 %vm224_vm0, %v6996_v44  ;;  %v7280_v44 = vld [vmem:[%s6723_s21 + $0x92] sm:$0xff] }
  0xc0   : > { %5904 = vmatprep.mubr.msk.f32.mxu1 %vm224_vm0, %v7238_v34  ;;  %6128 = vmatprep.mubr.msk.f32.mxu0 %vm224_vm0, %v7000_v46  ;;  %v7294_v46 = vld [vmem:[%s6723_s21 + $0xa2] sm:$0xff] }
  0xc3   : > { %5905 = vmatmul.mubr.msk.f32.gmra.mrb[12].mxu1 %vm224_vm0, %v7249_v36  ;;  %6129 = vmatmul.mubr.msk.f32.gmra.mrb[12].mxu0 %vm224_vm0, %v7010_v48  ;;  %v7308_v48 = vld [vmem:[%s6723_s21 + $0xb2] sm:$0xff] }
  0xc4   : > { %5907 = vmatprep.mubr.msk.f32.mxu1 %vm224_vm0, %v7252_v38  ;;  %6131 = vmatprep.mubr.msk.f32.mxu0 %vm224_vm0, %v7014_v50  ;;  %v7322_v50 = vld [vmem:[%s6723_s21 + $0xc2] sm:$0xff] }
  0xc7   : > { %5908 = vmatmul.mubr.msk.f32.gmra.mrb[14].mxu1 %vm224_vm0, %v7263_v40  ;;  %6132 = vmatmul.mubr.msk.f32.gmra.mrb[14].mxu0 %vm224_vm0, %v7024_v52  ;;  %v7336_v52 = vld [vmem:[%s6723_s21 + $0xd2] sm:$0xff] }
  0xc8   : > { %5910 = vmatprep.mubr.msk.f32.mxu1 %vm224_vm0, %v7266_v42  ;;  %6134 = vmatprep.mubr.msk.f32.mxu0 %vm224_vm0, %v7028_v54  ;;  %v7350_v54 = vld [vmem:[%s6723_s21 + $0xe2] sm:$0xff] }
  0xcb   : > { %5911 = vmatmul.mubr.msk.f32.gmra.mrb[16].mxu1 %vm224_vm0, %v7277_v43  ;;  %6135 = vmatmul.mubr.msk.f32.gmra.mrb[16].mxu0 %vm224_vm0, %v7038_v56  ;;  %v7364_v56 = vld [vmem:[%s6723_s21 + $0xf2] sm:$0xff] }
  0xcc   : > { %5913 = vmatprep.mubr.msk.f32.mxu1 %vm224_vm0, %v7280_v44  ;;  %6137 = vmatprep.mubr.msk.f32.mxu0 %vm224_vm0, %v7042_v58  ;;  %v7378_v58 = vld [vmem:[%s6723_s21 + $0x102] sm:$0xff] }
  0xcf   : > { %5914 = vmatmul.mubr.msk.f32.gmra.mrb[18].mxu1 %vm224_vm0, %v7291_v45  ;;  %6138 = vmatmul.mubr.msk.f32.gmra.mrb[18].mxu0 %vm224_vm0, %v7052_v60  ;;  %v7392_v60 = vld [vmem:[%s6723_s21 + $0x112] sm:$0xff] }
  0xd0   : > { %5916 = vmatprep.mubr.msk.f32.mxu1 %vm224_vm0, %v7294_v46  ;;  %6140 = vmatprep.mubr.msk.f32.mxu0 %vm224_vm0, %v7056_v62  ;;  %v7403_v62 = vld [vmem:[%s6723_s21 + $0x11a] sm:$0xff] }
  0xd3   : > { %5917 = vmatmul.mubr.msk.f32.gmra.mrb[20].mxu1 %vm224_vm0, %v7305_v47  ;;  %6141 = vmatmul.mubr.msk.f32.gmra.mrb[20].mxu0 %vm224_vm0, %v7066_v0  ;;  %v3608_v0 = vld [vmem:[%s6723_s21 + $0x25] sm:$0xff] }
  0xd4   : > { %5919 = vmatprep.mubr.msk.f32.mxu1 %vm224_vm0, %v7308_v48  ;;  %6143 = vmatprep.mubr.msk.f32.mxu0 %vm224_vm0, %v7070_v2  ;;  %v3610_v2 = vld [vmem:[%s6723_s21 + $0x35] sm:$0xff] }
  0xd7   : > { %5920 = vmatmul.mubr.msk.f32.gmra.mrb[22].mxu1 %vm224_vm0, %v7319_v49  ;;  %6144 = vmatmul.mubr.msk.f32.gmra.mrb[22].mxu0 %vm224_vm0, %v7080_v4  ;;  %v3612_v4 = vld [vmem:[%s6723_s21 + $0x45] sm:$0xff] }
  0xd8   : > { %5922 = vmatprep.mubr.msk.f32.mxu1 %vm224_vm0, %v7322_v50  ;;  %6146 = vmatprep.mubr.msk.f32.mxu0 %vm224_vm0, %v7084_v6  ;;  %v3614_v6 = vld [vmem:[%s6723_s21 + $0x55] sm:$0xff] }
  0xdb   : > { %5923 = vmatmul.mubr.msk.f32.gmra.mrb[24].mxu1 %vm224_vm0, %v7333_v51  ;;  %6147 = vmatmul.mubr.msk.f32.gmra.mrb[24].mxu0 %vm224_vm0, %v7094_v8  ;;  %v3616_v8 = vld [vmem:[%s6723_s21 + $0x65] sm:$0xff] }
  0xdc   : > { %5925 = vmatprep.mubr.msk.f32.mxu1 %vm224_vm0, %v7336_v52  ;;  %6149 = vmatprep.mubr.msk.f32.mxu0 %vm224_vm0, %v7098_v10  ;;  %v3618_v10 = vld [vmem:[%s6723_s21 + $0x75] sm:$0xff] }
  0xdf   : > { %5926 = vmatmul.mubr.msk.f32.gmra.mrb[26].mxu1 %vm224_vm0, %v7347_v53  ;;  %6150 = vmatmul.mubr.msk.f32.gmra.mrb[26].mxu0 %vm224_vm0, %v7108_v12  ;;  %v3620_v12 = vld [vmem:[%s6723_s21 + $0x85] sm:$0xff] }
  0xe0   : > { %5928 = vmatprep.mubr.msk.f32.mxu1 %vm224_vm0, %v7350_v54  ;;  %6152 = vmatprep.mubr.msk.f32.mxu0 %vm224_vm0, %v7112_v14  ;;  %v3622_v14 = vld [vmem:[%s6723_s21 + $0x95] sm:$0xff] }
  0xe3   : > { %5929 = vmatmul.mubr.msk.f32.gmra.mrb[28].mxu1 %vm224_vm0, %v7361_v55  ;;  %6153 = vmatmul.mubr.msk.f32.gmra.mrb[28].mxu0 %vm224_vm0, %v7122_v16  ;;  %v3624_v16 = vld [vmem:[%s6723_s21 + $0xa5] sm:$0xff] }
  0xe4   : > { %5931 = vmatprep.mubr.msk.f32.mxu1 %vm224_vm0, %v7364_v56  ;;  %6155 = vmatprep.mubr.msk.f32.mxu0 %vm224_vm0, %v7126_v18  ;;  %v3626_v18 = vld [vmem:[%s6723_s21 + $0xb5] sm:$0xff] }
  0xe7   : > { %5932 = vmatmul.mubr.msk.f32.gmra.mrb[30].mxu1 %vm224_vm0, %v7375_v57  ;;  %6156 = vmatmul.mubr.msk.f32.gmra.mrb[30].mxu0 %vm224_vm0, %v7136_v22  ;;  %v3628_v22 = vld [vmem:[%s6723_s21 + $0xc5] sm:$0xff] }
  0xe8   : > { %5934 = vmatprep.mubr.msk.f32.mxu1 %vm224_vm0, %v7378_v58  ;;  %6158 = vmatprep.mubr.msk.f32.mxu0 %vm224_vm0, %v7140_v26  ;;  %v3630_v26 = vld [vmem:[%s6723_s21 + $0xd5] sm:$0xff] }
  0xeb   : > { %5935 = vmatmul.mubr.msk.f32.gmra.mrb[32].mxu1 %vm224_vm0, %v7389_v59  ;;  %6159 = vmatmul.mubr.msk.f32.gmra.mrb[32].mxu0 %vm224_vm0, %v7150_v30  ;;  %v3632_v30 = vld [vmem:[%s6723_s21 + $0xe5] sm:$0xff] }
  0xec   : > { %5937 = vmatprep.mubr.msk.f32.mxu1 %vm224_vm0, %v7392_v60  ;;  %6161 = vmatprep.mubr.msk.f32.mxu0 %vm224_vm0, %v3143_v61  ;;  %v4130_v61 = vld [vmem:[%s6723_s21 + $0xde] sm:$0xff] }
  0xef   : > { %5938 = vmatmul.mubr.msk.f32.gmra.mrb[34].mxu1 %vm224_vm0, %v7403_v62  ;;  %6162 = vmatmul.mubr.msk.f32.gmra.mrb[34].mxu0 %vm224_vm0, %v3144_v63  ;;  %v4132_v63 = vld [vmem:[%s6723_s21 + $0xee] sm:$0xff] }
  0xf0   : > { %5942 = vmatprep.mubr.msk.f32.mxu1 %vm224_vm0, %v7161_v37  ;;  %6166 = vmatprep.mubr.msk.f32.mxu0 %vm224_vm0, %v3608_v0  ;;  %v3635_v37 = vld [vmem:[%s6723_s21 + $0xfd] sm:$0xff] }
  0xf1   : > { %v4133_v0 = vld [vmem:[%s6723_s21 + $0xf6] sm:$0xff] }
  0xf3   : > { %5943 = vmatmul.mubr.msk.f32.vlgmr.msra.gmra.mrb[0].mxu1 %vm224_vm0, %v7176_v20  ;;  %6167 = vmatmul.mubr.msk.f32.vlgmr.msra.gmra.mrb[0].mxu0 %vm224_vm0, %v3609_v1  ;;  %v3637_v20 = vld [vmem:[%s6723_s21 + $0x10d] sm:$0xff]  ;;  %v4134_v1 = vld [vmem:[%s6723_s21 + $0xfe] sm:$0xff] }
  0xf4   : > { %5945 = vmatprep.mubr.msk.f32.mxu1 %vm224_vm0, %v7179_v41  ;;  %6169 = vmatprep.mubr.msk.f32.mxu0 %vm224_vm0, %v3610_v2  ;;  %v3638_v41 = vld [vmem:[%s6723_s21 + $0x115] sm:$0xff]  ;;  %v4135_v2 = vld [vmem:[%s6723_s21 + $0x106] sm:$0xff] }
  0xf5   : > { %6221 = vmatpush3.msra.mxu0 %v7169_v39  ;;  %v3636_v39 = vld [vmem:[%s6723_s21 + $0x105] sm:$0xff] }
  0xf7   : > { %5946 = vmatmul.mubr.msk.f32.gmra.mrb[2].mxu1 %vm224_vm0, %v7193_v23  ;;  %6170 = vmatmul.mubr.msk.f32.gmra.mrb[2].mxu0 %vm224_vm0, %v3611_v3  ;;  %v3639_v23 = vld [vmem:[%s6723_s21 + $0x11d] sm:$0xff]  ;;  %v4136_v3 = vld [vmem:[%s6723_s21 + $0x10e] sm:$0xff] }
  0xf8   : > { %5948 = vmatprep.mubr.msk.f32.mxu1 %vm224_vm0, %v7196_v21  ;;  %6172 = vmatprep.mubr.msk.f32.mxu0 %vm224_vm0, %v3612_v4  ;;  %v3640_v21 = vld [vmem:[%s6723_s21 + $0x125] sm:$0xff]  ;;  %v4137_v4 = vld [vmem:[%s6723_s21 + $0x116] sm:$0xff] }
  0xfb   : > { %5949 = vmatmul.mubr.msk.f32.gmra.mrb[4].mxu1 %vm224_vm0, %v7207_v25  ;;  %6173 = vmatmul.mubr.msk.f32.gmra.mrb[4].mxu0 %vm224_vm0, %v3613_v5  ;;  %v3641_v25 = vld [vmem:[%s6723_s21 + $0x12d] sm:$0xff]  ;;  %v4138_v5 = vld [vmem:[%s6723_s21 + $0x11e] sm:$0xff] }
  0xfc   : > { %5951 = vmatprep.mubr.msk.f32.mxu1 %vm224_vm0, %v7210_v27  ;;  %6175 = vmatprep.mubr.msk.f32.mxu0 %vm224_vm0, %v3614_v6  ;;  %v1646_v27 = vld [vmem:[%s6723_s21 + $0x122] sm:$0xff] }
  0xfd   : > { %v4139_v6 = vld [vmem:[%s6723_s21 + $0x126] sm:$0xff] }
  0xff   : > { %5952 = vmatmul.mubr.msk.f32.gmra.mrb[6].mxu1 %vm224_vm0, %v7221_v29  ;;  %6176 = vmatmul.mubr.msk.f32.gmra.mrb[6].mxu0 %vm224_vm0, %v3615_v7  ;;  %v3642_v29 = vld [vmem:[%s6723_s21 + $0x135] sm:$0xff] }
 0x100   : > { %5954 = vmatprep.mubr.msk.f32.mxu1 %vm224_vm0, %v7224_v31  ;;  %6178 = vmatprep.mubr.msk.f32.mxu0 %vm224_vm0, %v3616_v8  ;;  %v1647_v31 = vld [vmem:[%s6723_s21 + $0x12a] sm:$0xff]  ;;  %v4141_v8 = vld [vmem:[%s6723_s21 + $0x136] sm:$0xff] }
 0x101   : > { %v4140_v7 = vld [vmem:[%s6723_s21 + $0x12e] sm:$0xff] }
 0x103   : > { %5955 = vmatmul.mubr.msk.f32.gmra.mrb[8].mxu1 %vm224_vm0, %v7235_v33  ;;  %6179 = vmatmul.mubr.msk.f32.gmra.mrb[8].mxu0 %vm224_vm0, %v3617_v9  ;;  %v3643_v33 = vld [vmem:[%s6723_s21 + $0x13d] sm:$0xff] }
 0x104   : > { %5957 = vmatprep.mubr.msk.f32.mxu1 %vm224_vm0, %v7238_v34  ;;  %6181 = vmatprep.mubr.msk.f32.mxu0 %vm224_vm0, %v3618_v10  ;;  %v4107_v34 = vld [vmem:[%s6723_s21 + $0x26] sm:$0xff]  ;;  %v4142_v9 = vld [vmem:[%s6723_s21 + $0x13e] sm:$0xff] }
 0x107   : > { %5958 = vmatmul.mubr.msk.f32.gmra.mrb[10].mxu1 %vm224_vm0, %v7249_v36  ;;  %6182 = vmatmul.mubr.msk.f32.gmra.mrb[10].mxu0 %vm224_vm0, %v3619_v11  ;;  %v4108_v36 = vld [vmem:[%s6723_s21 + $0x2e] sm:$0xff] }
 0x108   : > { %5960 = vmatprep.mubr.msk.f32.mxu1 %vm224_vm0, %v7252_v38  ;;  %6184 = vmatprep.mubr.msk.f32.mxu0 %vm224_vm0, %v3620_v12  ;;  %v4109_v38 = vld [vmem:[%s6723_s21 + $0x36] sm:$0xff] }
 0x10b   : > { %5961 = vmatmul.mubr.msk.f32.gmra.mrb[12].mxu1 %vm224_vm0, %v7263_v40  ;;  %6185 = vmatmul.mubr.msk.f32.gmra.mrb[12].mxu0 %vm224_vm0, %v3621_v13  ;;  %v4110_v40 = vld [vmem:[%s6723_s21 + $0x3e] sm:$0xff] }
 0x10c   : > { %5963 = vmatprep.mubr.msk.f32.mxu1 %vm224_vm0, %v7266_v42  ;;  %6187 = vmatprep.mubr.msk.f32.mxu0 %vm224_vm0, %v3622_v14  ;;  %v4111_v42 = vld [vmem:[%s6723_s21 + $0x46] sm:$0xff]  ;;  %v4645_v14 = vlaneseq }
 0x10f   : > { %5964 = vmatmul.mubr.msk.f32.gmra.mrb[14].mxu1 %vm224_vm0, %v7277_v43  ;;  %6188 = vmatmul.mubr.msk.f32.gmra.mrb[14].mxu0 %vm224_vm0, %v3623_v15  ;;  %v4112_v43 = vld [vmem:[%s6723_s21 + $0x4e] sm:$0xff]  ;;  %v4646_v15 = vshrl.u32 %v4645_v14, 7 }
 0x110   : > { %5966 = vmatprep.mubr.msk.f32.mxu1 %vm224_vm0, %v7280_v44  ;;  %6190 = vmatprep.mubr.msk.f32.mxu0 %vm224_vm0, %v3624_v16  ;;  %v4113_v44 = vld [vmem:[%s6723_s21 + $0x56] sm:$0xff] }
 0x113   : > { %5967 = vmatmul.mubr.msk.f32.gmra.mrb[16].mxu1 %vm224_vm0, %v7291_v45  ;;  %6191 = vmatmul.mubr.msk.f32.gmra.mrb[16].mxu0 %vm224_vm0, %v3625_v17  ;;  %v4114_v45 = vld [vmem:[%s6723_s21 + $0x5e] sm:$0xff] }
 0x114   : > { %5969 = vmatprep.mubr.msk.f32.mxu1 %vm224_vm0, %v7294_v46  ;;  %6193 = vmatprep.mubr.msk.f32.mxu0 %vm224_vm0, %v3626_v18  ;;  %v4115_v46 = vld [vmem:[%s6723_s21 + $0x66] sm:$0xff]  ;;  %v4651_v18 = vsub.s32 1, %v4646_v15 }
 0x117   : > { %5970 = vmatmul.mubr.msk.f32.gmra.mrb[18].mxu1 %vm224_vm0, %v7305_v47  ;;  %6194 = vmatmul.mubr.msk.f32.gmra.mrb[18].mxu0 %vm224_vm0, %v3627_v19  ;;  %v4116_v47 = vld [vmem:[%s6723_s21 + $0x6e] sm:$0xff]  ;;  %v4642_v19 = vld [vmem:[%s7967_s2] sm:$0x7] }
 0x118   : > { %5972 = vmatprep.mubr.msk.f32.mxu1 %vm224_vm0, %v7308_v48  ;;  %6196 = vmatprep.mubr.msk.f32.mxu0 %vm224_vm0, %v3628_v22  ;;  %v4117_v48 = vld [vmem:[%s6723_s21 + $0x76] sm:$0xff]  ;;  %v4647_v22 = vsub.s32 0, %v4646_v15 }
 0x11b   : > { %5973 = vmatmul.mubr.msk.f32.gmra.mrb[20].mxu1 %vm224_vm0, %v7319_v49  ;;  %6197 = vmatmul.mubr.msk.f32.gmra.mrb[20].mxu0 %vm224_vm0, %v3629_v24  ;;  %v4118_v49 = vld [vmem:[%s6723_s21 + $0x7e] sm:$0xff]  ;;  %v7629_v24 = vrot.slane %v4642_v19, %v4651_v18 }
 0x11c   : > { %5975 = vmatprep.mubr.msk.f32.mxu1 %vm224_vm0, %v7322_v50  ;;  %6199 = vmatprep.mubr.msk.f32.mxu0 %vm224_vm0, %v3630_v26  ;;  %v4119_v50 = vld [vmem:[%s6723_s21 + $0x86] sm:$0xff] }
 0x11f   : > { %5976 = vmatmul.mubr.msk.f32.gmra.mrb[22].mxu1 %vm224_vm0, %v7333_v51  ;;  %6200 = vmatmul.mubr.msk.f32.gmra.mrb[22].mxu0 %vm224_vm0, %v3631_v28  ;;  %v4120_v51 = vld [vmem:[%s6723_s21 + $0x8e] sm:$0xff]  ;;  %v7631_v28 = vrot.slane %v4642_v19, %v4647_v22 }
 0x120   : > { %5978 = vmatprep.mubr.msk.f32.mxu1 %vm224_vm0, %v7336_v52  ;;  %6202 = vmatprep.mubr.msk.f32.mxu0 %vm224_vm0, %v3632_v30  ;;  %v4121_v52 = vld [vmem:[%s6723_s21 + $0x96] sm:$0xff] }
 0x123   : > { %5979 = vmatmul.mubr.msk.f32.gmra.mrb[24].mxu1 %vm224_vm0, %v7347_v53  ;;  %6203 = vmatmul.mubr.msk.f32.gmra.mrb[24].mxu0 %vm224_vm0, %v3633_v32  ;;  %v4122_v53 = vld [vmem:[%s6723_s21 + $0x9e] sm:$0xff] }
 0x124   : > { %5981 = vmatprep.mubr.msk.f32.mxu1 %vm224_vm0, %v7350_v54  ;;  %6205 = vmatprep.mubr.msk.f32.mxu0 %vm224_vm0, %v3634_v35  ;;  %v4123_v54 = vld [vmem:[%s6723_s21 + $0xa6] sm:$0xff] }
 0x127   : > { %5982 = vmatmul.mubr.msk.f32.gmra.mrb[26].mxu1 %vm224_vm0, %v7361_v55  ;;  %6206 = vmatmul.mubr.msk.f32.gmra.mrb[26].mxu0 %vm224_vm0, %v3635_v37  ;;  %v4124_v55 = vld [vmem:[%s6723_s21 + $0xae] sm:$0xff]  ;;  %v4655_v37 = vsub.s32 2, %v4646_v15 }
 0x128   : > { %5984 = vmatprep.mubr.msk.f32.mxu1 %vm224_vm0, %v7364_v56  ;;  %6208 = vmatprep.mubr.msk.f32.mxu0 %vm224_vm0, %v3636_v39  ;;  %v4125_v56 = vld [vmem:[%s6723_s21 + $0xb6] sm:$0xff] }
 0x12b   : > { %5985 = vmatmul.mubr.msk.f32.gmra.mrb[28].mxu1 %vm224_vm0, %v7375_v57  ;;  %6209 = vmatmul.mubr.msk.f32.gmra.mrb[28].mxu0 %vm224_vm0, %v3637_v20  ;;  %v4126_v57 = vld [vmem:[%s6723_s21 + $0xbe] sm:$0xff]  ;;  %v7638_v20 = vrot.slane %v4642_v19, %v4655_v37 }
 0x12c   : > { %5987 = vmatprep.mubr.msk.f32.mxu1 %vm224_vm0, %v7378_v58  ;;  %6211 = vmatprep.mubr.msk.f32.mxu0 %vm224_vm0, %v3638_v41  ;;  %v4127_v58 = vld [vmem:[%s6723_s21 + $0xc6] sm:$0xff] }
 0x12f   : > { %5988 = vmatmul.mubr.msk.f32.gmra.mrb[30].mxu1 %vm224_vm0, %v7389_v59  ;;  %6212 = vmatmul.mubr.msk.f32.gmra.mrb[30].mxu0 %vm224_vm0, %v3639_v23  ;;  %v4128_v59 = vld [vmem:[%s6723_s21 + $0xce] sm:$0xff] }
 0x130   : > { %5990 = vmatprep.mubr.msk.f32.mxu1 %vm224_vm0, %v7392_v60  ;;  %6214 = vmatprep.mubr.msk.f32.mxu0 %vm224_vm0, %v3640_v21  ;;  %v4129_v60 = vld [vmem:[%s6723_s21 + $0xd6] sm:$0xff] }
 0x133   : > { %5991 = vmatmul.mubr.msk.f32.gmra.mrb[32].mxu1 %vm224_vm0, %v7403_v62  ;;  %6215 = vmatmul.mubr.msk.f32.gmra.mrb[32].mxu0 %vm224_vm0, %v3641_v25  ;;  %v4131_v62 = vld [vmem:[%s6723_s21 + $0xe6] sm:$0xff] }
 0x134   : > { %5993 = vmatprep.mubr.msk.f32.mxu1 %vm224_vm0, %v1646_v27  ;;  %6217 = vmatprep.mubr.msk.f32.mxu0 %vm224_vm0, %v3642_v29 }
 0x137   : > { %5994 = vmatmul.mubr.msk.f32.gmra.mrb[34].mxu1 %vm224_vm0, %v1647_v31  ;;  %6218 = vmatmul.mubr.msk.f32.gmra.mrb[34].mxu0 %vm224_vm0, %v3643_v33 }
 0x138   : > { %6222 = vmatprep.mubr.msk.f32.mxu0 %vm224_vm0, %v4107_v34  ;;  %4726 = vmatprep.mubr.f32.mxu1 %v7629_v24 }
 0x13b   : > { %6223 = vmatmul.mubr.msk.f32.vlgmr.msra.gmra.mrb[0].mxu0 %vm224_vm0, %v4108_v36 }
 0x13c   : > { %6225 = vmatprep.mubr.msk.f32.mxu0 %vm224_vm0, %v4109_v38 }
 0x13f   : > { %6226 = vmatmul.mubr.msk.f32.gmra.mrb[2].mxu0 %vm224_vm0, %v4110_v40 }
 0x140   : > { %6228 = vmatprep.mubr.msk.f32.mxu0 %vm224_vm0, %v4111_v42 }
 0x143   : > { %6229 = vmatmul.mubr.msk.f32.gmra.mrb[4].mxu0 %vm224_vm0, %v4112_v43 }
 0x144   : > { %6231 = vmatprep.mubr.msk.f32.mxu0 %vm224_vm0, %v4113_v44 }
 0x147   : > { %6232 = vmatmul.mubr.msk.f32.gmra.mrb[6].mxu0 %vm224_vm0, %v4114_v45 }
 0x148   : > { %6234 = vmatprep.mubr.msk.f32.mxu0 %vm224_vm0, %v4115_v46 }
 0x14b   : > { %6235 = vmatmul.mubr.msk.f32.gmra.mrb[8].mxu0 %vm224_vm0, %v4116_v47 }
 0x14c   : > { %6237 = vmatprep.mubr.msk.f32.mxu0 %vm224_vm0, %v4117_v48 }
 0x14f   : > { %6238 = vmatmul.mubr.msk.f32.gmra.mrb[10].mxu0 %vm224_vm0, %v4118_v49 }
 0x150   : > { %6240 = vmatprep.mubr.msk.f32.mxu0 %vm224_vm0, %v4119_v50 }
 0x153   : > { %6241 = vmatmul.mubr.msk.f32.gmra.mrb[12].mxu0 %vm224_vm0, %v4120_v51 }
 0x154   : > { %6243 = vmatprep.mubr.msk.f32.mxu0 %vm224_vm0, %v4121_v52 }
 0x157   : > { %6244 = vmatmul.mubr.msk.f32.gmra.mrb[14].mxu0 %vm224_vm0, %v4122_v53 }
 0x158   : > { %6246 = vmatprep.mubr.msk.f32.mxu0 %vm224_vm0, %v4123_v54 }
 0x15b   : > { %6247 = vmatmul.mubr.msk.f32.gmra.mrb[16].mxu0 %vm224_vm0, %v4124_v55 }
 0x15c   : > { %6249 = vmatprep.mubr.msk.f32.mxu0 %vm224_vm0, %v4125_v56 }
 0x15f   : > { %6250 = vmatmul.mubr.msk.f32.gmra.mrb[18].mxu0 %vm224_vm0, %v4126_v57 }
 0x160   : > { %6252 = vmatprep.mubr.msk.f32.mxu0 %vm224_vm0, %v4127_v58 }
 0x163   : > { %6253 = vmatmul.mubr.msk.f32.gmra.mrb[20].mxu0 %vm224_vm0, %v4128_v59 }
 0x164   : > { %6255 = vmatprep.mubr.msk.f32.mxu0 %vm224_vm0, %v4129_v60 }
 0x167   : > { %6256 = vmatmul.mubr.msk.f32.gmra.mrb[22].mxu0 %vm224_vm0, %v4130_v61 }
 0x168   : > { %6258 = vmatprep.mubr.msk.f32.mxu0 %vm224_vm0, %v4131_v62 }
 0x16b   : > { %6259 = vmatmul.mubr.msk.f32.gmra.mrb[24].mxu0 %vm224_vm0, %v4132_v63 }
 0x16c   : > { %6261 = vmatprep.mubr.msk.f32.mxu0 %vm224_vm0, %v4133_v0 }
 0x16f   : > { %6262 = vmatmul.mubr.msk.f32.gmra.mrb[26].mxu0 %vm224_vm0, %v4134_v1 }
 0x170   : > { %6264 = vmatprep.mubr.msk.f32.mxu0 %vm224_vm0, %v4135_v2 }
 0x173   : > { %6265 = vmatmul.mubr.msk.f32.gmra.mrb[28].mxu0 %vm224_vm0, %v4136_v3 }
 0x174   : > { %6267 = vmatprep.mubr.msk.f32.mxu0 %vm224_vm0, %v4137_v4 }
 0x177   : > { %6268 = vmatmul.mubr.msk.f32.gmra.mrb[30].mxu0 %vm224_vm0, %v4138_v5 }
 0x178   : > { %6270 = vmatprep.mubr.msk.f32.mxu0 %vm224_vm0, %v4139_v6 }
 0x17b   : > { %6271 = vmatmul.mubr.msk.f32.gmra.mrb[32].mxu0 %vm224_vm0, %v4140_v7 }
 0x17c   : > { %6273 = vmatprep.mubr.msk.f32.mxu0 %vm224_vm0, %v4141_v8 }
 0x17f   : > { %6274 = vmatmul.mubr.msk.f32.gmra.mrb[34].mxu0 %vm224_vm0, %v4142_v9 }
 0x1c6   : > { %v5944_v10 = vpop.f32.mrb[0].mxu1 }
 0x1c7   : > { %v1824_v11 = vpop.f32.mrb[1].mxu1 }
 0x1ca   : > { %v5947_v12 = vpop.f32.mrb[2].mxu1 }
 0x1cb   : > { %v1834_v13 = vpop.f32.mrb[3].mxu1 }
 0x1ce   : > { %v5950_v16 = vpop.f32.mrb[4].mxu1 }
 0x1cf   : > { %v1844_v17 = vpop.f32.mrb[5].mxu1 }
 0x1d2   : > { %v5953_v26 = vpop.f32.mrb[6].mxu1 }
 0x1d3   : > { %v1854_v30 = vpop.f32.mrb[7].mxu1 }
 0x1d6   : > { %v5956_v32 = vpop.f32.mrb[8].mxu1 }
 0x1d7   : > { %v7634_v35 = vpop.f32.mrb[9].mxu1 }
 0x1da   : > { %v7636_v39 = vpop.f32.mrb[10].mxu1 }
 0x1db   : > { %v7640_v41 = vpop.f32.mrb[11].mxu1 }
 0x1de   : > { %v7642_v23 = vpop.f32.mrb[12].mxu1 }
 0x1df   : > { %v7644_v21 = vpop.f32.mrb[13].mxu1 }
 0x1e2   : > { %v7646_v25 = vpop.f32.mrb[14].mxu1 }
 0x1e3   : > { %v7648_v27 = vpop.f32.mrb[15].mxu1 }
 0x1e6   : > { %v7650_v29 = vpop.f32.mrb[16].mxu1 }
 0x1e7   : > { %v7652_v31 = vpop.f32.mrb[17].mxu1 }
 0x1ea   : > { %v7654_v33 = vpop.f32.mrb[18].mxu1 }
 0x1eb   : > { %v7656_v34 = vpop.f32.mrb[19].mxu1 }
 0x1ee   : > { %v7658_v36 = vpop.f32.mrb[20].mxu1 }
 0x1ef   : > { %v7660_v38 = vpop.f32.mrb[21].mxu1 }
 0x1f2   : > { %v7662_v40 = vpop.f32.mrb[22].mxu1 }
 0x1f3   : > { %v7664_v42 = vpop.f32.mrb[23].mxu1 }
 0x1f6   : > { %v7666_v43 = vpop.f32.mrb[24].mxu1 }
 0x1f7   : > { %v7668_v44 = vpop.f32.mrb[25].mxu1 }
 0x1fa   : > { %v7670_v45 = vpop.f32.mrb[26].mxu1 }
 0x1fb   : > { %v7672_v46 = vpop.f32.mrb[27].mxu1 }
 0x1fe   : > { %v7674_v47 = vpop.f32.mrb[28].mxu1 }
 0x1ff   : > { %v7676_v48 = vpop.f32.mrb[29].mxu1 }
 0x202   : > { %v7678_v49 = vpop.f32.mrb[30].mxu1 }
 0x203   : > { %v7680_v50 = vpop.f32.mrb[31].mxu1 }
 0x206   : > { %v7682_v51 = vpop.f32.mrb[32].mxu1 }
 0x207   : > { %v7684_v52 = vpop.f32.mrb[33].mxu1 }
 0x20a   : > { %v7686_v53 = vpop.f32.mrb[34].mxu1 }
 0x20b   : > { %v7688_v54 = vpop.f32.mrb[35].mxu1 }
 0x20e   : > { %v6224_v55 = vpop.f32.mrb[0].mxu0 }
 0x20f   : > { %v7690_v56 = vadd.f32 %v6224_v55, %v5944_v10  ;;  %v4319_v57 = vpop.f32.mrb[1].mxu0 }
 0x210   : > { %v7692_v58 = vadd.f32 %v4319_v57, %v1824_v11 }
 0x211   : > { %v7696_v59 = vmul.f32 %v7690_v56, %v7690_v56 }
 0x212   : > { %v7702_v61 = vmul.f32 %v7692_v58, %v7692_v58  ;;  %v6227_v62 = vpop.f32.mrb[2].mxu0 }
 0x213   : > { %v7704_v63 = vadd.f32 %v6227_v62, %v5947_v12  ;;  %v4329_v0 = vpop.f32.mrb[3].mxu0 }
 0x214   : > { %v7708_v2 = vadd.f32 %v4329_v0, %v1834_v13 }
 0x215   : > { %v7712_v3 = vmul.f32 %v7704_v63, %v7704_v63 }
 0x216   : > { %v7718_v5 = vmul.f32 %v7708_v2, %v7708_v2  ;;  %v6230_v6 = vpop.f32.mrb[4].mxu0 }
 0x217   : > { %v7720_v7 = vadd.f32 %v6230_v6, %v5950_v16  ;;  %v4339_v8 = vpop.f32.mrb[5].mxu0 }
 0x218   : > { %v7724_v10 = vadd.f32 %v4339_v8, %v1844_v17 }
 0x219   : > { %v7728_v11 = vmul.f32 %v7720_v7, %v7720_v7 }
 0x21a   : > { %v7734_v13 = vmul.f32 %v7724_v10, %v7724_v10  ;;  %v6233_v14 = vpop.f32.mrb[6].mxu0 }
 0x21b   : > { %v7736_v15 = vadd.f32 %v6233_v14, %v5953_v26  ;;  %v4349_v16 = vpop.f32.mrb[7].mxu0 }
 0x21c   : > { %v7740_v17 = vadd.f32 %v4349_v16, %v1854_v30 }
 0x21d   : > { %v7744_v19 = vmul.f32 %v7736_v15, %v7736_v15 }
 0x21e   : > { %v7750_v37 = vmul.f32 %v7740_v17, %v7740_v17  ;;  %v6236_v55 = vpop.f32.mrb[8].mxu0 }
 0x21f   : > { %v7752_v26 = vadd.f32 %v6236_v55, %v5956_v32  ;;  %v4359_v57 = vpop.f32.mrb[9].mxu0 }
 0x220   : > { %v7757_v30 = vadd.f32 %v4359_v57, %v7634_v35 }
 0x221   : > { %v7761_v0 = vmul.f32 %v7752_v26, %v7752_v26 }
 0x222   : > { %v7767_v8 = vmul.f32 %v7757_v30, %v7757_v30  ;;  %v6239_v32 = vpop.f32.mrb[10].mxu0 }
 0x223   : > { %v7770_v14 = vadd.f32 %v6239_v32, %v7636_v39  ;;  %v4369_v16 = vpop.f32.mrb[11].mxu0 }
 0x224   : > { %v7775_v55 = vadd.f32 %v4369_v16, %v7640_v41 }
 0x225   : > { %v7779_v57 = vmul.f32 %v7770_v14, %v7770_v14 }
 0x226   : > { %v7785_v18 = vmul.f32 %v7775_v55, %v7775_v55  ;;  %v6242_v39 = vpop.f32.mrb[12].mxu0 }
 0x227   : > { %v7788_v32 = vadd.f32 %v6242_v39, %v7642_v23  ;;  %v4379_v9 = vpop.f32.mrb[13].mxu0 }
 0x228   : > { %7973 = vst [vmem:[#allocation3_spill] sm:$0xff] %v7785_v18  ;;  %v7793_v16 = vadd.f32 %v4379_v9, %v7644_v21 }
 0x229   : > { %v7797_v35 = vmul.f32 %v7788_v32, %v7788_v32 }
 0x22a   : > { %v7803_v62 = vmul.f32 %v7793_v16, %v7793_v16  ;;  %v6245_v23 = vpop.f32.mrb[14].mxu0 }
 0x22b   : > { %7974 = vst [vmem:[#allocation4_spill] sm:$0xff] %v7797_v35  ;;  %v7806_v39 = vadd.f32 %v6245_v23, %v7646_v25  ;;  %v4389_v6 = vpop.f32.mrb[15].mxu0 }
 0x22c   : > { %7975 = vst [vmem:[#allocation5_spill] sm:$0xff] %v7803_v62  ;;  %v7811_v9 = vadd.f32 %v4389_v6, %v7648_v27 }
 0x22d   : > { %v7815_v41 = vmul.f32 %v7806_v39, %v7806_v39 }
 0x22e   : > { %v7821_v22 = vmul.f32 %v7811_v9, %v7811_v9  ;;  %v6248_v25 = vpop.f32.mrb[16].mxu0 }
 0x22f   : > { %v6390_v23 = vadd.f32 %v6248_v25, %v7650_v29  ;;  %v4399_v12 = vpop.f32.mrb[17].mxu0 }
 0x230   : > { %v6391_v27 = vadd.f32 %v4399_v12, %v7652_v31  ;;  %v7976_v31 = vpack.c.bf16 %v7690_v56, %v7692_v58 }
 0x231   : > { %v7827_v6 = vmul.f32 %v6390_v23, %v6390_v23 }
 0x232   : > { %v6298_v4 = vpack.c.bf16 %v6390_v23, %v6391_v27  ;;  %v7829_v60 = vmul.f32 %v6391_v27, %v6391_v27  ;;  %v6251_v62 = vpop.f32.mrb[18].mxu0 }
 0x233   : > { %v6392_v1 = vadd.f32 %v6251_v62, %v7654_v33  ;;  %v4409_v35 = vpop.f32.mrb[19].mxu0 }
 0x234   : > { %v6393_v18 = vadd.f32 %v4409_v35, %v7656_v34  ;;  %6299 = vmatprep.subr.bf16.mxu1 %v6298_v4  ;;  %v6336_v29 = vpack.c.bf16 %v7827_v6, %v7829_v60  ;;  %v7977_v35 = vpack.c.bf16 %v7704_v63, %v7708_v2  ;;  %v7986_v60 = vpack.c.bf16 %v7728_v11, %v7734_v13  ;;  %v7992_v11 = vld [vmem:[#allocation5_spill] sm:$0xff] }
 0x235   : > { %v7835_v25 = vmul.f32 %v6392_v1, %v6392_v1  ;;  %6301 = vmatpush3.bf16.msra.mxu1 %v7976_v31 }
 0x236   : > { %v6302_v12 = vpack.c.bf16 %v6392_v1, %v6393_v18  ;;  %v7840_v23 = vmul.f32 %v6393_v18, %v6393_v18  ;;  %v6254_v27 = vpop.f32.mrb[20].mxu0 }
 0x237   : > { %v6394_v21 = vadd.f32 %v6254_v27, %v7658_v36  ;;  %v4419_v33 = vpop.f32.mrb[21].mxu0  ;;  %v7978_v27 = vpack.c.bf16 %v7720_v7, %v7724_v10 }
 0x238   : > { %v6395_v62 = vadd.f32 %v4419_v33, %v7660_v38  ;;  %6303 = vmatprep.subr.bf16.mxu1 %v6302_v12  ;;  %v6340_v34 = vpack.c.bf16 %v7835_v25, %v7840_v23 }
 0x239   : > { %v7846_v4 = vmul.f32 %v6394_v21, %v6394_v21  ;;  %6305 = vmatpush3.bf16.msra.mxu1 %v7977_v35 }
 0x23a   : > { %v6306_v56 = vpack.c.bf16 %v6394_v21, %v6395_v62  ;;  %v7851_v58 = vmul.f32 %v6395_v62, %v6395_v62  ;;  %v6257_v1 = vpop.f32.mrb[22].mxu0 }
 0x23b   : > { %v6396_v18 = vadd.f32 %v6257_v1, %v7662_v40  ;;  %v4429_v36 = vpop.f32.mrb[23].mxu0 }
 0x23c   : > { %v6397_v31 = vadd.f32 %v4429_v36, %v7664_v42  ;;  %6307 = vmatprep.subr.bf16.mxu1 %v6306_v56  ;;  %v6344_v38 = vpack.c.bf16 %v7846_v4, %v7851_v58  ;;  %v7979_v56 = vpack.c.bf16 %v7736_v15, %v7740_v17 }
 0x23d   : > { %v7857_v12 = vmul.f32 %v6396_v18, %v6396_v18  ;;  %6309 = vmatpush3.bf16.msra.mxu1 %v7978_v27  ;;  %v7980_v27 = vpack.c.bf16 %v7752_v26, %v7757_v30 }
 0x23e   : > { %v6310_v63 = vpack.c.bf16 %v6396_v18, %v6397_v31  ;;  %v7862_v2 = vmul.f32 %v6397_v31, %v6397_v31  ;;  %v6260_v21 = vpop.f32.mrb[24].mxu0 }
 0x23f   : > { %v6398_v33 = vadd.f32 %v6260_v21, %v7666_v43  ;;  %v4439_v40 = vpop.f32.mrb[25].mxu0 }
 0x240   : > { %v6399_v62 = vadd.f32 %v4439_v40, %v7668_v44  ;;  %6311 = vmatprep.subr.bf16.mxu1 %v6310_v63  ;;  %v6348_v42 = vpack.c.bf16 %v7857_v12, %v7862_v2 }
 0x241   : > { %v7868_v35 = vmul.f32 %v6398_v33, %v6398_v33  ;;  %6313 = vmatpush3.bf16.msra.mxu1 %v7979_v56 }
 0x242   : > { %v6314_v7 = vpack.c.bf16 %v6398_v33, %v6399_v62  ;;  %v7873_v10 = vmul.f32 %v6399_v62, %v6399_v62  ;;  %v6263_v1 = vpop.f32.mrb[26].mxu0  ;;  %v7981_v62 = vpack.c.bf16 %v7770_v14, %v7775_v55 }
 0x243   : > { %v6400_v18 = vadd.f32 %v6263_v1, %v7670_v45  ;;  %v4449_v43 = vpop.f32.mrb[27].mxu0 }
 0x244   : > { %v6401_v36 = vadd.f32 %v4449_v43, %v7672_v46  ;;  %6315 = vmatprep.subr.bf16.mxu1 %v6314_v7  ;;  %v6352_v44 = vpack.c.bf16 %v7868_v35, %v7873_v10 }
 0x245   : > { %v7879_v31 = vmul.f32 %v6400_v18, %v6400_v18  ;;  %6317 = vmatpush3.bf16.msra.mxu1 %v7980_v27 }
 0x246   : > { %v6318_v15 = vpack.c.bf16 %v6400_v18, %v6401_v36  ;;  %v4831_v17 = vmul.f32 %v6401_v36, %v6401_v36  ;;  %v6266_v63 = vpop.f32.mrb[28].mxu0 }
 0x247   : > { %v6402_v21 = vadd.f32 %v6266_v63, %v7674_v47  ;;  %v4459_v33 = vpop.f32.mrb[29].mxu0 }
 0x248   : > { %v6403_v45 = vadd.f32 %v4459_v33, %v7676_v48  ;;  %6319 = vmatprep.subr.bf16.mxu1 %v6318_v15  ;;  %v6356_v46 = vpack.c.bf16 %v7879_v31, %v4831_v17  ;;  %v7982_v48 = vpack.c.bf16 %v7788_v32, %v7793_v16  ;;  %v6684_v32 = vmov 0.0|0.0  }
 0x249   : > { %v4834_v40 = vmul.f32 %v6402_v21, %v6402_v21  ;;  %6321 = vmatpush3.bf16.msra.mxu1 %v7981_v62  ;;  %v6686_v62 = vmov 0.0  }
 0x24a   : > { %v6322_v56 = vpack.c.bf16 %v6402_v21, %v6403_v45  ;;  %v4833_v7 = vmul.f32 %v6403_v45, %v6403_v45  ;;  %v6269_v26 = vpop.f32.mrb[30].mxu0 }
 0x24b   : > { %v6404_v30 = vadd.f32 %v6269_v26, %v7678_v49  ;;  %v4469_v1 = vpop.f32.mrb[31].mxu0 }
 0x24c   : > { %v6405_v18 = vadd.f32 %v4469_v1, %v7680_v50  ;;  %6323 = vmatprep.subr.bf16.mxu1 %v6322_v56  ;;  %v6360_v47 = vpack.c.bf16 %v4834_v40, %v4833_v7  ;;  %v7983_v50 = vpack.c.bf16 %v7806_v39, %v7811_v9 }
 0x24d   : > { %v4836_v43 = vmul.f32 %v6404_v30, %v6404_v30  ;;  %6325 = vmatpush3.bf16.msra.mxu1 %v7982_v48 }
 0x24e   : > { %v6326_v36 = vpack.c.bf16 %v6404_v30, %v6405_v18  ;;  %v4835_v31 = vmul.f32 %v6405_v18, %v6405_v18  ;;  %v6272_v27 = vpop.f32.mrb[32].mxu0 }
 0x24f   : > { %v6406_v14 = vadd.f32 %v6272_v27, %v7682_v51  ;;  %v4479_v55 = vpop.f32.mrb[33].mxu0 }
 0x250   : > { %v6407_v15 = vadd.f32 %v4479_v55, %v7684_v52  ;;  %6327 = vmatprep.subr.bf16.mxu1 %v6326_v36  ;;  %v6364_v49 = vpack.c.bf16 %v4836_v43, %v4835_v31 }
 0x251   : > { %v4838_v17 = vmul.f32 %v6406_v14, %v6406_v14  ;;  %6329 = vmatpush3.bf16.msra.mxu1 %v7983_v50 }
 0x252   : > { %v6331_v63 = vpack.c.bf16 %v6406_v14, %v6407_v15  ;;  %v4837_v21 = vmul.f32 %v6407_v15, %v6407_v15  ;;  %v6275_v33 = vpop.f32.mrb[34].mxu0  ;;  %6330 = vmatprep.subr.bf16.mxu1 %v6684_v32 }
 0x253   : > { %v6408_v16 = vadd.f32 %v6275_v33, %v7686_v53  ;;  %v4489_v45 = vpop.f32.mrb[35].mxu0  ;;  %v7984_v53 = vpack.c.bf16 %v7696_v59, %v7702_v61  ;;  %v7988_v59 = vpack.c.bf16 %v7761_v0, %v7767_v8  ;;  %v7989_v61 = vld [vmem:[#allocation3_spill] sm:$0xff] }
 0x254   : > { %v6369_v40 = vpack.c.bf16 %v4838_v17, %v4837_v21  ;;  %v6409_v51 = vadd.f32 %v4489_v45, %v7688_v54  ;;  %4727 = vmatmul.mubr.f32.vlgmr.msra.gmra.mrb[36].mxu1 %v7631_v28  ;;  %v7985_v54 = vpack.c.bf16 %v7712_v3, %v7718_v5  ;;  %v7990_v3 = vpack.c.bf16 %v7779_v57, %v7989_v61  ;;  %v7991_v5 = vld [vmem:[#allocation4_spill] sm:$0xff]  ;;  %v4643_v57 = vld [vmem:[%s7968_s3] sm:$0x1] }
 0x255   : > { %v4840_v52 = vmul.f32 %v6408_v16, %v6408_v16  ;;  %6332 = vmatpush3.bf16.msra.mxu1 %v6331_v63  ;;  %6284 = vmatprep.mubr.msk.f32.mxu1 %vm6685_vm1, %v6686_v62  ;;  %v7993_v13 = vpack.c.bf16 %v7991_v5, %v7992_v11 }
 0x256   : > { %v6334_v39 = vpack.c.bf16 %v6408_v16, %v6409_v51  ;;  %v4839_v9 = vmul.f32 %v6409_v51, %v6409_v51  ;;  %6333 = vmatprep.subr.bf16.mxu1 %v6684_v32 }
 0x258   : > { %v6372_v56 = vpack.c.bf16 %v4840_v52, %v4839_v9 }
 0x259   : > { %6335 = vmatpush3.bf16.msra.mxu1 %v6334_v39 }
 0x25a   : > { %6337 = vmatprep.subr.bf16.mxu1 %v6336_v29 }
 0x25c   : > { %6285 = vmatmul.mubr.msk.f32.vlgmr.msra.gmra.mrb[38].mxu1 %vm4659_vm2, %v7638_v20 }
 0x25d   : > { %6339 = vmatpush3.bf16.msra.mxu1 %v7984_v53  ;;  %4905 = vmatprep.mubr.f32.mxu1 %v7629_v24  ;;  %v7987_v24 = vpack.c.bf16 %v7744_v19, %v7750_v37  ;;  %v7994_v19 = vpack.c.bf16 %v7815_v41, %v7821_v22 }
 0x25e   : > { %6341 = vmatprep.subr.bf16.mxu1 %v6340_v34 }
 0x261   : > { %6343 = vmatpush3.bf16.msra.mxu1 %v7985_v54 }
 0x262   : > { %6345 = vmatprep.subr.bf16.mxu1 %v6344_v38 }
 0x265   : > { %6347 = vmatpush3.bf16.msra.mxu1 %v7986_v60 }
 0x266   : > { %6349 = vmatprep.subr.bf16.mxu1 %v6348_v42 }
 0x269   : > { %6351 = vmatpush3.bf16.msra.mxu1 %v7987_v24 }
 0x26a   : > { %6353 = vmatprep.subr.bf16.mxu1 %v6352_v44 }
 0x26d   : > { %6355 = vmatpush3.bf16.msra.mxu1 %v7988_v59 }
 0x26e   : > { %6357 = vmatprep.subr.bf16.mxu1 %v6356_v46 }
 0x271   : > { %6359 = vmatpush3.bf16.msra.mxu1 %v7990_v3 }
 0x272   : > { %6361 = vmatprep.subr.bf16.mxu1 %v6360_v47 }
 0x275   : > { %6363 = vmatpush3.bf16.msra.mxu1 %v7993_v13 }
 0x276   : > { %6365 = vmatprep.subr.bf16.mxu1 %v6364_v49 }
 0x279   : > { %6367 = vmatpush3.bf16.msra.mxu1 %v7994_v19 }
 0x27a   : > { %6368 = vmatprep.subr.bf16.mxu1 %v6684_v32 }
 0x27c   : > { %4906 = vmatmul.mubr.f32.vlgmr.msra.gmra.mrb[40].mxu1 %v7631_v28 }
 0x27d   : > { %6370 = vmatpush3.bf16.msra.mxu1 %v6369_v40  ;;  %6295 = vmatprep.mubr.msk.f32.mxu1 %vm6685_vm1, %v6686_v62 }
 0x27e   : > { %6371 = vmatprep.subr.bf16.mxu1 %v6684_v32 }
 0x281   : > { %6373 = vmatpush3.bf16.msra.mxu1 %v6372_v56 }
 0x284   : > { %6296 = vmatmul.mubr.msk.f32.vlgmr.msra.gmra.mrb[42].mxu1 %vm4659_vm2, %v7638_v20  ;;  %v4804_v20 = vld [vmem:[%s7969_s4] sm:$0x1] }
 0x327   : > { %v5724_v37 = vpop.f32.mrb[36].mxu1 }
 0x328   : > { %v5725_v0 = vpop.f32.mrb[37].mxu1 }
 0x329   : > { %v5726_v8 = vadd.f32 %v5725_v0, %v5724_v37 }
 0x32f   : > { %v4798_v22 = vpop.f32.mrb[38].mxu1 }
 0x330   : > { %v4799_v41 = vadd.f32 %v5726_v8, %v4798_v22  ;;  %v6286_v6 = vpop.f32.mrb[39].mxu1 }
 0x332   : > { %v4802_v29 = vadd.f32 %v4799_v41, %v4643_v57 }
 0x334   : > { %4803 = vst [vmem:[%s7968_s3] sm:$0x1] %v4802_v29 }
 0x34f   : > { %v5764_v28 = vpop.f32.mrb[40].mxu1 }
 0x350   : > { %v5765_v25 = vpop.f32.mrb[41].mxu1 }
 0x351   : > { %v5766_v23 = vadd.f32 %v5765_v25, %v5764_v28 }
 0x357   : > { %v4977_v34 = vpop.f32.mrb[42].mxu1 }
 0x358   : > { %v4978_v4 = vadd.f32 %v5766_v23, %v4977_v34  ;;  %v6297_v58 = vpop.f32.mrb[43].mxu1 }
 0x35a   : > { %v4981_v38 = vadd.f32 %v4978_v4, %v4804_v20 }
 0x35c   : > { %4982 = vst [vmem:[%s7969_s4] sm:$0x1] %v4981_v38 }
 0x35d PF: > { %s15_s15 = sadd.s32 1, %s6681_s15  }
 0x35e   : > { %p12_p5 = scmp.ge.s32.totalorder %s15_s15, 4  }
 0x360   :  { %14 = sbr.rel (!%p12_p5) target bundleno = 1 (0x1), region = 78 }

// kernel: block_forward.3
= control target key start
LH: loop header
LB: loop body
LE: loop exit
PB: predicated region body
PF: predicated region fallthrough
CT: control target
= control target key end

     0   :  { %s6415_s15 = smov 0   ;;  %s7490_s0 = inlined_call_operand.vmem [shape: f32[2,328,8], index: 0, kind: input, shape index: {}]   ;;  %s7491_s1 = inlined_call_operand.vmem [shape: f32[9,8,128], index: 1, kind: input, shape index: {}]   ;;  %s7492_s2 = inlined_call_operand.vmem [shape: f32[1,128], index: 2, kind: input, shape index: {}]   ;;  %s7493_s3 = inlined_call_operand.vmem [shape: f32[1,128], index: 3, kind: input, shape index: {}]   ;;  %s7494_s4 = inlined_call_operand.vmem [shape: f32[2,288,128], index: 4, kind: output, shape index: {}]  }
   0x1 LB: > { %s4902_s16 = sadd.s32 4294967295, %s6388_s15   ;;  %p4906_p0 = scmp.ge.s32.totalorder %s6388_s15, 1  ;;  %s6388_s15 = sphi %s6415_s15, %s14_s15  }
   0x2   : > { %p162_p1 = scmp.lt.s32.totalorder %s6388_s15, 3 }
   0x4   : > { %p163_p2 = pnand %p4906_p0, %p162_p1 }
   0x5   : > { %v234_v0 = vld [vmem:[%s7491_s1] sm:$0xff] (!%p163_p2)  ;;  %p188_p3 = scmp.lt.s32.totalorder (!%p163_p2), %s4902_s16, 1  ;;  %v4945_v2 = vld [vmem:[%s7491_s1 + $0x8] sm:$0xff] (!%p163_p2)  ;;  %vm235_vm0 = vcmask (!%p163_p2), 64512   ;;  %v6460_v10 = vld [vmem:[%s7491_s1 + $0x30] sm:$0xff] (!%p163_p2) }
   0x6   : > { %166 = sbr.rel (%p163_p2) target bundleno = 563 (0x233), region = 36  ;;  %v6429_v1 = vld [vmem:[%s7491_s1 + $0x20] sm:$0xff] (!%p163_p2)  ;;  %5578 = vmatprep.subr.mxu1 (!%p163_p2), %v234_v0  ;;  %v5093_v3 = vld [vmem:[%s7491_s1 + $0x28] sm:$0xff] (!%p163_p2)  ;;  %v6465_v11 = vld [vmem:[%s7491_s1 + $0x10] sm:$0xff] (!%p163_p2) }
   0x7   : > { %5802 = vmatprep.subr.mxu0 (!%p163_p2), %v6429_v1  ;;  %5579 = vmatpush3.msra.mxu1 (!%p163_p2), %v234_v0  ;;  %v6544_v48 = vld [vmem:[%s7491_s1 + $0x38] sm:$0xff] (!%p163_p2) }
   0x8   : > { %5803 = vmatpush3.msra.mxu0 (!%p163_p2), %v6429_v1  ;;  %5634 = vmatprep.subr.mxu1 (!%p163_p2), %v4945_v2 }
   0x9   : > { %5858 = vmatprep.subr.mxu0 (!%p163_p2), %v5093_v3 }
   0xd   : > { %s7496_s16 = smov (!%p188_p3, %s4902_s16), 1 }
   0xe   : > { %s6372_s25 = smul.u32 328, %s7496_s16 }
   0xf   : > { %s6373_s19 = smul.u32 288, %s7496_s16 }
  0x10   : > { %s6445_s28 = scalar_lea.vmem %s7490_s0, %s6372_s25 }
  0x11   : > { %v198_v4 = vld [vmem:[%s6445_s28] sm:$0xff]  ;;  %v2122_v5 = vld [vmem:[%s6445_s28 + $0x13] sm:$0xff]  ;;  %v199_v6 = vld [vmem:[%s6445_s28 + $0x8] sm:$0xff]  ;;  %s7373_s22 = scalar_lea.vmem %s7494_s4, %s6373_s19 }
  0x12   : > { %5580 = vmatprep.mubr.msk.f32.mxu1 %vm235_vm0, %v198_v4  ;;  %5804 = vmatprep.mubr.msk.f32.mxu0 %vm235_vm0, %v2122_v5  ;;  %v2123_v7 = vld [vmem:[%s6445_s28 + $0x1b] sm:$0xff]  ;;  %v200_v8 = vld [vmem:[%s6445_s28 + $0x10] sm:$0xff]  ;;  %v2124_v9 = vld [vmem:[%s6445_s28 + $0x23] sm:$0xff] }
  0x13   : > { %5581 = vmatmul.mubr.msk.f32.vlgmr.msra.gmra.mrb[0].mxu1 %vm235_vm0, %v199_v6  ;;  %5805 = vmatmul.mubr.msk.f32.vlgmr.msra.gmra.mrb[0].mxu0 %vm235_vm0, %v2123_v7  ;;  %v201_v12 = vld [vmem:[%s6445_s28 + $0x18] sm:$0xff]  ;;  %v2125_v13 = vld [vmem:[%s6445_s28 + $0x2b] sm:$0xff]  ;;  %v202_v14 = vld [vmem:[%s6445_s28 + $0x20] sm:$0xff] }
  0x14   : > { %5635 = vmatpush3.msra.mxu1 %v4945_v2  ;;  %5859 = vmatpush3.msra.mxu0 %v5093_v3  ;;  %v2126_v15 = vld [vmem:[%s6445_s28 + $0x33] sm:$0xff]  ;;  %v203_v16 = vld [vmem:[%s6445_s28 + $0x28] sm:$0xff]  ;;  %v2127_v17 = vld [vmem:[%s6445_s28 + $0x3b] sm:$0xff] }
  0x15   : > { %5583 = vmatprep.mubr.msk.f32.mxu1 %vm235_vm0, %v200_v8  ;;  %5807 = vmatprep.mubr.msk.f32.mxu0 %vm235_vm0, %v2124_v9  ;;  %v204_v18 = vld [vmem:[%s6445_s28 + $0x30] sm:$0xff]  ;;  %v2128_v19 = vld [vmem:[%s6445_s28 + $0x43] sm:$0xff]  ;;  %v205_v20 = vld [vmem:[%s6445_s28 + $0x38] sm:$0xff] }
  0x16   : > { %5914 = vmatprep.subr.mxu0 %v6460_v10  ;;  %5690 = vmatprep.subr.mxu1 %v6465_v11  ;;  %v2129_v21 = vld [vmem:[%s6445_s28 + $0x4b] sm:$0xff]  ;;  %v206_v22 = vld [vmem:[%s6445_s28 + $0x40] sm:$0xff]  ;;  %v2130_v23 = vld [vmem:[%s6445_s28 + $0x53] sm:$0xff] }
  0x17   : > { %5584 = vmatmul.mubr.msk.f32.gmra.mrb[2].mxu1 %vm235_vm0, %v201_v12  ;;  %5808 = vmatmul.mubr.msk.f32.gmra.mrb[2].mxu0 %vm235_vm0, %v2125_v13  ;;  %v207_v24 = vld [vmem:[%s6445_s28 + $0x48] sm:$0xff]  ;;  %v2131_v25 = vld [vmem:[%s6445_s28 + $0x5b] sm:$0xff]  ;;  %v208_v26 = vld [vmem:[%s6445_s28 + $0x50] sm:$0xff] }
  0x18   : > { %5586 = vmatprep.mubr.msk.f32.mxu1 %vm235_vm0, %v202_v14  ;;  %5810 = vmatprep.mubr.msk.f32.mxu0 %vm235_vm0, %v2126_v15  ;;  %v2132_v27 = vld [vmem:[%s6445_s28 + $0x63] sm:$0xff]  ;;  %v209_v28 = vld [vmem:[%s6445_s28 + $0x58] sm:$0xff]  ;;  %v2133_v29 = vld [vmem:[%s6445_s28 + $0x6b] sm:$0xff] }
  0x19   : > { %v210_v30 = vld [vmem:[%s6445_s28 + $0x60] sm:$0xff]  ;;  %v2134_v31 = vld [vmem:[%s6445_s28 + $0x73] sm:$0xff]  ;;  %v211_v32 = vld [vmem:[%s6445_s28 + $0x68] sm:$0xff] }
  0x1a   : > { %v2135_v33 = vld [vmem:[%s6445_s28 + $0x7b] sm:$0xff]  ;;  %v212_v34 = vld [vmem:[%s6445_s28 + $0x70] sm:$0xff]  ;;  %v2136_v35 = vld [vmem:[%s6445_s28 + $0x83] sm:$0xff] }
  0x1b   : > { %5587 = vmatmul.mubr.msk.f32.gmra.mrb[4].mxu1 %vm235_vm0, %v203_v16  ;;  %5811 = vmatmul.mubr.msk.f32.gmra.mrb[4].mxu0 %vm235_vm0, %v2127_v17  ;;  %v213_v36 = vld [vmem:[%s6445_s28 + $0x78] sm:$0xff]  ;;  %v2137_v37 = vld [vmem:[%s6445_s28 + $0x8b] sm:$0xff]  ;;  %v214_v38 = vld [vmem:[%s6445_s28 + $0x80] sm:$0xff] }
  0x1c   : > { %5589 = vmatprep.mubr.msk.f32.mxu1 %vm235_vm0, %v204_v18  ;;  %5813 = vmatprep.mubr.msk.f32.mxu0 %vm235_vm0, %v2128_v19  ;;  %v2138_v39 = vld [vmem:[%s6445_s28 + $0x93] sm:$0xff]  ;;  %v215_v40 = vld [vmem:[%s6445_s28 + $0x88] sm:$0xff]  ;;  %v2139_v41 = vld [vmem:[%s6445_s28 + $0x9b] sm:$0xff] }
  0x1d   : > { %v216_v42 = vld [vmem:[%s6445_s28 + $0x90] sm:$0xff]  ;;  %v217_v44 = vld [vmem:[%s6445_s28 + $0x98] sm:$0xff]  ;;  %v218_v46 = vld [vmem:[%s6445_s28 + $0xa0] sm:$0xff] }
  0x1e   : > { %v2621_v43 = vld [vmem:[%s6445_s28 + $0x14] sm:$0xff]  ;;  %v2622_v45 = vld [vmem:[%s6445_s28 + $0x1c] sm:$0xff]  ;;  %v6539_v47 = vld [vmem:[%s6445_s28 + $0x24] sm:$0xff] }
  0x1f   : > { %5590 = vmatmul.mubr.msk.f32.gmra.mrb[6].mxu1 %vm235_vm0, %v205_v20  ;;  %5814 = vmatmul.mubr.msk.f32.gmra.mrb[6].mxu0 %vm235_vm0, %v2129_v21  ;;  %v219_v49 = vld [vmem:[%s6445_s28 + $0xa8] sm:$0xff]  ;;  %v220_v51 = vld [vmem:[%s6445_s28 + $0xb0] sm:$0xff]  ;;  %v221_v53 = vld [vmem:[%s6445_s28 + $0xb8] sm:$0xff] }
  0x20   : > { %5592 = vmatprep.mubr.msk.f32.mxu1 %vm235_vm0, %v206_v22  ;;  %5816 = vmatprep.mubr.msk.f32.mxu0 %vm235_vm0, %v2130_v23  ;;  %v6552_v50 = vld [vmem:[%s6445_s28 + $0x2c] sm:$0xff]  ;;  %v6558_v52 = vld [vmem:[%s6445_s28 + $0x34] sm:$0xff]  ;;  %v6569_v54 = vld [vmem:[%s6445_s28 + $0x3c] sm:$0xff] }
  0x21   : > { %v222_v55 = vld [vmem:[%s6445_s28 + $0xc0] sm:$0xff]  ;;  %v223_v57 = vld [vmem:[%s6445_s28 + $0xc8] sm:$0xff]  ;;  %v224_v59 = vld [vmem:[%s6445_s28 + $0xd0] sm:$0xff] }
  0x22   : > { %v6573_v56 = vld [vmem:[%s6445_s28 + $0x44] sm:$0xff]  ;;  %v6583_v58 = vld [vmem:[%s6445_s28 + $0x4c] sm:$0xff]  ;;  %v6587_v60 = vld [vmem:[%s6445_s28 + $0x54] sm:$0xff] }
  0x23   : > { %5593 = vmatmul.mubr.msk.f32.gmra.mrb[8].mxu1 %vm235_vm0, %v207_v24  ;;  %5817 = vmatmul.mubr.msk.f32.gmra.mrb[8].mxu0 %vm235_vm0, %v2131_v25  ;;  %v225_v61 = vld [vmem:[%s6445_s28 + $0xd8] sm:$0xff]  ;;  %v226_v63 = vld [vmem:[%s6445_s28 + $0xe0] sm:$0xff]  ;;  %v227_v2 = vld [vmem:[%s6445_s28 + $0xe8] sm:$0xff] }
  0x24   : > { %5595 = vmatprep.mubr.msk.f32.mxu1 %vm235_vm0, %v208_v26  ;;  %5819 = vmatprep.mubr.msk.f32.mxu0 %vm235_vm0, %v2132_v27  ;;  %v6597_v62 = vld [vmem:[%s6445_s28 + $0x5c] sm:$0xff]  ;;  %v6601_v0 = vld [vmem:[%s6445_s28 + $0x64] sm:$0xff]  ;;  %v6611_v3 = vld [vmem:[%s6445_s28 + $0x6c] sm:$0xff] }
  0x25   : > { %v228_v4 = vld [vmem:[%s6445_s28 + $0xf0] sm:$0xff]  ;;  %v229_v6 = vld [vmem:[%s6445_s28 + $0xf8] sm:$0xff]  ;;  %v230_v8 = vld [vmem:[%s6445_s28 + $0x100] sm:$0xff] }
  0x26   : > { %v6615_v5 = vld [vmem:[%s6445_s28 + $0x74] sm:$0xff]  ;;  %v6625_v7 = vld [vmem:[%s6445_s28 + $0x7c] sm:$0xff]  ;;  %v6629_v9 = vld [vmem:[%s6445_s28 + $0x84] sm:$0xff] }
  0x27   : > { %5596 = vmatmul.mubr.msk.f32.gmra.mrb[10].mxu1 %vm235_vm0, %v209_v28  ;;  %5820 = vmatmul.mubr.msk.f32.gmra.mrb[10].mxu0 %vm235_vm0, %v2133_v29  ;;  %v6639_v12 = vld [vmem:[%s6445_s28 + $0x8c] sm:$0xff]  ;;  %v6643_v14 = vld [vmem:[%s6445_s28 + $0x94] sm:$0xff]  ;;  %v6653_v16 = vld [vmem:[%s6445_s28 + $0x9c] sm:$0xff] }
  0x28   : > { %5598 = vmatprep.mubr.msk.f32.mxu1 %vm235_vm0, %v210_v30  ;;  %5822 = vmatprep.mubr.msk.f32.mxu0 %vm235_vm0, %v2134_v31  ;;  %v232_v13 = vld [vmem:[%s6445_s28 + $0x110] sm:$0xff]  ;;  %v233_v15 = vld [vmem:[%s6445_s28 + $0x118] sm:$0xff]  ;;  %v625_v17 = vld [vmem:[%s6445_s28 + $0x1] sm:$0xff] }
  0x29   : > { %v6657_v18 = vld [vmem:[%s6445_s28 + $0xa4] sm:$0xff]  ;;  %v6667_v20 = vld [vmem:[%s6445_s28 + $0xac] sm:$0xff]  ;;  %v6671_v22 = vld [vmem:[%s6445_s28 + $0xb4] sm:$0xff] }
  0x2a   : > { %v626_v19 = vld [vmem:[%s6445_s28 + $0x9] sm:$0xff]  ;;  %v627_v21 = vld [vmem:[%s6445_s28 + $0x11] sm:$0xff]  ;;  %v628_v24 = vld [vmem:[%s6445_s28 + $0x19] sm:$0xff] }
  0x2b   : > { %5599 = vmatmul.mubr.msk.f32.gmra.mrb[12].mxu1 %vm235_vm0, %v211_v32  ;;  %5823 = vmatmul.mubr.msk.f32.gmra.mrb[12].mxu0 %vm235_vm0, %v2135_v33  ;;  %v6676_v23 = vld [vmem:[%s7491_s1 + $0x18] sm:$0xff]  ;;  %v629_v26 = vld [vmem:[%s6445_s28 + $0x21] sm:$0xff]  ;;  %v6702_v28 = vld [vmem:[%s6445_s28 + $0xcc] sm:$0xff] }
  0x2c   : > { %5601 = vmatprep.mubr.msk.f32.mxu1 %vm235_vm0, %v212_v34  ;;  %5825 = vmatprep.mubr.msk.f32.mxu0 %vm235_vm0, %v2136_v35  ;;  %v6685_v25 = vld [vmem:[%s6445_s28 + $0xbc] sm:$0xff]  ;;  %v6691_v27 = vld [vmem:[%s6445_s28 + $0xc4] sm:$0xff]  ;;  %v631_v29 = vld [vmem:[%s6445_s28 + $0x31] sm:$0xff] }
  0x2d   : > { %v6706_v30 = vld [vmem:[%s6445_s28 + $0xd4] sm:$0xff]  ;;  %v6716_v32 = vld [vmem:[%s6445_s28 + $0xdc] sm:$0xff]  ;;  %v6720_v34 = vld [vmem:[%s6445_s28 + $0xe4] sm:$0xff] }
  0x2e   : > { %v632_v31 = vld [vmem:[%s6445_s28 + $0x39] sm:$0xff]  ;;  %v633_v33 = vld [vmem:[%s6445_s28 + $0x41] sm:$0xff]  ;;  %v634_v35 = vld [vmem:[%s6445_s28 + $0x49] sm:$0xff] }
  0x2f   : > { %5602 = vmatmul.mubr.msk.f32.gmra.mrb[14].mxu1 %vm235_vm0, %v213_v36  ;;  %5826 = vmatmul.mubr.msk.f32.gmra.mrb[14].mxu0 %vm235_vm0, %v2137_v37  ;;  %v6730_v36 = vld [vmem:[%s6445_s28 + $0xec] sm:$0xff] }
  0x30   : > { %5604 = vmatprep.mubr.msk.f32.mxu1 %vm235_vm0, %v214_v38  ;;  %5828 = vmatprep.mubr.msk.f32.mxu0 %vm235_vm0, %v2138_v39  ;;  %v635_v37 = vld [vmem:[%s6445_s28 + $0x51] sm:$0xff]  ;;  %v636_v39 = vld [vmem:[%s6445_s28 + $0x59] sm:$0xff] }
  0x31   : > { %v6734_v38 = vld [vmem:[%s6445_s28 + $0xf4] sm:$0xff] }
  0x33   : > { %5605 = vmatmul.mubr.msk.f32.gmra.mrb[16].mxu1 %vm235_vm0, %v215_v40  ;;  %5829 = vmatmul.mubr.msk.f32.gmra.mrb[16].mxu0 %vm235_vm0, %v2139_v41  ;;  %v6744_v40 = vld [vmem:[%s6445_s28 + $0xfc] sm:$0xff] }
  0x34   : > { %5607 = vmatprep.mubr.msk.f32.mxu1 %vm235_vm0, %v216_v42  ;;  %5860 = vmatprep.mubr.msk.f32.mxu0 %vm235_vm0, %v2621_v43  ;;  %v637_v41 = vld [vmem:[%s6445_s28 + $0x61] sm:$0xff]  ;;  %v638_v43 = vld [vmem:[%s6445_s28 + $0x69] sm:$0xff] }
  0x35   : > { %v6748_v42 = vld [vmem:[%s6445_s28 + $0x104] sm:$0xff] }
  0x37   : > { %5608 = vmatmul.mubr.msk.f32.gmra.mrb[18].mxu1 %vm235_vm0, %v217_v44  ;;  %5861 = vmatmul.mubr.msk.f32.vlgmr.msra.gmra.mrb[0].mxu0 %vm235_vm0, %v2622_v45  ;;  %v6758_v44 = vld [vmem:[%s6445_s28 + $0x10c] sm:$0xff] }
  0x38   : > { %5915 = vmatpush3.msra.mxu0 %v6460_v10  ;;  %5610 = vmatprep.mubr.msk.f32.mxu1 %vm235_vm0, %v218_v46  ;;  %v231_v10 = vld [vmem:[%s6445_s28 + $0x108] sm:$0xff]  ;;  %v639_v45 = vld [vmem:[%s6445_s28 + $0x71] sm:$0xff] }
  0x39   : > { %5863 = vmatprep.mubr.msk.f32.mxu0 %vm235_vm0, %v6539_v47  ;;  %5970 = vmatprep.subr.mxu0 %v6544_v48  ;;  %v6762_v46 = vld [vmem:[%s6445_s28 + $0x114] sm:$0xff] }
  0x3b   : > { %5611 = vmatmul.mubr.msk.f32.gmra.mrb[20].mxu1 %vm235_vm0, %v219_v49  ;;  %5864 = vmatmul.mubr.msk.f32.gmra.mrb[2].mxu0 %vm235_vm0, %v6552_v50  ;;  %v640_v49 = vld [vmem:[%s6445_s28 + $0x79] sm:$0xff] }
  0x3c   : > { %5613 = vmatprep.mubr.msk.f32.mxu1 %vm235_vm0, %v220_v51  ;;  %5866 = vmatprep.mubr.msk.f32.mxu0 %vm235_vm0, %v6558_v52  ;;  %v6772_v51 = vld [vmem:[%s6445_s28 + $0x11c] sm:$0xff] }
  0x3f   : > { %5614 = vmatmul.mubr.msk.f32.gmra.mrb[22].mxu1 %vm235_vm0, %v221_v53  ;;  %5867 = vmatmul.mubr.msk.f32.gmra.mrb[4].mxu0 %vm235_vm0, %v6569_v54  ;;  %v641_v53 = vld [vmem:[%s6445_s28 + $0x81] sm:$0xff] }
  0x40   : > { %5616 = vmatprep.mubr.msk.f32.mxu1 %vm235_vm0, %v222_v55  ;;  %5869 = vmatprep.mubr.msk.f32.mxu0 %vm235_vm0, %v6573_v56  ;;  %v6776_v55 = vld [vmem:[%s6445_s28 + $0x124] sm:$0xff] }
  0x43   : > { %5617 = vmatmul.mubr.msk.f32.gmra.mrb[24].mxu1 %vm235_vm0, %v223_v57  ;;  %5870 = vmatmul.mubr.msk.f32.gmra.mrb[6].mxu0 %vm235_vm0, %v6583_v58  ;;  %v642_v57 = vld [vmem:[%s6445_s28 + $0x89] sm:$0xff] }
  0x44   : > { %5619 = vmatprep.mubr.msk.f32.mxu1 %vm235_vm0, %v224_v59  ;;  %5872 = vmatprep.mubr.msk.f32.mxu0 %vm235_vm0, %v6587_v60  ;;  %v6786_v59 = vld [vmem:[%s6445_s28 + $0x12c] sm:$0xff] }
  0x47   : > { %5620 = vmatmul.mubr.msk.f32.gmra.mrb[26].mxu1 %vm235_vm0, %v225_v61  ;;  %5873 = vmatmul.mubr.msk.f32.gmra.mrb[8].mxu0 %vm235_vm0, %v6597_v62  ;;  %v643_v61 = vld [vmem:[%s6445_s28 + $0x91] sm:$0xff] }
  0x48   : > { %5622 = vmatprep.mubr.msk.f32.mxu1 %vm235_vm0, %v226_v63  ;;  %5875 = vmatprep.mubr.msk.f32.mxu0 %vm235_vm0, %v6601_v0  ;;  %v644_v63 = vld [vmem:[%s6445_s28 + $0x99] sm:$0xff] }
  0x4b   : > { %5623 = vmatmul.mubr.msk.f32.gmra.mrb[28].mxu1 %vm235_vm0, %v227_v2  ;;  %5876 = vmatmul.mubr.msk.f32.gmra.mrb[10].mxu0 %vm235_vm0, %v6611_v3  ;;  %v645_v2 = vld [vmem:[%s6445_s28 + $0xa1] sm:$0xff] }
  0x4c   : > { %5625 = vmatprep.mubr.msk.f32.mxu1 %vm235_vm0, %v228_v4  ;;  %5878 = vmatprep.mubr.msk.f32.mxu0 %vm235_vm0, %v6615_v5  ;;  %v6800_v4 = vld [vmem:[%s7491_s1 + $0x40] sm:$0xff] }
  0x4f   : > { %5626 = vmatmul.mubr.msk.f32.gmra.mrb[30].mxu1 %vm235_vm0, %v229_v6  ;;  %5879 = vmatmul.mubr.msk.f32.gmra.mrb[12].mxu0 %vm235_vm0, %v6625_v7  ;;  %v647_v6 = vld [vmem:[%s6445_s28 + $0xb1] sm:$0xff] }
  0x50   : > { %5628 = vmatprep.mubr.msk.f32.mxu1 %vm235_vm0, %v230_v8  ;;  %5881 = vmatprep.mubr.msk.f32.mxu0 %vm235_vm0, %v6629_v9  ;;  %v660_v8 = vld [vmem:[%s6445_s28 + $0x119] sm:$0xff] }
  0x53   : > { %5629 = vmatmul.mubr.msk.f32.gmra.mrb[32].mxu1 %vm235_vm0, %v231_v10  ;;  %5882 = vmatmul.mubr.msk.f32.gmra.mrb[14].mxu0 %vm235_vm0, %v6639_v12  ;;  %v1125_v10 = vld [vmem:[%s6445_s28 + $0xa] sm:$0xff] }
  0x54   : > { %5631 = vmatprep.mubr.msk.f32.mxu1 %vm235_vm0, %v232_v13  ;;  %5884 = vmatprep.mubr.msk.f32.mxu0 %vm235_vm0, %v6643_v14  ;;  %v6885_v13 = vld [vmem:[%s6445_s28 + $0x1a] sm:$0xff] }
  0x57   : > { %5632 = vmatmul.mubr.msk.f32.gmra.mrb[34].mxu1 %vm235_vm0, %v233_v15  ;;  %5885 = vmatmul.mubr.msk.f32.gmra.mrb[16].mxu0 %vm235_vm0, %v6653_v16  ;;  %v6902_v15 = vld [vmem:[%s6445_s28 + $0x2a] sm:$0xff] }
  0x58   : > { %5636 = vmatprep.mubr.msk.f32.mxu1 %vm235_vm0, %v625_v17  ;;  %5887 = vmatprep.mubr.msk.f32.mxu0 %vm235_vm0, %v6657_v18  ;;  %v6916_v17 = vld [vmem:[%s6445_s28 + $0x3a] sm:$0xff] }
  0x5b   : > { %5637 = vmatmul.mubr.msk.f32.vlgmr.msra.gmra.mrb[0].mxu1 %vm235_vm0, %v626_v19  ;;  %5888 = vmatmul.mubr.msk.f32.gmra.mrb[18].mxu0 %vm235_vm0, %v6667_v20  ;;  %v6930_v19 = vld [vmem:[%s6445_s28 + $0x4a] sm:$0xff] }
  0x5c   : > { %5691 = vmatpush3.msra.mxu1 %v6465_v11  ;;  %5639 = vmatprep.mubr.msk.f32.mxu1 %vm235_vm0, %v627_v21  ;;  %v630_v11 = vld [vmem:[%s6445_s28 + $0x29] sm:$0xff]  ;;  %v6944_v21 = vld [vmem:[%s6445_s28 + $0x5a] sm:$0xff] }
  0x5d   : > { %5890 = vmatprep.mubr.msk.f32.mxu0 %vm235_vm0, %v6671_v22  ;;  %5746 = vmatprep.subr.mxu1 %v6676_v23 }
  0x5f   : > { %5640 = vmatmul.mubr.msk.f32.gmra.mrb[2].mxu1 %vm235_vm0, %v628_v24  ;;  %5891 = vmatmul.mubr.msk.f32.gmra.mrb[20].mxu0 %vm235_vm0, %v6685_v25  ;;  %v6961_v24 = vld [vmem:[%s6445_s28 + $0x72] sm:$0xff] }
  0x60   : > { %5642 = vmatprep.mubr.msk.f32.mxu1 %vm235_vm0, %v629_v26  ;;  %5893 = vmatprep.mubr.msk.f32.mxu0 %vm235_vm0, %v6691_v27  ;;  %v6975_v26 = vld [vmem:[%s6445_s28 + $0x82] sm:$0xff] }
  0x63   : > { %5643 = vmatmul.mubr.msk.f32.gmra.mrb[4].mxu1 %vm235_vm0, %v630_v11  ;;  %5894 = vmatmul.mubr.msk.f32.gmra.mrb[22].mxu0 %vm235_vm0, %v6702_v28  ;;  %v6986_v11 = vld [vmem:[%s6445_s28 + $0x8a] sm:$0xff] }
  0x64   : > { %5645 = vmatprep.mubr.msk.f32.mxu1 %vm235_vm0, %v631_v29  ;;  %5896 = vmatprep.mubr.msk.f32.mxu0 %vm235_vm0, %v6706_v30  ;;  %v6990_v29 = vld [vmem:[%s6445_s28 + $0x92] sm:$0xff] }
  0x67   : > { %5646 = vmatmul.mubr.msk.f32.gmra.mrb[6].mxu1 %vm235_vm0, %v632_v31  ;;  %5897 = vmatmul.mubr.msk.f32.gmra.mrb[24].mxu0 %vm235_vm0, %v6716_v32  ;;  %v7000_v31 = vld [vmem:[%s6445_s28 + $0x9a] sm:$0xff] }
  0x68   : > { %5648 = vmatprep.mubr.msk.f32.mxu1 %vm235_vm0, %v633_v33  ;;  %5899 = vmatprep.mubr.msk.f32.mxu0 %vm235_vm0, %v6720_v34  ;;  %v7004_v33 = vld [vmem:[%s6445_s28 + $0xa2] sm:$0xff] }
  0x6b   : > { %5649 = vmatmul.mubr.msk.f32.gmra.mrb[8].mxu1 %vm235_vm0, %v634_v35  ;;  %5900 = vmatmul.mubr.msk.f32.gmra.mrb[26].mxu0 %vm235_vm0, %v6730_v36  ;;  %v7014_v35 = vld [vmem:[%s6445_s28 + $0xaa] sm:$0xff] }
  0x6c   : > { %5651 = vmatprep.mubr.msk.f32.mxu1 %vm235_vm0, %v635_v37  ;;  %5902 = vmatprep.mubr.msk.f32.mxu0 %vm235_vm0, %v6734_v38  ;;  %v7019_v37 = vld [vmem:[%s6445_s28 + $0xb2] sm:$0xff] }
  0x6f   : > { %5652 = vmatmul.mubr.msk.f32.gmra.mrb[10].mxu1 %vm235_vm0, %v636_v39  ;;  %5903 = vmatmul.mubr.msk.f32.gmra.mrb[28].mxu0 %vm235_vm0, %v6744_v40  ;;  %v7029_v39 = vld [vmem:[%s6445_s28 + $0xba] sm:$0xff] }
  0x70   : > { %5654 = vmatprep.mubr.msk.f32.mxu1 %vm235_vm0, %v637_v41  ;;  %5905 = vmatprep.mubr.msk.f32.mxu0 %vm235_vm0, %v6748_v42  ;;  %v7033_v41 = vld [vmem:[%s6445_s28 + $0xc2] sm:$0xff] }
  0x73   : > { %5655 = vmatmul.mubr.msk.f32.gmra.mrb[12].mxu1 %vm235_vm0, %v638_v43  ;;  %5906 = vmatmul.mubr.msk.f32.gmra.mrb[30].mxu0 %vm235_vm0, %v6758_v44  ;;  %v7043_v43 = vld [vmem:[%s6445_s28 + $0xca] sm:$0xff] }
  0x74   : > { %5657 = vmatprep.mubr.msk.f32.mxu1 %vm235_vm0, %v639_v45  ;;  %5908 = vmatprep.mubr.msk.f32.mxu0 %vm235_vm0, %v6762_v46  ;;  %v7047_v45 = vld [vmem:[%s6445_s28 + $0xd2] sm:$0xff] }
  0x77   : > { %5658 = vmatmul.mubr.msk.f32.gmra.mrb[14].mxu1 %vm235_vm0, %v640_v49  ;;  %5909 = vmatmul.mubr.msk.f32.gmra.mrb[32].mxu0 %vm235_vm0, %v6772_v51  ;;  %v7057_v49 = vld [vmem:[%s6445_s28 + $0xda] sm:$0xff] }
  0x78   : > { %5660 = vmatprep.mubr.msk.f32.mxu1 %vm235_vm0, %v641_v53  ;;  %5911 = vmatprep.mubr.msk.f32.mxu0 %vm235_vm0, %v6776_v55  ;;  %v7061_v53 = vld [vmem:[%s6445_s28 + $0xe2] sm:$0xff] }
  0x7b   : > { %5661 = vmatmul.mubr.msk.f32.gmra.mrb[16].mxu1 %vm235_vm0, %v642_v57  ;;  %5912 = vmatmul.mubr.msk.f32.gmra.mrb[34].mxu0 %vm235_vm0, %v6786_v59  ;;  %v7071_v57 = vld [vmem:[%s6445_s28 + $0xea] sm:$0xff] }
  0x7c   : > { %5663 = vmatprep.mubr.msk.f32.mxu1 %vm235_vm0, %v643_v61  ;;  %5916 = vmatprep.mubr.msk.f32.mxu0 %vm235_vm0, %v6539_v47  ;;  %v646_v47 = vld [vmem:[%s6445_s28 + $0xa9] sm:$0xff]  ;;  %v7075_v61 = vld [vmem:[%s6445_s28 + $0xf2] sm:$0xff] }
  0x7f   : > { %5664 = vmatmul.mubr.msk.f32.gmra.mrb[18].mxu1 %vm235_vm0, %v644_v63  ;;  %5917 = vmatmul.mubr.msk.f32.vlgmr.msra.gmra.mrb[0].mxu0 %vm235_vm0, %v6552_v50  ;;  %v649_v50 = vld [vmem:[%s6445_s28 + $0xc1] sm:$0xff] }
  0x80   : > { %5971 = vmatpush3.msra.mxu0 %v6544_v48  ;;  %5666 = vmatprep.mubr.msk.f32.mxu1 %vm235_vm0, %v645_v2  ;;  %v648_v48 = vld [vmem:[%s6445_s28 + $0xb9] sm:$0xff]  ;;  %v3631_v63 = vld [vmem:[%s6445_s28 + $0x85] sm:$0xff] }
  0x81   : > { %5919 = vmatprep.mubr.msk.f32.mxu0 %vm235_vm0, %v6558_v52  ;;  %6026 = vmatprep.subr.mxu0 %v6800_v4  ;;  %v650_v52 = vld [vmem:[%s6445_s28 + $0xc9] sm:$0xff]  ;;  %v7085_v2 = vld [vmem:[%s6445_s28 + $0xfa] sm:$0xff] }
  0x83   : > { %5667 = vmatmul.mubr.msk.f32.gmra.mrb[20].mxu1 %vm235_vm0, %v646_v47  ;;  %5920 = vmatmul.mubr.msk.f32.gmra.mrb[2].mxu0 %vm235_vm0, %v6569_v54  ;;  %v651_v54 = vld [vmem:[%s6445_s28 + $0xd1] sm:$0xff]  ;;  %v7089_v47 = vld [vmem:[%s6445_s28 + $0x102] sm:$0xff] }
  0x84   : > { %5669 = vmatprep.mubr.msk.f32.mxu1 %vm235_vm0, %v647_v6  ;;  %5922 = vmatprep.mubr.msk.f32.mxu0 %vm235_vm0, %v6573_v56  ;;  %v652_v56 = vld [vmem:[%s6445_s28 + $0xd9] sm:$0xff] }
  0x85   : > { %v3633_v6 = vld [vmem:[%s6445_s28 + $0x95] sm:$0xff] }
  0x87   : > { %5670 = vmatmul.mubr.msk.f32.gmra.mrb[22].mxu1 %vm235_vm0, %v648_v48  ;;  %5923 = vmatmul.mubr.msk.f32.gmra.mrb[4].mxu0 %vm235_vm0, %v6583_v58  ;;  %v653_v58 = vld [vmem:[%s6445_s28 + $0xe1] sm:$0xff]  ;;  %v7099_v48 = vld [vmem:[%s6445_s28 + $0x10a] sm:$0xff] }
  0x88   : > { %5672 = vmatprep.mubr.msk.f32.mxu1 %vm235_vm0, %v649_v50  ;;  %5925 = vmatprep.mubr.msk.f32.mxu0 %vm235_vm0, %v6587_v60  ;;  %v654_v60 = vld [vmem:[%s6445_s28 + $0xe9] sm:$0xff]  ;;  %v3634_v50 = vld [vmem:[%s6445_s28 + $0x9d] sm:$0xff] }
  0x8b   : > { %5673 = vmatmul.mubr.msk.f32.gmra.mrb[24].mxu1 %vm235_vm0, %v650_v52  ;;  %5926 = vmatmul.mubr.msk.f32.gmra.mrb[6].mxu0 %vm235_vm0, %v6597_v62  ;;  %v655_v62 = vld [vmem:[%s6445_s28 + $0xf1] sm:$0xff] }
  0x8c   : > { %5675 = vmatprep.mubr.msk.f32.mxu1 %vm235_vm0, %v651_v54  ;;  %5928 = vmatprep.mubr.msk.f32.mxu0 %vm235_vm0, %v6601_v0  ;;  %v656_v0 = vld [vmem:[%s6445_s28 + $0xf9] sm:$0xff]  ;;  %v3635_v54 = vld [vmem:[%s6445_s28 + $0xa5] sm:$0xff] }
  0x8d   : > { %v7103_v52 = vld [vmem:[%s6445_s28 + $0x112] sm:$0xff] }
  0x8f   : > { %5676 = vmatmul.mubr.msk.f32.gmra.mrb[26].mxu1 %vm235_vm0, %v652_v56  ;;  %5929 = vmatmul.mubr.msk.f32.gmra.mrb[8].mxu0 %vm235_vm0, %v6611_v3  ;;  %v657_v3 = vld [vmem:[%s6445_s28 + $0x101] sm:$0xff] }
  0x90   : > { %5678 = vmatprep.mubr.msk.f32.mxu1 %vm235_vm0, %v653_v58  ;;  %5931 = vmatprep.mubr.msk.f32.mxu0 %vm235_vm0, %v6615_v5  ;;  %v658_v5 = vld [vmem:[%s6445_s28 + $0x109] sm:$0xff]  ;;  %v7113_v56 = vld [vmem:[%s6445_s28 + $0x11a] sm:$0xff] }
  0x91   : > { %v3636_v58 = vld [vmem:[%s6445_s28 + $0xad] sm:$0xff] }
  0x93   : > { %5679 = vmatmul.mubr.msk.f32.gmra.mrb[28].mxu1 %vm235_vm0, %v654_v60  ;;  %5932 = vmatmul.mubr.msk.f32.gmra.mrb[10].mxu0 %vm235_vm0, %v6625_v7  ;;  %v659_v7 = vld [vmem:[%s6445_s28 + $0x111] sm:$0xff] }
  0x94   : > { %5681 = vmatprep.mubr.msk.f32.mxu1 %vm235_vm0, %v655_v62  ;;  %5934 = vmatprep.mubr.msk.f32.mxu0 %vm235_vm0, %v6629_v9  ;;  %v1124_v9 = vld [vmem:[%s6445_s28 + $0x2] sm:$0xff]  ;;  %v3637_v60 = vld [vmem:[%s6445_s28 + $0xb5] sm:$0xff] }
  0x95   : > { %v3638_v62 = vld [vmem:[%s6445_s28 + $0xbd] sm:$0xff] }
  0x97   : > { %5682 = vmatmul.mubr.msk.f32.gmra.mrb[30].mxu1 %vm235_vm0, %v656_v0  ;;  %5935 = vmatmul.mubr.msk.f32.gmra.mrb[12].mxu0 %vm235_vm0, %v6639_v12  ;;  %v6876_v12 = vld [vmem:[%s6445_s28 + $0x12] sm:$0xff]  ;;  %v3639_v0 = vld [vmem:[%s6445_s28 + $0xc5] sm:$0xff] }
  0x98   : > { %5684 = vmatprep.mubr.msk.f32.mxu1 %vm235_vm0, %v657_v3  ;;  %5937 = vmatprep.mubr.msk.f32.mxu0 %vm235_vm0, %v6643_v14  ;;  %v6890_v14 = vld [vmem:[%s6445_s28 + $0x22] sm:$0xff]  ;;  %v3640_v3 = vld [vmem:[%s6445_s28 + $0xcd] sm:$0xff] }
  0x9b   : > { %5685 = vmatmul.mubr.msk.f32.gmra.mrb[32].mxu1 %vm235_vm0, %v658_v5  ;;  %5938 = vmatmul.mubr.msk.f32.gmra.mrb[14].mxu0 %vm235_vm0, %v6653_v16  ;;  %v6905_v16 = vld [vmem:[%s6445_s28 + $0x32] sm:$0xff] }
  0x9c   : > { %5687 = vmatprep.mubr.msk.f32.mxu1 %vm235_vm0, %v659_v7  ;;  %5940 = vmatprep.mubr.msk.f32.mxu0 %vm235_vm0, %v6657_v18  ;;  %v6919_v18 = vld [vmem:[%s6445_s28 + $0x42] sm:$0xff]  ;;  %v3641_v5 = vld [vmem:[%s6445_s28 + $0xd5] sm:$0xff] }
  0x9d   : > { %v3643_v7 = vld [vmem:[%s6445_s28 + $0xe5] sm:$0xff] }
  0x9f   : > { %5688 = vmatmul.mubr.msk.f32.gmra.mrb[34].mxu1 %vm235_vm0, %v660_v8  ;;  %5941 = vmatmul.mubr.msk.f32.gmra.mrb[16].mxu0 %vm235_vm0, %v6667_v20  ;;  %v6933_v20 = vld [vmem:[%s6445_s28 + $0x52] sm:$0xff] }
  0xa0   : > { %5692 = vmatprep.mubr.msk.f32.mxu1 %vm235_vm0, %v1124_v9  ;;  %5943 = vmatprep.mubr.msk.f32.mxu0 %vm235_vm0, %v6671_v22  ;;  %v6947_v22 = vld [vmem:[%s6445_s28 + $0x62] sm:$0xff]  ;;  %v3644_v8 = vld [vmem:[%s6445_s28 + $0xed] sm:$0xff]  ;;  %v3645_v9 = vld [vmem:[%s6445_s28 + $0xf5] sm:$0xff] }
  0xa3   : > { %5693 = vmatmul.mubr.msk.f32.vlgmr.msra.gmra.mrb[0].mxu1 %vm235_vm0, %v1125_v10  ;;  %5944 = vmatmul.mubr.msk.f32.gmra.mrb[18].mxu0 %vm235_vm0, %v6685_v25  ;;  %v6972_v25 = vld [vmem:[%s6445_s28 + $0x7a] sm:$0xff] }
  0xa4   : > { %5747 = vmatpush3.msra.mxu1 %v6676_v23  ;;  %5695 = vmatprep.mubr.msk.f32.mxu1 %vm235_vm0, %v6876_v12  ;;  %v6958_v23 = vld [vmem:[%s6445_s28 + $0x6a] sm:$0xff]  ;;  %v3646_v10 = vld [vmem:[%s6445_s28 + $0xfd] sm:$0xff] }
  0xa5   : > { %5946 = vmatprep.mubr.msk.f32.mxu0 %vm235_vm0, %v6691_v27  ;;  %6082 = vmatprep.subr.mxu1 %v6429_v1  ;;  %v3154_v27 = vld [vmem:[%s6445_s28 + $0x134] sm:$0xff] }
  0xa7   : > { %5696 = vmatmul.mubr.msk.f32.gmra.mrb[2].mxu1 %vm235_vm0, %v6885_v13  ;;  %5947 = vmatmul.mubr.msk.f32.gmra.mrb[20].mxu0 %vm235_vm0, %v6702_v28  ;;  %v3155_v28 = vld [vmem:[%s6445_s28 + $0x13c] sm:$0xff] }
  0xa8   : > { %5698 = vmatprep.mubr.msk.f32.mxu1 %vm235_vm0, %v6890_v14  ;;  %5949 = vmatprep.mubr.msk.f32.mxu0 %vm235_vm0, %v6706_v30  ;;  %v3619_v30 = vld [vmem:[%s6445_s28 + $0x25] sm:$0xff] }
  0xab   : > { %5699 = vmatmul.mubr.msk.f32.gmra.mrb[4].mxu1 %vm235_vm0, %v6902_v15  ;;  %5950 = vmatmul.mubr.msk.f32.gmra.mrb[22].mxu0 %vm235_vm0, %v6716_v32  ;;  %v3620_v32 = vld [vmem:[%s6445_s28 + $0x2d] sm:$0xff] }
  0xac   : > { %5701 = vmatprep.mubr.msk.f32.mxu1 %vm235_vm0, %v6905_v16  ;;  %5952 = vmatprep.mubr.msk.f32.mxu0 %vm235_vm0, %v6720_v34  ;;  %v3621_v34 = vld [vmem:[%s6445_s28 + $0x35] sm:$0xff] }
  0xaf   : > { %5702 = vmatmul.mubr.msk.f32.gmra.mrb[6].mxu1 %vm235_vm0, %v6916_v17  ;;  %5953 = vmatmul.mubr.msk.f32.gmra.mrb[24].mxu0 %vm235_vm0, %v6730_v36  ;;  %v3622_v36 = vld [vmem:[%s6445_s28 + $0x3d] sm:$0xff] }
  0xb0   : > { %5704 = vmatprep.mubr.msk.f32.mxu1 %vm235_vm0, %v6919_v18  ;;  %5955 = vmatprep.mubr.msk.f32.mxu0 %vm235_vm0, %v6734_v38  ;;  %v3623_v38 = vld [vmem:[%s6445_s28 + $0x45] sm:$0xff] }
  0xb3   : > { %5705 = vmatmul.mubr.msk.f32.gmra.mrb[8].mxu1 %vm235_vm0, %v6930_v19  ;;  %5956 = vmatmul.mubr.msk.f32.gmra.mrb[26].mxu0 %vm235_vm0, %v6744_v40  ;;  %v3624_v40 = vld [vmem:[%s6445_s28 + $0x4d] sm:$0xff] }
  0xb4   : > { %5707 = vmatprep.mubr.msk.f32.mxu1 %vm235_vm0, %v6933_v20  ;;  %5958 = vmatprep.mubr.msk.f32.mxu0 %vm235_vm0, %v6748_v42  ;;  %v3625_v42 = vld [vmem:[%s6445_s28 + $0x55] sm:$0xff] }
  0xb7   : > { %5708 = vmatmul.mubr.msk.f32.gmra.mrb[10].mxu1 %vm235_vm0, %v6944_v21  ;;  %5959 = vmatmul.mubr.msk.f32.gmra.mrb[28].mxu0 %vm235_vm0, %v6758_v44  ;;  %v3626_v44 = vld [vmem:[%s6445_s28 + $0x5d] sm:$0xff] }
  0xb8   : > { %5710 = vmatprep.mubr.msk.f32.mxu1 %vm235_vm0, %v6947_v22  ;;  %5961 = vmatprep.mubr.msk.f32.mxu0 %vm235_vm0, %v6762_v46  ;;  %v3627_v46 = vld [vmem:[%s6445_s28 + $0x65] sm:$0xff] }
  0xbb   : > { %5711 = vmatmul.mubr.msk.f32.gmra.mrb[12].mxu1 %vm235_vm0, %v6958_v23  ;;  %5962 = vmatmul.mubr.msk.f32.gmra.mrb[30].mxu0 %vm235_vm0, %v6772_v51  ;;  %v3628_v51 = vld [vmem:[%s6445_s28 + $0x6d] sm:$0xff] }
  0xbc   : > { %5713 = vmatprep.mubr.msk.f32.mxu1 %vm235_vm0, %v6961_v24  ;;  %5964 = vmatprep.mubr.msk.f32.mxu0 %vm235_vm0, %v6776_v55  ;;  %v3629_v55 = vld [vmem:[%s6445_s28 + $0x75] sm:$0xff] }
  0xbf   : > { %5714 = vmatmul.mubr.msk.f32.gmra.mrb[14].mxu1 %vm235_vm0, %v6972_v25  ;;  %5965 = vmatmul.mubr.msk.f32.gmra.mrb[32].mxu0 %vm235_vm0, %v6786_v59  ;;  %v3630_v59 = vld [vmem:[%s6445_s28 + $0x7d] sm:$0xff] }
  0xc0   : > { %5716 = vmatprep.mubr.msk.f32.mxu1 %vm235_vm0, %v6975_v26  ;;  %5967 = vmatprep.mubr.msk.f32.mxu0 %vm235_vm0, %v3154_v27  ;;  %v4125_v27 = vld [vmem:[%s6445_s28 + $0x5e] sm:$0xff] }
  0xc3   : > { %5717 = vmatmul.mubr.msk.f32.gmra.mrb[16].mxu1 %vm235_vm0, %v6986_v11  ;;  %5968 = vmatmul.mubr.msk.f32.gmra.mrb[34].mxu0 %vm235_vm0, %v3155_v28  ;;  %v4127_v28 = vld [vmem:[%s6445_s28 + $0x6e] sm:$0xff] }
  0xc4   : > { %5719 = vmatprep.mubr.msk.f32.mxu1 %vm235_vm0, %v6990_v29  ;;  %5972 = vmatprep.mubr.msk.f32.mxu0 %vm235_vm0, %v3619_v30  ;;  %v4129_v30 = vld [vmem:[%s6445_s28 + $0x7e] sm:$0xff] }
  0xc7   : > { %5720 = vmatmul.mubr.msk.f32.gmra.mrb[18].mxu1 %vm235_vm0, %v7000_v31  ;;  %5973 = vmatmul.mubr.msk.f32.vlgmr.msra.gmra.mrb[0].mxu0 %vm235_vm0, %v3620_v32  ;;  %v4131_v32 = vld [vmem:[%s6445_s28 + $0x8e] sm:$0xff] }
  0xc8   : > { %6027 = vmatpush3.msra.mxu0 %v6800_v4  ;;  %5722 = vmatprep.mubr.msk.f32.mxu1 %vm235_vm0, %v7004_v33  ;;  %v3632_v4 = vld [vmem:[%s6445_s28 + $0x8d] sm:$0xff] }
  0xc9   : > { %5975 = vmatprep.mubr.msk.f32.mxu0 %vm235_vm0, %v3621_v34  ;;  %v4133_v34 = vld [vmem:[%s6445_s28 + $0x9e] sm:$0xff] }
  0xcb   : > { %5723 = vmatmul.mubr.msk.f32.gmra.mrb[20].mxu1 %vm235_vm0, %v7014_v35  ;;  %5976 = vmatmul.mubr.msk.f32.gmra.mrb[2].mxu0 %vm235_vm0, %v3622_v36  ;;  %v4134_v36 = vld [vmem:[%s6445_s28 + $0xa6] sm:$0xff] }
  0xcc   : > { %5725 = vmatprep.mubr.msk.f32.mxu1 %vm235_vm0, %v7019_v37  ;;  %5978 = vmatprep.mubr.msk.f32.mxu0 %vm235_vm0, %v3623_v38  ;;  %v4135_v38 = vld [vmem:[%s6445_s28 + $0xae] sm:$0xff] }
  0xcf   : > { %5726 = vmatmul.mubr.msk.f32.gmra.mrb[22].mxu1 %vm235_vm0, %v7029_v39  ;;  %5979 = vmatmul.mubr.msk.f32.gmra.mrb[4].mxu0 %vm235_vm0, %v3624_v40  ;;  %v4136_v40 = vld [vmem:[%s6445_s28 + $0xb6] sm:$0xff] }
  0xd0   : > { %5728 = vmatprep.mubr.msk.f32.mxu1 %vm235_vm0, %v7033_v41  ;;  %5981 = vmatprep.mubr.msk.f32.mxu0 %vm235_vm0, %v3625_v42  ;;  %v4137_v42 = vld [vmem:[%s6445_s28 + $0xbe] sm:$0xff] }
  0xd3   : > { %5729 = vmatmul.mubr.msk.f32.gmra.mrb[24].mxu1 %vm235_vm0, %v7043_v43  ;;  %5982 = vmatmul.mubr.msk.f32.gmra.mrb[6].mxu0 %vm235_vm0, %v3626_v44  ;;  %v4138_v44 = vld [vmem:[%s6445_s28 + $0xc6] sm:$0xff] }
  0xd4   : > { %5731 = vmatprep.mubr.msk.f32.mxu1 %vm235_vm0, %v7047_v45  ;;  %5984 = vmatprep.mubr.msk.f32.mxu0 %vm235_vm0, %v3627_v46  ;;  %v4139_v46 = vld [vmem:[%s6445_s28 + $0xce] sm:$0xff] }
  0xd7   : > { %5732 = vmatmul.mubr.msk.f32.gmra.mrb[26].mxu1 %vm235_vm0, %v7057_v49  ;;  %5985 = vmatmul.mubr.msk.f32.gmra.mrb[8].mxu0 %vm235_vm0, %v3628_v51  ;;  %v4140_v51 = vld [vmem:[%s6445_s28 + $0xd6] sm:$0xff] }
  0xd8   : > { %5734 = vmatprep.mubr.msk.f32.mxu1 %vm235_vm0, %v7061_v53  ;;  %5987 = vmatprep.mubr.msk.f32.mxu0 %vm235_vm0, %v3629_v55  ;;  %v4141_v55 = vld [vmem:[%s6445_s28 + $0xde] sm:$0xff] }
  0xdb   : > { %5735 = vmatmul.mubr.msk.f32.gmra.mrb[28].mxu1 %vm235_vm0, %v7071_v57  ;;  %5988 = vmatmul.mubr.msk.f32.gmra.mrb[10].mxu0 %vm235_vm0, %v3630_v59  ;;  %v4142_v59 = vld [vmem:[%s6445_s28 + $0xe6] sm:$0xff] }
  0xdc   : > { %5737 = vmatprep.mubr.msk.f32.mxu1 %vm235_vm0, %v7075_v61  ;;  %5990 = vmatprep.mubr.msk.f32.mxu0 %vm235_vm0, %v3631_v63  ;;  %v4143_v63 = vld [vmem:[%s6445_s28 + $0xee] sm:$0xff] }
  0xdf   : > { %5738 = vmatmul.mubr.msk.f32.gmra.mrb[30].mxu1 %vm235_vm0, %v7085_v2  ;;  %5991 = vmatmul.mubr.msk.f32.gmra.mrb[12].mxu0 %vm235_vm0, %v3632_v4  ;;  %v4144_v4 = vld [vmem:[%s6445_s28 + $0xf6] sm:$0xff] }
  0xe0   : > { %5740 = vmatprep.mubr.msk.f32.mxu1 %vm235_vm0, %v7089_v47  ;;  %5993 = vmatprep.mubr.msk.f32.mxu0 %vm235_vm0, %v3633_v6  ;;  %v4145_v6 = vld [vmem:[%s6445_s28 + $0xfe] sm:$0xff] }
  0xe3   : > { %5741 = vmatmul.mubr.msk.f32.gmra.mrb[32].mxu1 %vm235_vm0, %v7099_v48  ;;  %5994 = vmatmul.mubr.msk.f32.gmra.mrb[14].mxu0 %vm235_vm0, %v3634_v50  ;;  %v4146_v50 = vld [vmem:[%s6445_s28 + $0x106] sm:$0xff] }
  0xe4   : > { %5743 = vmatprep.mubr.msk.f32.mxu1 %vm235_vm0, %v7103_v52  ;;  %5996 = vmatprep.mubr.msk.f32.mxu0 %vm235_vm0, %v3635_v54  ;;  %v4147_v54 = vld [vmem:[%s6445_s28 + $0x10e] sm:$0xff] }
  0xe7   : > { %5744 = vmatmul.mubr.msk.f32.gmra.mrb[34].mxu1 %vm235_vm0, %v7113_v56  ;;  %5997 = vmatmul.mubr.msk.f32.gmra.mrb[16].mxu0 %vm235_vm0, %v3636_v58  ;;  %v4148_v58 = vld [vmem:[%s6445_s28 + $0x116] sm:$0xff] }
  0xe8   : > { %5748 = vmatprep.mubr.msk.f32.mxu1 %vm235_vm0, %v6876_v12  ;;  %5999 = vmatprep.mubr.msk.f32.mxu0 %vm235_vm0, %v3637_v60  ;;  %v3647_v12 = vld [vmem:[%s6445_s28 + $0x105] sm:$0xff] }
  0xe9   : > { %v2153_v60 = vld [vmem:[%s6445_s28 + $0x10b] sm:$0xff] }
  0xeb   : > { %5749 = vmatmul.mubr.msk.f32.vlgmr.msra.gmra.mrb[0].mxu1 %vm235_vm0, %v6885_v13  ;;  %6000 = vmatmul.mubr.msk.f32.gmra.mrb[18].mxu0 %vm235_vm0, %v3638_v62  ;;  %v3648_v13 = vld [vmem:[%s6445_s28 + $0x10d] sm:$0xff]  ;;  %v4149_v62 = vld [vmem:[%s6445_s28 + $0x11e] sm:$0xff] }
  0xec   : > { %6083 = vmatpush3.msra.mxu1 %v6429_v1  ;;  %5751 = vmatprep.mubr.msk.f32.mxu1 %vm235_vm0, %v6890_v14  ;;  %v3642_v1 = vld [vmem:[%s6445_s28 + $0xdd] sm:$0xff]  ;;  %v3649_v14 = vld [vmem:[%s6445_s28 + $0x115] sm:$0xff] }
  0xed   : > { %6002 = vmatprep.mubr.msk.f32.mxu0 %vm235_vm0, %v3639_v0  ;;  %v2154_v0 = vld [vmem:[%s6445_s28 + $0x113] sm:$0xff] }
  0xef   : > { %5752 = vmatmul.mubr.msk.f32.gmra.mrb[2].mxu1 %vm235_vm0, %v6902_v15  ;;  %6003 = vmatmul.mubr.msk.f32.gmra.mrb[20].mxu0 %vm235_vm0, %v3640_v3  ;;  %v3650_v15 = vld [vmem:[%s6445_s28 + $0x11d] sm:$0xff]  ;;  %v4150_v3 = vld [vmem:[%s6445_s28 + $0x126] sm:$0xff] }
  0xf0   : > { %5754 = vmatprep.mubr.msk.f32.mxu1 %vm235_vm0, %v6905_v16  ;;  %6005 = vmatprep.mubr.msk.f32.mxu0 %vm235_vm0, %v3641_v5  ;;  %v3651_v16 = vld [vmem:[%s6445_s28 + $0x125] sm:$0xff]  ;;  %v2155_v5 = vld [vmem:[%s6445_s28 + $0x11b] sm:$0xff] }
  0xf3   : > { %5755 = vmatmul.mubr.msk.f32.gmra.mrb[4].mxu1 %vm235_vm0, %v6916_v17  ;;  %6006 = vmatmul.mubr.msk.f32.gmra.mrb[22].mxu0 %vm235_vm0, %v3642_v1  ;;  %v3652_v17 = vld [vmem:[%s6445_s28 + $0x12d] sm:$0xff] }
  0xf4   : > { %5757 = vmatprep.mubr.msk.f32.mxu1 %vm235_vm0, %v6919_v18  ;;  %6008 = vmatprep.mubr.msk.f32.mxu0 %vm235_vm0, %v3643_v7  ;;  %v3653_v18 = vld [vmem:[%s6445_s28 + $0x135] sm:$0xff]  ;;  %v2156_v7 = vld [vmem:[%s6445_s28 + $0x123] sm:$0xff] }
  0xf5   : > { %v4151_v1 = vld [vmem:[%s6445_s28 + $0x12e] sm:$0xff] }
  0xf7   : > { %5758 = vmatmul.mubr.msk.f32.gmra.mrb[6].mxu1 %vm235_vm0, %v6930_v19  ;;  %6009 = vmatmul.mubr.msk.f32.gmra.mrb[24].mxu0 %vm235_vm0, %v3644_v8  ;;  %v3654_v19 = vld [vmem:[%s6445_s28 + $0x13d] sm:$0xff] }
  0xf8   : > { %5760 = vmatprep.mubr.msk.f32.mxu1 %vm235_vm0, %v6933_v20  ;;  %6011 = vmatprep.mubr.msk.f32.mxu0 %vm235_vm0, %v3645_v9  ;;  %v4118_v20 = vld [vmem:[%s6445_s28 + $0x26] sm:$0xff]  ;;  %v4152_v8 = vld [vmem:[%s6445_s28 + $0x136] sm:$0xff] }
  0xf9   : > { %v2157_v9 = vld [vmem:[%s6445_s28 + $0x12b] sm:$0xff] }
  0xfb   : > { %5761 = vmatmul.mubr.msk.f32.gmra.mrb[8].mxu1 %vm235_vm0, %v6944_v21  ;;  %6012 = vmatmul.mubr.msk.f32.gmra.mrb[26].mxu0 %vm235_vm0, %v3646_v10  ;;  %v4119_v21 = vld [vmem:[%s6445_s28 + $0x2e] sm:$0xff]  ;;  %v4153_v10 = vld [vmem:[%s6445_s28 + $0x13e] sm:$0xff] }
  0xfc   : > { %5763 = vmatprep.mubr.msk.f32.mxu1 %vm235_vm0, %v6947_v22  ;;  %6014 = vmatprep.mubr.msk.f32.mxu0 %vm235_vm0, %v3647_v12  ;;  %v4120_v22 = vld [vmem:[%s6445_s28 + $0x36] sm:$0xff] }
  0xff   : > { %5764 = vmatmul.mubr.msk.f32.gmra.mrb[10].mxu1 %vm235_vm0, %v6958_v23  ;;  %6015 = vmatmul.mubr.msk.f32.gmra.mrb[28].mxu0 %vm235_vm0, %v3648_v13  ;;  %v4121_v23 = vld [vmem:[%s6445_s28 + $0x3e] sm:$0xff] }
 0x100   : > { %5766 = vmatprep.mubr.msk.f32.mxu1 %vm235_vm0, %v6961_v24  ;;  %6017 = vmatprep.mubr.msk.f32.mxu0 %vm235_vm0, %v3649_v14  ;;  %v4122_v24 = vld [vmem:[%s6445_s28 + $0x46] sm:$0xff] }
 0x103   : > { %5767 = vmatmul.mubr.msk.f32.gmra.mrb[12].mxu1 %vm235_vm0, %v6972_v25  ;;  %6018 = vmatmul.mubr.msk.f32.gmra.mrb[30].mxu0 %vm235_vm0, %v3650_v15  ;;  %v4123_v25 = vld [vmem:[%s6445_s28 + $0x4e] sm:$0xff] }
 0x104   : > { %5769 = vmatprep.mubr.msk.f32.mxu1 %vm235_vm0, %v6975_v26  ;;  %6020 = vmatprep.mubr.msk.f32.mxu0 %vm235_vm0, %v3651_v16  ;;  %v4124_v26 = vld [vmem:[%s6445_s28 + $0x56] sm:$0xff] }
 0x107   : > { %5770 = vmatmul.mubr.msk.f32.gmra.mrb[14].mxu1 %vm235_vm0, %v6986_v11  ;;  %6021 = vmatmul.mubr.msk.f32.gmra.mrb[32].mxu0 %vm235_vm0, %v3652_v17  ;;  %v4126_v11 = vld [vmem:[%s6445_s28 + $0x66] sm:$0xff] }
 0x108   : > { %5772 = vmatprep.mubr.msk.f32.mxu1 %vm235_vm0, %v6990_v29  ;;  %6023 = vmatprep.mubr.msk.f32.mxu0 %vm235_vm0, %v3653_v18  ;;  %v4128_v29 = vld [vmem:[%s6445_s28 + $0x76] sm:$0xff] }
 0x10b   : > { %5773 = vmatmul.mubr.msk.f32.gmra.mrb[16].mxu1 %vm235_vm0, %v7000_v31  ;;  %6024 = vmatmul.mubr.msk.f32.gmra.mrb[34].mxu0 %vm235_vm0, %v3654_v19  ;;  %v4130_v31 = vld [vmem:[%s6445_s28 + $0x86] sm:$0xff] }
 0x10c   : > { %5775 = vmatprep.mubr.msk.f32.mxu1 %vm235_vm0, %v7004_v33  ;;  %6028 = vmatprep.mubr.msk.f32.mxu0 %vm235_vm0, %v4118_v20  ;;  %v4132_v33 = vld [vmem:[%s6445_s28 + $0x96] sm:$0xff] }
 0x10f   : > { %5776 = vmatmul.mubr.msk.f32.gmra.mrb[18].mxu1 %vm235_vm0, %v7014_v35  ;;  %6029 = vmatmul.mubr.msk.f32.vlgmr.msra.gmra.mrb[0].mxu0 %vm235_vm0, %v4119_v21  ;;  %v1657_v35 = vld [vmem:[%s6445_s28 + $0x122] sm:$0xff] }
 0x110   : > { %5778 = vmatprep.mubr.msk.f32.mxu1 %vm235_vm0, %v7019_v37  ;;  %6031 = vmatprep.mubr.msk.f32.mxu0 %vm235_vm0, %v4120_v22  ;;  %v1658_v37 = vld [vmem:[%s6445_s28 + $0x12a] sm:$0xff] }
 0x113   : > { %5779 = vmatmul.mubr.msk.f32.gmra.mrb[20].mxu1 %vm235_vm0, %v7029_v39  ;;  %6032 = vmatmul.mubr.msk.f32.gmra.mrb[2].mxu0 %vm235_vm0, %v4121_v23  ;;  %v2140_v39 = vld [vmem:[%s6445_s28 + $0xa3] sm:$0xff] }
 0x114   : > { %5781 = vmatprep.mubr.msk.f32.mxu1 %vm235_vm0, %v7033_v41  ;;  %6034 = vmatprep.mubr.msk.f32.mxu0 %vm235_vm0, %v4122_v24  ;;  %v2141_v41 = vld [vmem:[%s6445_s28 + $0xab] sm:$0xff] }
 0x117   : > { %5782 = vmatmul.mubr.msk.f32.gmra.mrb[22].mxu1 %vm235_vm0, %v7043_v43  ;;  %6035 = vmatmul.mubr.msk.f32.gmra.mrb[4].mxu0 %vm235_vm0, %v4123_v25  ;;  %v2142_v43 = vld [vmem:[%s6445_s28 + $0xb3] sm:$0xff] }
 0x118   : > { %5784 = vmatprep.mubr.msk.f32.mxu1 %vm235_vm0, %v7047_v45  ;;  %6037 = vmatprep.mubr.msk.f32.mxu0 %vm235_vm0, %v4124_v26  ;;  %v2143_v45 = vld [vmem:[%s6445_s28 + $0xbb] sm:$0xff] }
 0x11b   : > { %5785 = vmatmul.mubr.msk.f32.gmra.mrb[24].mxu1 %vm235_vm0, %v7057_v49  ;;  %6038 = vmatmul.mubr.msk.f32.gmra.mrb[6].mxu0 %vm235_vm0, %v4125_v27  ;;  %v2144_v49 = vld [vmem:[%s6445_s28 + $0xc3] sm:$0xff] }
 0x11c   : > { %5787 = vmatprep.mubr.msk.f32.mxu1 %vm235_vm0, %v7061_v53  ;;  %6040 = vmatprep.mubr.msk.f32.mxu0 %vm235_vm0, %v4126_v11  ;;  %v2145_v53 = vld [vmem:[%s6445_s28 + $0xcb] sm:$0xff] }
 0x11f   : > { %5788 = vmatmul.mubr.msk.f32.gmra.mrb[26].mxu1 %vm235_vm0, %v7071_v57  ;;  %6041 = vmatmul.mubr.msk.f32.gmra.mrb[8].mxu0 %vm235_vm0, %v4127_v28  ;;  %v2146_v57 = vld [vmem:[%s6445_s28 + $0xd3] sm:$0xff] }
 0x120   : > { %5790 = vmatprep.mubr.msk.f32.mxu1 %vm235_vm0, %v7075_v61  ;;  %6043 = vmatprep.mubr.msk.f32.mxu0 %vm235_vm0, %v4128_v29  ;;  %v2147_v61 = vld [vmem:[%s6445_s28 + $0xdb] sm:$0xff] }
 0x123   : > { %5791 = vmatmul.mubr.msk.f32.gmra.mrb[28].mxu1 %vm235_vm0, %v7085_v2  ;;  %6044 = vmatmul.mubr.msk.f32.gmra.mrb[10].mxu0 %vm235_vm0, %v4129_v30  ;;  %v2148_v2 = vld [vmem:[%s6445_s28 + $0xe3] sm:$0xff]  ;;  %v7357_v30 = vld [vmem:[%s7492_s2] ss:$0 sm:$0xff] }
 0x124   : > { %5793 = vmatprep.mubr.msk.f32.mxu1 %vm235_vm0, %v7089_v47  ;;  %6046 = vmatprep.mubr.msk.f32.mxu0 %vm235_vm0, %v4130_v31  ;;  %v2149_v47 = vld [vmem:[%s6445_s28 + $0xeb] sm:$0xff] }
 0x127   : > { %5794 = vmatmul.mubr.msk.f32.gmra.mrb[30].mxu1 %vm235_vm0, %v7099_v48  ;;  %6047 = vmatmul.mubr.msk.f32.gmra.mrb[12].mxu0 %vm235_vm0, %v4131_v32  ;;  %v2150_v48 = vld [vmem:[%s6445_s28 + $0xf3] sm:$0xff] }
 0x128   : > { %5796 = vmatprep.mubr.msk.f32.mxu1 %vm235_vm0, %v7103_v52  ;;  %6049 = vmatprep.mubr.msk.f32.mxu0 %vm235_vm0, %v4132_v33  ;;  %v2151_v52 = vld [vmem:[%s6445_s28 + $0xfb] sm:$0xff] }
 0x129   : > { %v7362_v33 = vld [vmem:[%s7493_s3] ss:$0 sm:$0xff] }
 0x12b   : > { %5797 = vmatmul.mubr.msk.f32.gmra.mrb[32].mxu1 %vm235_vm0, %v7113_v56  ;;  %6050 = vmatmul.mubr.msk.f32.gmra.mrb[14].mxu0 %vm235_vm0, %v4133_v34  ;;  %v2152_v56 = vld [vmem:[%s6445_s28 + $0x103] sm:$0xff] }
 0x12c   : > { %5799 = vmatprep.mubr.msk.f32.mxu1 %vm235_vm0, %v1657_v35  ;;  %6052 = vmatprep.mubr.msk.f32.mxu0 %vm235_vm0, %v4134_v36 }
 0x12f   : > { %5800 = vmatmul.mubr.msk.f32.gmra.mrb[34].mxu1 %vm235_vm0, %v1658_v37  ;;  %6053 = vmatmul.mubr.msk.f32.gmra.mrb[16].mxu0 %vm235_vm0, %v4135_v38 }
 0x130   : > { %5831 = vmatprep.mubr.msk.f32.mxu1 %vm235_vm0, %v2140_v39  ;;  %6055 = vmatprep.mubr.msk.f32.mxu0 %vm235_vm0, %v4136_v40 }
 0x133   : > { %5832 = vmatmul.mubr.msk.f32.vlgmr.msra.gmra.mrb[18].mxu1 %vm235_vm0, %v2141_v41  ;;  %6056 = vmatmul.mubr.msk.f32.gmra.mrb[18].mxu0 %vm235_vm0, %v4137_v42 }
 0x134   : > { %5834 = vmatprep.mubr.msk.f32.mxu1 %vm235_vm0, %v2142_v43  ;;  %6058 = vmatprep.mubr.msk.f32.mxu0 %vm235_vm0, %v4138_v44 }
 0x137   : > { %5835 = vmatmul.mubr.msk.f32.gmra.mrb[20].mxu1 %vm235_vm0, %v2143_v45  ;;  %6059 = vmatmul.mubr.msk.f32.gmra.mrb[20].mxu0 %vm235_vm0, %v4139_v46 }
 0x138   : > { %5837 = vmatprep.mubr.msk.f32.mxu1 %vm235_vm0, %v2144_v49  ;;  %6061 = vmatprep.mubr.msk.f32.mxu0 %vm235_vm0, %v4140_v51 }
 0x13b   : > { %5838 = vmatmul.mubr.msk.f32.gmra.mrb[22].mxu1 %vm235_vm0, %v2145_v53  ;;  %6062 = vmatmul.mubr.msk.f32.gmra.mrb[22].mxu0 %vm235_vm0, %v4141_v55 }
 0x13c   : > { %5840 = vmatprep.mubr.msk.f32.mxu1 %vm235_vm0, %v2146_v57  ;;  %6064 = vmatprep.mubr.msk.f32.mxu0 %vm235_vm0, %v4142_v59 }
 0x13f   : > { %5841 = vmatmul.mubr.msk.f32.gmra.mrb[24].mxu1 %vm235_vm0, %v2147_v61  ;;  %6065 = vmatmul.mubr.msk.f32.gmra.mrb[24].mxu0 %vm235_vm0, %v4143_v63 }
 0x140   : > { %5843 = vmatprep.mubr.msk.f32.mxu1 %vm235_vm0, %v2148_v2  ;;  %6067 = vmatprep.mubr.msk.f32.mxu0 %vm235_vm0, %v4144_v4 }
 0x143   : > { %5844 = vmatmul.mubr.msk.f32.gmra.mrb[26].mxu1 %vm235_vm0, %v2149_v47  ;;  %6068 = vmatmul.mubr.msk.f32.gmra.mrb[26].mxu0 %vm235_vm0, %v4145_v6 }
 0x144   : > { %5846 = vmatprep.mubr.msk.f32.mxu1 %vm235_vm0, %v2150_v48  ;;  %6070 = vmatprep.mubr.msk.f32.mxu0 %vm235_vm0, %v4146_v50 }
 0x147   : > { %5847 = vmatmul.mubr.msk.f32.gmra.mrb[28].mxu1 %vm235_vm0, %v2151_v52  ;;  %6071 = vmatmul.mubr.msk.f32.gmra.mrb[28].mxu0 %vm235_vm0, %v4147_v54 }
 0x148   : > { %5849 = vmatprep.mubr.msk.f32.mxu1 %vm235_vm0, %v2152_v56  ;;  %6073 = vmatprep.mubr.msk.f32.mxu0 %vm235_vm0, %v4148_v58 }
 0x14b   : > { %5850 = vmatmul.mubr.msk.f32.gmra.mrb[30].mxu1 %vm235_vm0, %v2153_v60  ;;  %6074 = vmatmul.mubr.msk.f32.gmra.mrb[30].mxu0 %vm235_vm0, %v4149_v62 }
 0x14c   : > { %5852 = vmatprep.mubr.msk.f32.mxu1 %vm235_vm0, %v2154_v0  ;;  %6076 = vmatprep.mubr.msk.f32.mxu0 %vm235_vm0, %v4150_v3 }
 0x14f   : > { %5853 = vmatmul.mubr.msk.f32.gmra.mrb[32].mxu1 %vm235_vm0, %v2155_v5  ;;  %6077 = vmatmul.mubr.msk.f32.gmra.mrb[32].mxu0 %vm235_vm0, %v4151_v1 }
 0x150   : > { %5855 = vmatprep.mubr.msk.f32.mxu1 %vm235_vm0, %v2156_v7  ;;  %6079 = vmatprep.mubr.msk.f32.mxu0 %vm235_vm0, %v4152_v8 }
 0x153   : > { %5856 = vmatmul.mubr.msk.f32.gmra.mrb[34].mxu1 %vm235_vm0, %v2157_v9  ;;  %6080 = vmatmul.mubr.msk.f32.gmra.mrb[34].mxu0 %vm235_vm0, %v4153_v10 }
 0x1be   : > { %v5750_v12 = vpop.f32.mrb[0].mxu1 }
 0x1bf   : > { %v1835_v13 = vpop.f32.mrb[1].mxu1 }
 0x1c2   : > { %v5753_v14 = vpop.f32.mrb[2].mxu1 }
 0x1c3   : > { %v1845_v15 = vpop.f32.mrb[3].mxu1 }
 0x1c6   : > { %v5756_v16 = vpop.f32.mrb[4].mxu1 }
 0x1c7   : > { %v1855_v17 = vpop.f32.mrb[5].mxu1 }
 0x1ca   : > { %v5759_v18 = vpop.f32.mrb[6].mxu1 }
 0x1cb   : > { %v1865_v19 = vpop.f32.mrb[7].mxu1 }
 0x1ce   : > { %v5762_v20 = vpop.f32.mrb[8].mxu1 }
 0x1cf   : > { %v7336_v21 = vpop.f32.mrb[9].mxu1 }
 0x1d2   : > { %v7338_v22 = vpop.f32.mrb[10].mxu1 }
 0x1d3   : > { %v7340_v23 = vpop.f32.mrb[11].mxu1 }
 0x1d6   : > { %v7342_v24 = vpop.f32.mrb[12].mxu1 }
 0x1d7   : > { %v7344_v25 = vpop.f32.mrb[13].mxu1 }
 0x1da   : > { %v7346_v26 = vpop.f32.mrb[14].mxu1 }
 0x1db   : > { %v7348_v27 = vpop.f32.mrb[15].mxu1 }
 0x1de   : > { %v7350_v11 = vpop.f32.mrb[16].mxu1 }
 0x1df   : > { %v7352_v28 = vpop.f32.mrb[17].mxu1 }
 0x1e2   : > { %v6030_v29 = vpop.f32.mrb[0].mxu0 }
 0x1e3   : > { %v6084_v31 = vadd.f32 %v6030_v29, %v5750_v12  ;;  %v4330_v32 = vpop.f32.mrb[1].mxu0 }
 0x1e4   : > { %v6085_v34 = vadd.f32 %v4330_v32, %v1835_v13 }
 0x1e5   : > { %v4661_v35 = vmul.f32 %v6084_v31, %v7357_v30 }
 0x1e6   : > { %v4660_v36 = vmul.f32 %v6085_v34, %v7357_v30  ;;  %v6033_v37 = vpop.f32.mrb[2].mxu0 }
 0x1e7   : > { %v4704_v38 = vadd.f32 %v7362_v33, %v4661_v35  ;;  %v6086_v39 = vadd.f32 %v6033_v37, %v5753_v14  ;;  %v4340_v40 = vpop.f32.mrb[3].mxu0 }
 0x1e8   : > { %v4703_v41 = vadd.f32 %v7362_v33, %v4660_v36  ;;  %v6087_v42 = vadd.f32 %v4340_v40, %v1845_v15 }
 0x1e9   : > { %v4740_v43 = vmul.f32 0.01, %v4704_v38  ;;  %v4663_v44 = vmul.f32 %v6086_v39, %v7357_v30 }
 0x1ea   : > { %v4739_v45 = vmul.f32 0.01, %v4703_v41  ;;  %v4662_v46 = vmul.f32 %v6087_v42, %v7357_v30  ;;  %v6036_v49 = vpop.f32.mrb[4].mxu0 }
 0x1eb   : > { %v4776_v51 = vmax.f32 %v4704_v38, %v4740_v43  ;;  %v4706_v53 = vadd.f32 %v7362_v33, %v4663_v44  ;;  %v6088_v55 = vadd.f32 %v6036_v49, %v5756_v16  ;;  %v4350_v57 = vpop.f32.mrb[5].mxu0 }
 0x1ec   : > { %v4775_v59 = vmax.f32 %v4703_v41, %v4739_v45  ;;  %v4705_v61 = vadd.f32 %v7362_v33, %v4662_v46  ;;  %v6089_v63 = vadd.f32 %v4350_v57, %v1855_v17 }
 0x1ed   : > { %4812 = vst [vmem:[%s7373_s22 + $0x8] sm:$0xff] %v4776_v51  ;;  %v4742_v2 = vmul.f32 0.01, %v4706_v53  ;;  %v4665_v4 = vmul.f32 %v6088_v55, %v7357_v30 }
 0x1ee   : > { %4811 = vst [vmem:[%s7373_s22] sm:$0xff] %v4775_v59  ;;  %v4741_v47 = vmul.f32 0.01, %v4705_v61  ;;  %v4664_v6 = vmul.f32 %v6089_v63, %v7357_v30  ;;  %v6039_v48 = vpop.f32.mrb[6].mxu0 }
 0x1ef   : > { %v4778_v50 = vmax.f32 %v4706_v53, %v4742_v2  ;;  %v4708_v52 = vadd.f32 %v7362_v33, %v4665_v4  ;;  %v6090_v54 = vadd.f32 %v6039_v48, %v5759_v18  ;;  %v4360_v56 = vpop.f32.mrb[7].mxu0 }
 0x1f0   : > { %v4777_v58 = vmax.f32 %v4705_v61, %v4741_v47  ;;  %v4707_v60 = vadd.f32 %v7362_v33, %v4664_v6  ;;  %v6091_v62 = vadd.f32 %v4360_v56, %v1865_v19 }
 0x1f1   : > { %4814 = vst [vmem:[%s7373_s22 + $0x18] sm:$0xff] %v4778_v50  ;;  %v4744_v0 = vmul.f32 0.01, %v4708_v52  ;;  %v4667_v3 = vmul.f32 %v6090_v54, %v7357_v30 }
 0x1f2   : > { %4813 = vst [vmem:[%s7373_s22 + $0x10] sm:$0xff] %v4777_v58  ;;  %v4743_v5 = vmul.f32 0.01, %v4707_v60  ;;  %v4666_v1 = vmul.f32 %v6091_v62, %v7357_v30  ;;  %v6042_v7 = vpop.f32.mrb[8].mxu0 }
 0x1f3   : > { %v4780_v8 = vmax.f32 %v4708_v52, %v4744_v0  ;;  %v4710_v9 = vadd.f32 %v7362_v33, %v4667_v3  ;;  %v6092_v10 = vadd.f32 %v6042_v7, %v5762_v20  ;;  %v4370_v12 = vpop.f32.mrb[9].mxu0 }
 0x1f4   : > { %v4779_v13 = vmax.f32 %v4707_v60, %v4743_v5  ;;  %v4709_v14 = vadd.f32 %v7362_v33, %v4666_v1  ;;  %v6093_v15 = vadd.f32 %v4370_v12, %v7336_v21 }
 0x1f5   : > { %4816 = vst [vmem:[%s7373_s22 + $0x28] sm:$0xff] %v4780_v8  ;;  %v4746_v16 = vmul.f32 0.01, %v4710_v9  ;;  %v4669_v17 = vmul.f32 %v6092_v10, %v7357_v30 }
 0x1f6   : > { %4815 = vst [vmem:[%s7373_s22 + $0x20] sm:$0xff] %v4779_v13  ;;  %v4745_v18 = vmul.f32 0.01, %v4709_v14  ;;  %v4668_v19 = vmul.f32 %v6093_v15, %v7357_v30  ;;  %v6045_v29 = vpop.f32.mrb[10].mxu0 }
 0x1f7   : > { %v4782_v31 = vmax.f32 %v4710_v9, %v4746_v16  ;;  %v4712_v20 = vadd.f32 %v7362_v33, %v4669_v17  ;;  %v6094_v32 = vadd.f32 %v6045_v29, %v7338_v22  ;;  %v4380_v34 = vpop.f32.mrb[11].mxu0 }
 0x1f8   : > { %v4781_v35 = vmax.f32 %v4709_v14, %v4745_v18  ;;  %v4711_v36 = vadd.f32 %v7362_v33, %v4668_v19  ;;  %v6095_v21 = vadd.f32 %v4380_v34, %v7340_v23 }
 0x1f9   : > { %4818 = vst [vmem:[%s7373_s22 + $0x38] sm:$0xff] %v4782_v31  ;;  %v4748_v37 = vmul.f32 0.01, %v4712_v20  ;;  %v4671_v38 = vmul.f32 %v6094_v32, %v7357_v30 }
 0x1fa   : > { %4817 = vst [vmem:[%s7373_s22 + $0x30] sm:$0xff] %v4781_v35  ;;  %v4747_v39 = vmul.f32 0.01, %v4711_v36  ;;  %v4670_v40 = vmul.f32 %v6095_v21, %v7357_v30  ;;  %v6048_v41 = vpop.f32.mrb[12].mxu0 }
 0x1fb   : > { %v4784_v42 = vmax.f32 %v4712_v20, %v4748_v37  ;;  %v4714_v22 = vadd.f32 %v7362_v33, %v4671_v38  ;;  %v6096_v43 = vadd.f32 %v6048_v41, %v7342_v24  ;;  %v4390_v44 = vpop.f32.mrb[13].mxu0 }
 0x1fc   : > { %v4783_v45 = vmax.f32 %v4711_v36, %v4747_v39  ;;  %v4713_v46 = vadd.f32 %v7362_v33, %v4670_v40  ;;  %v6097_v23 = vadd.f32 %v4390_v44, %v7344_v25 }
 0x1fd   : > { %4820 = vst [vmem:[%s7373_s22 + $0x48] sm:$0xff] %v4784_v42  ;;  %v4750_v49 = vmul.f32 0.01, %v4714_v22  ;;  %v4673_v51 = vmul.f32 %v6096_v43, %v7357_v30 }
 0x1fe   : > { %4819 = vst [vmem:[%s7373_s22 + $0x40] sm:$0xff] %v4783_v45  ;;  %v4749_v53 = vmul.f32 0.01, %v4713_v46  ;;  %v4672_v55 = vmul.f32 %v6097_v23, %v7357_v30  ;;  %v6051_v57 = vpop.f32.mrb[14].mxu0 }
 0x1ff   : > { %v4786_v59 = vmax.f32 %v4714_v22, %v4750_v49  ;;  %v4716_v24 = vadd.f32 %v7362_v33, %v4673_v51  ;;  %v6098_v61 = vadd.f32 %v6051_v57, %v7346_v26  ;;  %v4400_v63 = vpop.f32.mrb[15].mxu0 }
 0x200   : > { %v4785_v2 = vmax.f32 %v4713_v46, %v4749_v53  ;;  %v4715_v4 = vadd.f32 %v7362_v33, %v4672_v55  ;;  %v6099_v25 = vadd.f32 %v4400_v63, %v7348_v27 }
 0x201   : > { %4822 = vst [vmem:[%s7373_s22 + $0x58] sm:$0xff] %v4786_v59  ;;  %v4752_v47 = vmul.f32 0.01, %v4716_v24  ;;  %v4675_v6 = vmul.f32 %v6098_v61, %v7357_v30 }
 0x202   : > { %4821 = vst [vmem:[%s7373_s22 + $0x50] sm:$0xff] %v4785_v2  ;;  %v4751_v48 = vmul.f32 0.01, %v4715_v4  ;;  %v4674_v50 = vmul.f32 %v6099_v25, %v7357_v30  ;;  %v6054_v52 = vpop.f32.mrb[16].mxu0 }
 0x203   : > { %v4788_v54 = vmax.f32 %v4716_v24, %v4752_v47  ;;  %v4718_v26 = vadd.f32 %v7362_v33, %v4675_v6  ;;  %v6100_v56 = vadd.f32 %v6054_v52, %v7350_v11  ;;  %v4410_v58 = vpop.f32.mrb[17].mxu0 }
 0x204   : > { %v4787_v60 = vmax.f32 %v4715_v4, %v4751_v48  ;;  %v4717_v62 = vadd.f32 %v7362_v33, %v4674_v50  ;;  %v6101_v27 = vadd.f32 %v4410_v58, %v7352_v28 }
 0x205   : > { %4824 = vst [vmem:[%s7373_s22 + $0x68] sm:$0xff] %v4788_v54  ;;  %v4754_v0 = vmul.f32 0.01, %v4718_v26  ;;  %v4677_v3 = vmul.f32 %v6100_v56, %v7357_v30 }
 0x206   : > { %4823 = vst [vmem:[%s7373_s22 + $0x60] sm:$0xff] %v4787_v60  ;;  %v4753_v5 = vmul.f32 0.01, %v4717_v62  ;;  %v4676_v1 = vmul.f32 %v6101_v27, %v7357_v30  ;;  %v5833_v7 = vpop.f32.mrb[18].mxu1  ;;  %v6057_v8 = vpop.f32.mrb[18].mxu0 }
 0x207   : > { %v4790_v9 = vmax.f32 %v4718_v26, %v4754_v0  ;;  %v4720_v11 = vadd.f32 %v7362_v33, %v4677_v3  ;;  %v6102_v10 = vadd.f32 %v6057_v8, %v5833_v7  ;;  %v2424_v12 = vpop.f32.mrb[19].mxu1  ;;  %v4420_v13 = vpop.f32.mrb[19].mxu0 }
 0x208   : > { %v4789_v14 = vmax.f32 %v4717_v62, %v4753_v5  ;;  %v4719_v28 = vadd.f32 %v7362_v33, %v4676_v1  ;;  %v6103_v15 = vadd.f32 %v4420_v13, %v2424_v12 }
 0x209   : > { %4826 = vst [vmem:[%s7373_s22 + $0x78] sm:$0xff] %v4790_v9  ;;  %v4756_v16 = vmul.f32 0.01, %v4720_v11  ;;  %v4679_v17 = vmul.f32 %v6102_v10, %v7357_v30 }
 0x20a   : > { %4825 = vst [vmem:[%s7373_s22 + $0x70] sm:$0xff] %v4789_v14  ;;  %v4755_v18 = vmul.f32 0.01, %v4719_v28  ;;  %v4678_v19 = vmul.f32 %v6103_v15, %v7357_v30  ;;  %v5836_v29 = vpop.f32.mrb[20].mxu1  ;;  %v6060_v31 = vpop.f32.mrb[20].mxu0 }
 0x20b   : > { %v4792_v20 = vmax.f32 %v4720_v11, %v4756_v16  ;;  %v4722_v32 = vadd.f32 %v7362_v33, %v4679_v17  ;;  %v6104_v34 = vadd.f32 %v6060_v31, %v5836_v29  ;;  %v2434_v35 = vpop.f32.mrb[21].mxu1  ;;  %v4430_v36 = vpop.f32.mrb[21].mxu0 }
 0x20c   : > { %v4791_v21 = vmax.f32 %v4719_v28, %v4755_v18  ;;  %v4721_v37 = vadd.f32 %v7362_v33, %v4678_v19  ;;  %v6105_v38 = vadd.f32 %v4430_v36, %v2434_v35 }
 0x20d   : > { %4828 = vst [vmem:[%s7373_s22 + $0x88] sm:$0xff] %v4792_v20  ;;  %v4758_v39 = vmul.f32 0.01, %v4722_v32  ;;  %v4681_v40 = vmul.f32 %v6104_v34, %v7357_v30 }
 0x20e   : > { %4827 = vst [vmem:[%s7373_s22 + $0x80] sm:$0xff] %v4791_v21  ;;  %v4757_v41 = vmul.f32 0.01, %v4721_v37  ;;  %v4680_v42 = vmul.f32 %v6105_v38, %v7357_v30  ;;  %v5839_v22 = vpop.f32.mrb[22].mxu1  ;;  %v6063_v43 = vpop.f32.mrb[22].mxu0 }
 0x20f   : > { %v4794_v44 = vmax.f32 %v4722_v32, %v4758_v39  ;;  %v4724_v45 = vadd.f32 %v7362_v33, %v4681_v40  ;;  %v6106_v46 = vadd.f32 %v6063_v43, %v5839_v22  ;;  %v2444_v23 = vpop.f32.mrb[23].mxu1  ;;  %v4440_v49 = vpop.f32.mrb[23].mxu0 }
 0x210   : > { %v4793_v51 = vmax.f32 %v4721_v37, %v4757_v41  ;;  %v4723_v53 = vadd.f32 %v7362_v33, %v4680_v42  ;;  %v6107_v55 = vadd.f32 %v4440_v49, %v2444_v23 }
 0x211   : > { %4830 = vst [vmem:[%s7373_s22 + $0x98] sm:$0xff] %v4794_v44  ;;  %v4760_v57 = vmul.f32 0.01, %v4724_v45  ;;  %v4683_v59 = vmul.f32 %v6106_v46, %v7357_v30 }
 0x212   : > { %4829 = vst [vmem:[%s7373_s22 + $0x90] sm:$0xff] %v4793_v51  ;;  %v4759_v24 = vmul.f32 0.01, %v4723_v53  ;;  %v4682_v61 = vmul.f32 %v6107_v55, %v7357_v30  ;;  %v5842_v63 = vpop.f32.mrb[24].mxu1  ;;  %v6066_v2 = vpop.f32.mrb[24].mxu0 }
 0x213   : > { %v4796_v4 = vmax.f32 %v4724_v45, %v4760_v57  ;;  %v4726_v25 = vadd.f32 %v7362_v33, %v4683_v59  ;;  %v6108_v47 = vadd.f32 %v6066_v2, %v5842_v63  ;;  %v2454_v6 = vpop.f32.mrb[25].mxu1  ;;  %v4450_v48 = vpop.f32.mrb[25].mxu0 }
 0x214   : > { %v4795_v50 = vmax.f32 %v4723_v53, %v4759_v24  ;;  %v4725_v52 = vadd.f32 %v7362_v33, %v4682_v61  ;;  %v6109_v54 = vadd.f32 %v4450_v48, %v2454_v6 }
 0x215   : > { %4832 = vst [vmem:[%s7373_s22 + $0xa8] sm:$0xff] %v4796_v4  ;;  %v4762_v26 = vmul.f32 0.01, %v4726_v25  ;;  %v4685_v56 = vmul.f32 %v6108_v47, %v7357_v30 }
 0x216   : > { %4831 = vst [vmem:[%s7373_s22 + $0xa0] sm:$0xff] %v4795_v50  ;;  %v4761_v58 = vmul.f32 0.01, %v4725_v52  ;;  %v4684_v60 = vmul.f32 %v6109_v54, %v7357_v30  ;;  %v5845_v62 = vpop.f32.mrb[26].mxu1  ;;  %v6069_v27 = vpop.f32.mrb[26].mxu0 }
 0x217   : > { %v4798_v0 = vmax.f32 %v4726_v25, %v4762_v26  ;;  %v4728_v3 = vadd.f32 %v7362_v33, %v4685_v56  ;;  %v6110_v5 = vadd.f32 %v6069_v27, %v5845_v62  ;;  %v2464_v1 = vpop.f32.mrb[27].mxu1  ;;  %v4460_v7 = vpop.f32.mrb[27].mxu0 }
 0x218   : > { %v4797_v8 = vmax.f32 %v4725_v52, %v4761_v58  ;;  %v4727_v9 = vadd.f32 %v7362_v33, %v4684_v60  ;;  %v6111_v11 = vadd.f32 %v4460_v7, %v2464_v1 }
 0x219   : > { %4834 = vst [vmem:[%s7373_s22 + $0xb8] sm:$0xff] %v4798_v0  ;;  %v4764_v10 = vmul.f32 0.01, %v4728_v3  ;;  %v4687_v12 = vmul.f32 %v6110_v5, %v7357_v30 }
 0x21a   : > { %4833 = vst [vmem:[%s7373_s22 + $0xb0] sm:$0xff] %v4797_v8  ;;  %v4763_v13 = vmul.f32 0.01, %v4727_v9  ;;  %v4686_v14 = vmul.f32 %v6111_v11, %v7357_v30  ;;  %v5848_v28 = vpop.f32.mrb[28].mxu1  ;;  %v6072_v15 = vpop.f32.mrb[28].mxu0 }
 0x21b   : > { %v4800_v16 = vmax.f32 %v4728_v3, %v4764_v10  ;;  %v4730_v17 = vadd.f32 %v7362_v33, %v4687_v12  ;;  %v6112_v18 = vadd.f32 %v6072_v15, %v5848_v28  ;;  %v2474_v19 = vpop.f32.mrb[29].mxu1  ;;  %v4470_v29 = vpop.f32.mrb[29].mxu0 }
 0x21c   : > { %v4799_v31 = vmax.f32 %v4727_v9, %v4763_v13  ;;  %v4729_v20 = vadd.f32 %v7362_v33, %v4686_v14  ;;  %v6113_v32 = vadd.f32 %v4470_v29, %v2474_v19 }
 0x21d   : > { %4836 = vst [vmem:[%s7373_s22 + $0xc8] sm:$0xff] %v4800_v16  ;;  %v4766_v34 = vmul.f32 0.01, %v4730_v17  ;;  %v4689_v35 = vmul.f32 %v6112_v18, %v7357_v30 }
 0x21e   : > { %4835 = vst [vmem:[%s7373_s22 + $0xc0] sm:$0xff] %v4799_v31  ;;  %v4765_v36 = vmul.f32 0.01, %v4729_v20  ;;  %v4688_v21 = vmul.f32 %v6113_v32, %v7357_v30  ;;  %v5851_v37 = vpop.f32.mrb[30].mxu1  ;;  %v6075_v38 = vpop.f32.mrb[30].mxu0 }
 0x21f   : > { %v4802_v39 = vmax.f32 %v4730_v17, %v4766_v34  ;;  %v4732_v40 = vadd.f32 %v7362_v33, %v4689_v35  ;;  %v6114_v41 = vadd.f32 %v6075_v38, %v5851_v37  ;;  %v2484_v42 = vpop.f32.mrb[31].mxu1  ;;  %v4480_v22 = vpop.f32.mrb[31].mxu0 }
 0x220   : > { %v4801_v43 = vmax.f32 %v4729_v20, %v4765_v36  ;;  %v4731_v44 = vadd.f32 %v7362_v33, %v4688_v21  ;;  %v6115_v45 = vadd.f32 %v4480_v22, %v2484_v42 }
 0x221   : > { %4838 = vst [vmem:[%s7373_s22 + $0xd8] sm:$0xff] %v4802_v39  ;;  %v4768_v46 = vmul.f32 0.01, %v4732_v40  ;;  %v4691_v23 = vmul.f32 %v6114_v41, %v7357_v30 }
 0x222   : > { %4837 = vst [vmem:[%s7373_s22 + $0xd0] sm:$0xff] %v4801_v43  ;;  %v4767_v49 = vmul.f32 0.01, %v4731_v44  ;;  %v4690_v51 = vmul.f32 %v6115_v45, %v7357_v30  ;;  %v5854_v53 = vpop.f32.mrb[32].mxu1  ;;  %v6078_v55 = vpop.f32.mrb[32].mxu0 }
 0x223   : > { %v4804_v57 = vmax.f32 %v4732_v40, %v4768_v46  ;;  %v4734_v59 = vadd.f32 %v7362_v33, %v4691_v23  ;;  %v6116_v24 = vadd.f32 %v6078_v55, %v5854_v53  ;;  %v2494_v61 = vpop.f32.mrb[33].mxu1  ;;  %v4490_v63 = vpop.f32.mrb[33].mxu0 }
 0x224   : > { %v4803_v2 = vmax.f32 %v4731_v44, %v4767_v49  ;;  %v4733_v4 = vadd.f32 %v7362_v33, %v4690_v51  ;;  %v6117_v25 = vadd.f32 %v4490_v63, %v2494_v61 }
 0x225   : > { %4840 = vst [vmem:[%s7373_s22 + $0xe8] sm:$0xff] %v4804_v57  ;;  %v4770_v47 = vmul.f32 0.01, %v4734_v59  ;;  %v4693_v6 = vmul.f32 %v6116_v24, %v7357_v30 }
 0x226   : > { %4839 = vst [vmem:[%s7373_s22 + $0xe0] sm:$0xff] %v4803_v2  ;;  %v4769_v48 = vmul.f32 0.01, %v4733_v4  ;;  %v4692_v50 = vmul.f32 %v6117_v25, %v7357_v30  ;;  %v5857_v52 = vpop.f32.mrb[34].mxu1  ;;  %v6081_v54 = vpop.f32.mrb[34].mxu0 }
 0x227   : > { %v4806_v26 = vmax.f32 %v4734_v59, %v4770_v47  ;;  %v4736_v56 = vadd.f32 %v7362_v33, %v4693_v6  ;;  %v6118_v58 = vadd.f32 %v6081_v54, %v5857_v52  ;;  %v2504_v60 = vpop.f32.mrb[35].mxu1  ;;  %v4500_v62 = vpop.f32.mrb[35].mxu0 }
 0x228   : > { %v4805_v27 = vmax.f32 %v4733_v4, %v4769_v48  ;;  %v4735_v0 = vadd.f32 %v7362_v33, %v4692_v50  ;;  %v6119_v3 = vadd.f32 %v4500_v62, %v2504_v60 }
 0x229   : > { %4842 = vst [vmem:[%s7373_s22 + $0xf8] sm:$0xff] %v4806_v26  ;;  %v4772_v5 = vmul.f32 0.01, %v4736_v56  ;;  %v4695_v1 = vmul.f32 %v6118_v58, %v7357_v30 }
 0x22a   : > { %4841 = vst [vmem:[%s7373_s22 + $0xf0] sm:$0xff] %v4805_v27  ;;  %v4771_v7 = vmul.f32 0.01, %v4735_v0  ;;  %v4694_v8 = vmul.f32 %v6119_v3, %v7357_v30 }
 0x22b   : > { %v4808_v9 = vmax.f32 %v4736_v56, %v4772_v5  ;;  %v4738_v11 = vadd.f32 %v7362_v33, %v4695_v1 }
 0x22c   : > { %v4807_v10 = vmax.f32 %v4735_v0, %v4771_v7  ;;  %v4737_v12 = vadd.f32 %v7362_v33, %v4694_v8 }
 0x22d   : > { %4844 = vst [vmem:[%s7373_s22 + $0x108] sm:$0xff] %v4808_v9  ;;  %v4774_v13 = vmul.f32 0.01, %v4738_v11 }
 0x22e   : > { %4843 = vst [vmem:[%s7373_s22 + $0x100] sm:$0xff] %v4807_v10  ;;  %v4773_v14 = vmul.f32 0.01, %v4737_v12 }
 0x22f   : > { %v4810_v28 = vmax.f32 %v4738_v11, %v4774_v13 }
 0x230   : > { %v4809_v15 = vmax.f32 %v4737_v12, %v4773_v14 }
 0x231   : > { %4846 = vst [vmem:[%s7373_s22 + $0x118] sm:$0xff] %v4810_v28 }
 0x232   : > { %4845 = vst [vmem:[%s7373_s22 + $0x110] sm:$0xff] %v4809_v15 }
 0x233 PF: > { %s14_s15 = sadd.s32 1, %s6388_s15  }
 0x234   : > { %p11_p4 = scmp.ge.s32.totalorder %s14_s15, 4  }
 0x236   :  { %13 = sbr.rel (!%p11_p4) target bundleno = 1 (0x1), region = 74 }

</bundles_post_ra>
